<compile_context>
chip_gen: v6e
topology: v6e:2x2x1
jax: 0.10.0
libtpu: 0.0.40
codegen_flags: <defaults>
</compile_context>

<pallas_src>
import functools

import jax
import jax.numpy as jnp
from jax.experimental import pallas as pl
from jax.experimental.pallas import tpu as pltpu

LEAKY_SLOPE = 0.01   # nn.LeakyReLU() default
BN_EPS = 1e-5        # nn.BatchNorm2d default
_LANE = 128


def _round_up(x, m):
    return (x + m - 1) // m * m


def _largest_divisor_leq(total, target):
    t = max(1, min(total, int(target)))
    while total % t:
        t -= 1
    return t


def _auto_h_tile(img_h, img_w, cin, cout, budget_bytes=12 * 1024 * 1024):
    """Pick an H-tile so the per-step VMEM working set stays ~<= budget.

    Rough per-output-row cost: flat input row (bf16) + double-buffered output
    row (bf16) + f32 accumulator row + ~2 bf16 shifted-tap temporaries; the
    (double-buffered) weights are counted once.  Conservative enough for
    v5e's 16 MiB scoped default and v7x's 64 MiB physical VMEM.
    """
    per_row = img_w * (cin * 2 + 2 * cout * 2 + cout * 4 + 2 * cin * 2)
    fixed = 2 * 9 * cin * cout * 2
    return max(1, (budget_bytes - fixed) // max(per_row, 1))


# ----------------------------------------------------------------------------
# Pallas kernels
# ----------------------------------------------------------------------------
def _conv3x3_bn_stats_kernel(x_hbm, ps_ref, pb_ref, w_ref,
                             y_ref, sum_ref, ssq_ref,
                             xbuf, sem, *, th, img_h, img_w, apply_prologue):
    """One (batch, H-tile) step: [prev-layer BN-affine + LeakyReLU prologue]
    -> 3x3 conv (9 accumulating MXU matmuls, f32 accumulate) -> per-channel
    sum / sum-of-squares for this layer's training-mode BatchNorm.

    x_hbm  : (N, H*W, Cin)     bf16  whole activation, left in HBM (pl.ANY)
    ps_ref : (1, Cin)          f32   prologue scale (unused w/o prologue)
    pb_ref : (1, Cin)          f32   prologue bias
    w_ref  : (9, Cin, Cout)    bf16  weights, leading dim = kh*3 + kw
    y_ref  : (TH*W, Cout)      bf16  raw conv output rows of this tile
    sum_ref: (1, Cout)         f32   per-tile per-channel sum
    ssq_ref: (1, Cout)         f32   per-tile per-channel sum of squares
    xbuf   : ((TH+2)*W, Cin)   bf16  VMEM scratch: tile rows + 1-row halos
    sem    : DMA semaphores (3,)
    """
    n = pl.program_id(0)
    t = pl.program_id(1)
    cin = xbuf.shape[-1]
    rows = th * img_w

    # --- fetch this tile's rows plus a one-row halo on each side (manual DMA;
    #     the halo row index is clamped at the image border and zeroed below).
    top_row = jnp.maximum(t * th - 1, 0)
    bot_row = jnp.minimum(t * th + th, img_h - 1)
    cp_top = pltpu.make_async_copy(
        x_hbm.at[n, pl.ds(top_row * img_w, img_w), :],
        xbuf.at[pl.ds(0, img_w), :], sem.at[0])
    cp_mid = pltpu.make_async_copy(
        x_hbm.at[n, pl.ds(t * rows, rows), :],
        xbuf.at[pl.ds(img_w, rows), :], sem.at[1])
    cp_bot = pltpu.make_async_copy(
        x_hbm.at[n, pl.ds(bot_row * img_w, img_w), :],
        xbuf.at[pl.ds(img_w + rows, img_w), :], sem.at[2])
    cp_top.start(); cp_mid.start(); cp_bot.start()
    cp_top.wait(); cp_mid.wait(); cp_bot.wait()

    # --- previous layer's BN-affine + LeakyReLU fused as a prologue (also on
    #     the halo rows: they are the neighbour tile's raw conv outputs).
    if apply_prologue:
        v = xbuf[...].astype(jnp.float32) * ps_ref[...] + pb_ref[...]
        xbuf[...] = jnp.where(v > 0, v, LEAKY_SLOPE * v).astype(jnp.bfloat16)

    # --- zero the halo rows at the image top/bottom (conv zero padding).
    #     Must happen after the prologue so padding stays exactly zero.
    @pl.when(t == 0)
    def _():
        xbuf[pl.ds(0, img_w), :] = jnp.zeros((img_w, cin), jnp.bfloat16)

    @pl.when(t == pl.num_programs(1) - 1)
    def _():
        xbuf[pl.ds(img_w + rows, img_w), :] = jnp.zeros((img_w, cin),
                                                        jnp.bfloat16)

    # --- masks for the +/-1 column taps (left/right zero padding in W).
    col = jax.lax.broadcasted_iota(jnp.int32, (rows, 1), 0) % img_w
    not_first_col = col != 0            # rows where a w-1 neighbour exists
    not_last_col = col != (img_w - 1)   # rows where a w+1 neighbour exists

    # --- 3x3 conv as 9 accumulating matmuls on shifted views (no im2col
    #     patch buffer).  M = TH*W, K = Cin per dot, f32 accumulation.
    cout = w_ref.shape[-1]
    acc = jnp.zeros((rows, cout), jnp.float32)
    for kh in range(3):
        base = xbuf[pl.ds(kh * img_w, rows), :]
        zero = jnp.zeros_like(base)
        for kw in range(3):
            dw = kw - 1
            if dw == 0:
                lhs = base
            elif dw == 1:
                # lhs[p] = base[p + 1]; wrapped row lands on w == W-1 -> masked
                shifted = jnp.concatenate([base[1:], base[:1]], axis=0)
                lhs = jnp.where(not_last_col, shifted, zero)
            else:
                # lhs[p] = base[p - 1]; wrapped row lands on w == 0 -> masked
                shifted = jnp.concatenate([base[-1:], base[:-1]], axis=0)
                lhs = jnp.where(not_first_col, shifted, zero)
            # TODO(synk): a pltpu.roll on the sublane axis would keep this
            # one-row shift on the (otherwise idle) XLU instead of slice+concat.
            acc = acc + jnp.dot(lhs, w_ref[kh * 3 + kw],
                                preferred_element_type=jnp.float32)

    # --- BN batch statistics piggyback on the f32 accumulator.
    sum_ref[...] = jnp.sum(acc, axis=0, keepdims=True)
    ssq_ref[...] = jnp.sum(acc * acc, axis=0, keepdims=True)
    y_ref[...] = acc.astype(y_ref.dtype)


def _bn_lrelu_kernel(y_ref, s_ref, b_ref, o_ref, *, fo):
    """Final-layer BN-affine + LeakyReLU; slices away padded channels."""
    y = y_ref[...].astype(jnp.float32) * s_ref[...] + b_ref[...]
    y = jnp.where(y > 0, y, LEAKY_SLOPE * y)
    o_ref[...] = y[:, :fo]


# ----------------------------------------------------------------------------
# pallas_call wrappers
# ----------------------------------------------------------------------------
def _conv3x3_bn_stats(x_flat, pscale, pbias, w, *, img_h, img_w,
                      apply_prologue, h_tile=None):
    """x_flat: (N, H*W, Cin) bf16 (Cin lane-padded); pscale/pbias: (1, Cin) f32;
    w: (9, Cin, Cout) bf16.  Returns:
      y   : (N, H*W, Cout)   bf16  raw conv output
      sums: (N, nH, 1, Cout) f32   per-tile per-channel sums
      ssqs: (N, nH, 1, Cout) f32   per-tile per-channel sums of squares
    """
    N, HW, cin = x_flat.shape
    assert HW == img_h * img_w
    cout = w.shape[-1]

    th = _largest_divisor_leq(
        img_h, h_tile if h_tile is not None
        else _auto_h_tile(img_h, img_w, cin, cout))
    n_h = img_h // th
    rows = th * img_w

    kernel = functools.partial(_conv3x3_bn_stats_kernel, th=th, img_h=img_h,
                               img_w=img_w, apply_prologue=apply_prologue)
    # TODO(synk): for very large Cin/Cout (>~1K channels) also add Cout (and K)
    # grid axes with a blocked weight + f32 VMEM accumulator so the weight
    # block and accumulator stay within the VMEM budget on v7x.
    return pl.pallas_call(
        kernel,
        out_shape=(
            jax.ShapeDtypeStruct((N, HW, cout), jnp.bfloat16),
            jax.ShapeDtypeStruct((N, n_h, 1, cout), jnp.float32),
            jax.ShapeDtypeStruct((N, n_h, 1, cout), jnp.float32),
        ),
        grid=(N, n_h),
        in_specs=[
            pl.BlockSpec(memory_space=pl.ANY),               # x stays in HBM
            pl.BlockSpec((1, cin), lambda n, t: (0, 0)),
            pl.BlockSpec((1, cin), lambda n, t: (0, 0)),
            pl.BlockSpec((9, cin, cout), lambda n, t: (0, 0, 0)),
        ],
        out_specs=(
            pl.BlockSpec((pl.Squeezed(), rows, cout), lambda n, t: (n, t, 0)),
            pl.BlockSpec((pl.Squeezed(), pl.Squeezed(), 1, cout),
                         lambda n, t: (n, t, 0, 0)),
            pl.BlockSpec((pl.Squeezed(), pl.Squeezed(), 1, cout),
                         lambda n, t: (n, t, 0, 0)),
        ),
        scratch_shapes=[
            pltpu.VMEM(((th + 2) * img_w, cin), jnp.bfloat16),
            pltpu.SemaphoreType.DMA((3,)),
        ],
        compiler_params=pltpu.CompilerParams(
            dimension_semantics=("parallel", "parallel"),
            vmem_limit_bytes=32 * 1024 * 1024),
    )(x_flat, pscale, pbias, w)


def _bn_lrelu_apply(y_flat, scale, bias, fo, row_tile=None):
    """y_flat: (N, HW, C) bf16; scale/bias: (1, C) f32 -> (N, HW, fo) f32."""
    N, HW, C = y_flat.shape
    tr = _largest_divisor_leq(HW, row_tile if row_tile is not None else 1024)
    kernel = functools.partial(_bn_lrelu_kernel, fo=fo)
    return pl.pallas_call(
        kernel,
        out_shape=jax.ShapeDtypeStruct((N, HW, fo), jnp.float32),
        grid=(N, HW // tr),
        in_specs=[
            pl.BlockSpec((pl.Squeezed(), tr, C), lambda n, b: (n, b, 0)),
            pl.BlockSpec((1, C), lambda n, b: (0, 0)),
            pl.BlockSpec((1, C), lambda n, b: (0, 0)),
        ],
        out_specs=pl.BlockSpec((pl.Squeezed(), tr, fo), lambda n, b: (n, b, 0)),
        compiler_params=pltpu.CompilerParams(
            dimension_semantics=("parallel", "parallel"),
            vmem_limit_bytes=32 * 1024 * 1024),
    )(y_flat, scale, bias)


# ----------------------------------------------------------------------------
# Glue (tiny / layout-only, plain JAX)
# ----------------------------------------------------------------------------
def _bn_scale_bias(sums, ssqs, gamma, beta, count):
    """Fold training-mode BN (batch stats, biased variance) into scale/bias."""
    s = jnp.sum(sums, axis=(0, 1, 2))                 # (C,)
    q = jnp.sum(ssqs, axis=(0, 1, 2))
    mean = s / count
    # NOTE: E[x^2]-E[x]^2 in f32 is fine at these magnitudes/counts; switch to
    # a per-tile mean-offset / Welford combine if counts get very large.
    var = jnp.maximum(q / count - mean * mean, 0.0)   # biased, as PyTorch uses
    scale = gamma / jnp.sqrt(var + BN_EPS)
    bias = beta - mean * scale
    c = scale.shape[0]
    return (scale.reshape(1, c).astype(jnp.float32),
            bias.reshape(1, c).astype(jnp.float32))


def bilinear_align_corners(x_nchw, out_h, out_w):
    """F.interpolate(..., mode='bilinear', align_corners=True) on NCHW."""
    N, C, H, W = x_nchw.shape

    def src_coords(out_size, in_size):
        if out_size == 1 or in_size == 1:
            return jnp.zeros((out_size,), jnp.float32)
        return jnp.arange(out_size, dtype=jnp.float32) * (
            (in_size - 1) / (out_size - 1))

    sy = src_coords(out_h, H)
    sx = src_coords(out_w, W)
    y0 = jnp.floor(sy).astype(jnp.int32)
    y1 = jnp.minimum(y0 + 1, H - 1)
    wy = (sy - y0.astype(jnp.float32))[None, None, :, None]
    x0 = jnp.floor(sx).astype(jnp.int32)
    x1 = jnp.minimum(x0 + 1, W - 1)
    wx = (sx - x0.astype(jnp.float32))[None, None, None, :]

    r0 = jnp.take(x_nchw, y0, axis=2)
    r1 = jnp.take(x_nchw, y1, axis=2)
    rows = r0 * (1.0 - wy) + r1 * wy
    c0 = jnp.take(rows, x0, axis=3)
    c1 = jnp.take(rows, x1, axis=3)
    return c0 * (1.0 - wx) + c1 * wx


def _pad_axis(a, axis, new_size, value=0.0):
    pad = [(0, 0)] * a.ndim
    pad[axis] = (0, new_size - a.shape[axis])
    return jnp.pad(a, pad, constant_values=value)


def _prep_weight(w, cin_p, cout_p):
    """(3,3,Cin,Cout) -> zero-pad channels -> (9, Cin_p, Cout_p) bf16,
    leading dim ordered kh*3 + kw to match the kernel's tap loop."""
    w = _pad_axis(_pad_axis(w, 2, cin_p), 3, cout_p)
    return w.reshape(9, cin_p, cout_p).astype(jnp.bfloat16)


# ----------------------------------------------------------------------------
# UpSampleBN module
# ----------------------------------------------------------------------------
def init_upsample_bn_params(key, skip_input, output_features):
    k = jax.random.split(key, 4)
    F = output_features
    return {
        # conv weights stored as (kh, kw, Cin, Cout)
        "w1": 0.1 * jax.random.normal(k[0], (3, 3, skip_input, F), jnp.float32),
        "b1": 0.1 * jax.random.normal(k[1], (F,), jnp.float32),  # cancelled by BN
        "gamma1": jnp.ones((F,), jnp.float32),
        "beta1": jnp.zeros((F,), jnp.float32),
        "w2": 0.1 * jax.random.normal(k[2], (3, 3, F, F), jnp.float32),
        "b2": 0.1 * jax.random.normal(k[3], (F,), jnp.float32),  # cancelled by BN
        "gamma2": jnp.ones((F,), jnp.float32),
        "beta2": jnp.zeros((F,), jnp.float32),
    }


def upsample_bn_forward(params, x_nchw, concat_with_nchw, *,
                        h_tile=None, row_tile=None):
    """Matches UpSampleBN.forward (training-mode BatchNorm): NCHW in/out."""
    if concat_with_nchw is None:
        f = bilinear_align_corners(x_nchw, 2 * x_nchw.shape[2],
                                   2 * x_nchw.shape[3])
    else:
        up_x = bilinear_align_corners(x_nchw, concat_with_nchw.shape[2],
                                      concat_with_nchw.shape[3])
        f = jnp.concatenate([up_x, concat_with_nchw], axis=1)

    N, C, H, W = f.shape
    Fo = params["w1"].shape[-1]
    cin_p = _round_up(C, _LANE)
    cout_p = _round_up(Fo, _LANE)
    count = N * H * W

    # NCHW -> flat NHWC rows, lane-pad channels, cast bf16 (one layout pass;
    # the 3x3 halo is handled entirely inside the kernel).
    # TODO(synk): for very small real channel counts the lane padding inflates
    # HBM traffic; keep HBM un-padded and pad only in VMEM if that matters.
    f_flat = _pad_axis(jnp.transpose(f, (0, 2, 3, 1)), 3, cin_p)
    f_flat = f_flat.reshape(N, H * W, cin_p).astype(jnp.bfloat16)

    w1 = _prep_weight(params["w1"], cin_p, cout_p)
    w2 = _prep_weight(params["w2"], cout_p, cout_p)
    g1 = _pad_axis(params["gamma1"], 0, cout_p, 1.0)
    be1 = _pad_axis(params["beta1"], 0, cout_p)
    g2 = _pad_axis(params["gamma2"], 0, cout_p, 1.0)
    be2 = _pad_axis(params["beta2"], 0, cout_p)
    # NOTE: conv biases params["b1"]/["b2"] are intentionally not applied:
    # training-mode BatchNorm subtracts the batch mean, which cancels any
    # per-channel constant exactly (zero numerical effect).

    ones = jnp.ones((1, cin_p), jnp.float32)
    zeros = jnp.zeros((1, cin_p), jnp.float32)

    # Layer 1: conv3x3 + fused BN batch stats (H-tiled, manual halo DMA).
    y1, s1, q1 = _conv3x3_bn_stats(f_flat, ones, zeros, w1, img_h=H, img_w=W,
                                   apply_prologue=False, h_tile=h_tile)
    scale1, bias1 = _bn_scale_bias(s1, q1, g1, be1, count)

    # Layer 2: BN1-affine + LeakyReLU fused as conv2's prologue, + BN2 stats.
    y2, s2, q2 = _conv3x3_bn_stats(y1, scale1, bias1, w2, img_h=H, img_w=W,
                                   apply_prologue=True, h_tile=h_tile)
    scale2, bias2 = _bn_scale_bias(s2, q2, g2, be2, count)

    # Final BN2-affine + LeakyReLU: row-tiled, padded channels sliced in-kernel.
    out_flat = _bn_lrelu_apply(y2, scale2, bias2, Fo, row_tile=row_tile)

    # TODO(synk): the NHWC->NCHW transpose could be fused into the final
    # kernel's output spec if the extra layout pass ever shows up in profiles.
    out = out_flat.reshape(N, H, W, Fo)
    return jnp.transpose(out, (0, 3, 1, 2))            # NHWC -> NCHW


# ----------------------------------------------------------------------------
# Pure-JAX f32 reference (mirrors the PyTorch module, training-mode BN)
# ----------------------------------------------------------------------------
def _reference_forward(params, x_nchw, concat_with_nchw):
    up_x = bilinear_align_corners(x_nchw, concat_with_nchw.shape[2],
                                  concat_with_nchw.shape[3])
    f = jnp.concatenate([up_x, concat_with_nchw], axis=1)

    def conv_bn_lrelu(h, w, b, gamma, beta):
        w_oihw = jnp.transpose(w, (3, 2, 0, 1))
        y = jax.lax.conv_general_dilated(
            h, w_oihw, (1, 1), ((1, 1), (1, 1)),
            dimension_numbers=("NCHW", "OIHW", "NCHW"))
        y = y + b.reshape(1, -1, 1, 1)
        mean = jnp.mean(y, axis=(0, 2, 3), keepdims=True)
        var = jnp.mean((y - mean) ** 2, axis=(0, 2, 3), keepdims=True)
        y = ((y - mean) / jnp.sqrt(var + BN_EPS) * gamma.reshape(1, -1, 1, 1)
             + beta.reshape(1, -1, 1, 1))
        return jnp.where(y > 0, y, LEAKY_SLOPE * y)

    h = conv_bn_lrelu(f, params["w1"], params["b1"],
                      params["gamma1"], params["beta1"])
    return conv_bn_lrelu(h, params["w2"], params["b2"],
                         params["gamma2"], params["beta2"])


if __name__ == "__main__":
    key = jax.random.PRNGKey(0)
    kx, kc, kp = jax.random.split(key, 3)

    # x: (N=2, C=4, 8, 8); concat_with: (N=2, C=4, 16, 16)
    x = jax.random.normal(kx, (2, 4, 8, 8), jnp.float32)
    concat_with = jax.random.normal(kc, (2, 4, 16, 16), jnp.float32)

    skip_input = x.shape[1] + concat_with.shape[1]   # 8
    output_features = 4
    params = init_upsample_bn_params(kp, skip_input, output_features)

    # h_tile=8 -> 2 H-tiles per sample, so the halo-exchange path is exercised.
    fwd = jax.jit(functools.partial(upsample_bn_forward, h_tile=8))
    out = jax.block_until_ready(fwd(params, x, concat_with))
    assert out.shape == (2, output_features, 16, 16), out.shape
    assert bool(jnp.all(jnp.isfinite(out)))

    # bf16 kernel pipeline vs f32 reference (tolerance documented per review:
    # conv inputs/weights/intermediates are bf16, accumulation & BN are f32).
    ref = _reference_forward(params, x, concat_with)
    max_err = float(jnp.max(jnp.abs(out - ref)))
    assert max_err < 0.15, f"max abs err vs f32 reference: {max_err}"

    print("KERNEL_OK")
</pallas_src>

<mosaic_0001>
module attributes {stable_mosaic.version = 11 : i64} {
  func.func @_conv3x3_bn_stats_kernel(%arg0: i32, %arg1: i32, %arg2: memref<2x256x128xbf16, #tpu.memory_space<any>>, %arg3: memref<1x128xf32, #tpu.memory_space<vmem>>, %arg4: memref<1x128xf32, #tpu.memory_space<vmem>>, %arg5: memref<9x128x128xbf16, #tpu.memory_space<vmem>>, %arg6: memref<1x128x128xbf16, #tpu.memory_space<vmem>>, %arg7: memref<1x1x1x128xf32, #tpu.memory_space<vmem>>, %arg8: memref<1x1x1x128xf32, #tpu.memory_space<vmem>>, %arg9: memref<160x128xbf16, #tpu.memory_space<vmem>>, %arg10: memref<3x!tpu.dma_semaphore, #tpu.memory_space<semaphore_mem>>) attributes {dimension_semantics = [#tpu.dimension_semantics<parallel>, #tpu.dimension_semantics<parallel>], iteration_bounds = array<i64: 2, 2>, scalar_prefetch = 0 : i64, scratch_operands = 2 : i64, tpu.core_type = #tpu.core_type<tc>, window_params = [{}, {pipeline_mode = #tpu.pipeline_mode<synchronous>, transform_indices = @transform_1, window_bounds = array<i64: 1, 128>}, {pipeline_mode = #tpu.pipeline_mode<synchronous>, transform_indices = @transform_2, window_bounds = array<i64: 1, 128>}, {pipeline_mode = #tpu.pipeline_mode<synchronous>, transform_indices = @transform_3, window_bounds = array<i64: 9, 128, 128>}, {transform_indices = @transform_4, window_bounds = array<i64: 1, 128, 128>}, {transform_indices = @transform_5, window_bounds = array<i64: 1, 1, 1, 128>}, {transform_indices = @transform_6, window_bounds = array<i64: 1, 1, 1, 128>}]} {
    %c8_i32 = arith.constant 8 : i32
    %0 = arith.muli %arg1, %c8_i32 : i32
    %c1_i32 = arith.constant 1 : i32
    %1 = arith.subi %0, %c1_i32 : i32
    %c0_i32 = arith.constant 0 : i32
    %2 = arith.maxsi %1, %c0_i32 : i32
    %c8_i32_0 = arith.constant 8 : i32
    %3 = arith.muli %arg1, %c8_i32_0 : i32
    %c8_i32_1 = arith.constant 8 : i32
    %4 = arith.addi %3, %c8_i32_1 : i32
    %c15_i32 = arith.constant 15 : i32
    %5 = arith.minsi %4, %c15_i32 : i32
    %c16_i32 = arith.constant 16 : i32
    %6 = arith.muli %2, %c16_i32 : i32
    %c128_i32 = arith.constant 128 : i32
    %7 = arith.muli %arg1, %c128_i32 : i32
    %c16_i32_2 = arith.constant 16 : i32
    %8 = arith.muli %5, %c16_i32_2 : i32
    %c0_i32_3 = arith.constant 0 : i32
    %c0_i32_4 = arith.constant 0 : i32
    %9 = tpu.memref_slice %arg2[%arg0, %6, %c0_i32_4] : memref<2x256x128xbf16, #tpu.memory_space<any>> -> memref<1x16x128xbf16, #tpu.memory_space<any>>
    %10 = tpu.memref_squeeze %9 : memref<1x16x128xbf16, #tpu.memory_space<any>> -> memref<16x128xbf16, #tpu.memory_space<any>>
    %c0_i32_5 = arith.constant 0 : i32
    %c0_i32_6 = arith.constant 0 : i32
    %11 = tpu.memref_slice %arg9[%c0_i32_5, %c0_i32_6] : memref<160x128xbf16, #tpu.memory_space<vmem>> -> memref<16x128xbf16, #tpu.memory_space<vmem>>
    %12 = tpu.memref_slice %arg10[%c0_i32_3] : memref<3x!tpu.dma_semaphore, #tpu.memory_space<semaphore_mem>> -> memref<1x!tpu.dma_semaphore, #tpu.memory_space<semaphore_mem>>
    %13 = tpu.memref_squeeze %12 : memref<1x!tpu.dma_semaphore, #tpu.memory_space<semaphore_mem>> -> memref<!tpu.dma_semaphore, #tpu.memory_space<semaphore_mem>>
    tpu.enqueue_dma source(%10 : memref<16x128xbf16, #tpu.memory_space<any>>) target(%11 : memref<16x128xbf16, #tpu.memory_space<vmem>>) target_semaphore(%13 : memref<!tpu.dma_semaphore, #tpu.memory_space<semaphore_mem>>)
    %c1_i32_7 = arith.constant 1 : i32
    %c0_i32_8 = arith.constant 0 : i32
    %14 = tpu.memref_slice %arg2[%arg0, %7, %c0_i32_8] : memref<2x256x128xbf16, #tpu.memory_space<any>> -> memref<1x128x128xbf16, #tpu.memory_space<any>>
    %15 = tpu.memref_squeeze %14 : memref<1x128x128xbf16, #tpu.memory_space<any>> -> memref<128x128xbf16, #tpu.memory_space<any>>
    %c16_i32_9 = arith.constant 16 : i32
    %c0_i32_10 = arith.constant 0 : i32
    %16 = tpu.memref_slice %arg9[%c16_i32_9, %c0_i32_10] : memref<160x128xbf16, #tpu.memory_space<vmem>> -> memref<128x128xbf16, #tpu.memory_space<vmem>>
    %17 = tpu.memref_slice %arg10[%c1_i32_7] : memref<3x!tpu.dma_semaphore, #tpu.memory_space<semaphore_mem>> -> memref<1x!tpu.dma_semaphore, #tpu.memory_space<semaphore_mem>>
    %18 = tpu.memref_squeeze %17 : memref<1x!tpu.dma_semaphore, #tpu.memory_space<semaphore_mem>> -> memref<!tpu.dma_semaphore, #tpu.memory_space<semaphore_mem>>
    tpu.enqueue_dma source(%15 : memref<128x128xbf16, #tpu.memory_space<any>>) target(%16 : memref<128x128xbf16, #tpu.memory_space<vmem>>) target_semaphore(%18 : memref<!tpu.dma_semaphore, #tpu.memory_space<semaphore_mem>>)
    %c2_i32 = arith.constant 2 : i32
    %c0_i32_11 = arith.constant 0 : i32
    %19 = tpu.memref_slice %arg2[%arg0, %8, %c0_i32_11] : memref<2x256x128xbf16, #tpu.memory_space<any>> -> memref<1x16x128xbf16, #tpu.memory_space<any>>
    %20 = tpu.memref_squeeze %19 : memref<1x16x128xbf16, #tpu.memory_space<any>> -> memref<16x128xbf16, #tpu.memory_space<any>>
    %c144_i32 = arith.constant 144 : i32
    %c0_i32_12 = arith.constant 0 : i32
    %21 = tpu.memref_slice %arg9[%c144_i32, %c0_i32_12] : memref<160x128xbf16, #tpu.memory_space<vmem>> -> memref<16x128xbf16, #tpu.memory_space<vmem>>
    %22 = tpu.memref_slice %arg10[%c2_i32] : memref<3x!tpu.dma_semaphore, #tpu.memory_space<semaphore_mem>> -> memref<1x!tpu.dma_semaphore, #tpu.memory_space<semaphore_mem>>
    %23 = tpu.memref_squeeze %22 : memref<1x!tpu.dma_semaphore, #tpu.memory_space<semaphore_mem>> -> memref<!tpu.dma_semaphore, #tpu.memory_space<semaphore_mem>>
    tpu.enqueue_dma source(%20 : memref<16x128xbf16, #tpu.memory_space<any>>) target(%21 : memref<16x128xbf16, #tpu.memory_space<vmem>>) target_semaphore(%23 : memref<!tpu.dma_semaphore, #tpu.memory_space<semaphore_mem>>)
    %c0_i32_13 = arith.constant 0 : i32
    %c0_i32_14 = arith.constant 0 : i32
    %24 = tpu.memref_slice %arg2[%arg0, %6, %c0_i32_14] : memref<2x256x128xbf16, #tpu.memory_space<any>> -> memref<1x16x128xbf16, #tpu.memory_space<any>>
    %25 = tpu.memref_squeeze %24 : memref<1x16x128xbf16, #tpu.memory_space<any>> -> memref<16x128xbf16, #tpu.memory_space<any>>
    %c0_i32_15 = arith.constant 0 : i32
    %c0_i32_16 = arith.constant 0 : i32
    %26 = tpu.memref_slice %arg9[%c0_i32_15, %c0_i32_16] : memref<160x128xbf16, #tpu.memory_space<vmem>> -> memref<16x128xbf16, #tpu.memory_space<vmem>>
    %27 = tpu.memref_slice %arg10[%c0_i32_13] : memref<3x!tpu.dma_semaphore, #tpu.memory_space<semaphore_mem>> -> memref<1x!tpu.dma_semaphore, #tpu.memory_space<semaphore_mem>>
    %28 = tpu.memref_squeeze %27 : memref<1x!tpu.dma_semaphore, #tpu.memory_space<semaphore_mem>> -> memref<!tpu.dma_semaphore, #tpu.memory_space<semaphore_mem>>
    tpu.wait_dma2 semaphore(%28 : memref<!tpu.dma_semaphore, #tpu.memory_space<semaphore_mem>>) src(%25 : memref<16x128xbf16, #tpu.memory_space<any>>) dst(%26 : memref<16x128xbf16, #tpu.memory_space<vmem>>)
    %c1_i32_17 = arith.constant 1 : i32
    %c0_i32_18 = arith.constant 0 : i32
    %29 = tpu.memref_slice %arg2[%arg0, %7, %c0_i32_18] : memref<2x256x128xbf16, #tpu.memory_space<any>> -> memref<1x128x128xbf16, #tpu.memory_space<any>>
    %30 = tpu.memref_squeeze %29 : memref<1x128x128xbf16, #tpu.memory_space<any>> -> memref<128x128xbf16, #tpu.memory_space<any>>
    %c16_i32_19 = arith.constant 16 : i32
    %c0_i32_20 = arith.constant 0 : i32
    %31 = tpu.memref_slice %arg9[%c16_i32_19, %c0_i32_20] : memref<160x128xbf16, #tpu.memory_space<vmem>> -> memref<128x128xbf16, #tpu.memory_space<vmem>>
    %32 = tpu.memref_slice %arg10[%c1_i32_17] : memref<3x!tpu.dma_semaphore, #tpu.memory_space<semaphore_mem>> -> memref<1x!tpu.dma_semaphore, #tpu.memory_space<semaphore_mem>>
    %33 = tpu.memref_squeeze %32 : memref<1x!tpu.dma_semaphore, #tpu.memory_space<semaphore_mem>> -> memref<!tpu.dma_semaphore, #tpu.memory_space<semaphore_mem>>
    tpu.wait_dma2 semaphore(%33 : memref<!tpu.dma_semaphore, #tpu.memory_space<semaphore_mem>>) src(%30 : memref<128x128xbf16, #tpu.memory_space<any>>) dst(%31 : memref<128x128xbf16, #tpu.memory_space<vmem>>)
    %c2_i32_21 = arith.constant 2 : i32
    %c0_i32_22 = arith.constant 0 : i32
    %34 = tpu.memref_slice %arg2[%arg0, %8, %c0_i32_22] : memref<2x256x128xbf16, #tpu.memory_space<any>> -> memref<1x16x128xbf16, #tpu.memory_space<any>>
    %35 = tpu.memref_squeeze %34 : memref<1x16x128xbf16, #tpu.memory_space<any>> -> memref<16x128xbf16, #tpu.memory_space<any>>
    %c144_i32_23 = arith.constant 144 : i32
    %c0_i32_24 = arith.constant 0 : i32
    %36 = tpu.memref_slice %arg9[%c144_i32_23, %c0_i32_24] : memref<160x128xbf16, #tpu.memory_space<vmem>> -> memref<16x128xbf16, #tpu.memory_space<vmem>>
    %37 = tpu.memref_slice %arg10[%c2_i32_21] : memref<3x!tpu.dma_semaphore, #tpu.memory_space<semaphore_mem>> -> memref<1x!tpu.dma_semaphore, #tpu.memory_space<semaphore_mem>>
    %38 = tpu.memref_squeeze %37 : memref<1x!tpu.dma_semaphore, #tpu.memory_space<semaphore_mem>> -> memref<!tpu.dma_semaphore, #tpu.memory_space<semaphore_mem>>
    tpu.wait_dma2 semaphore(%38 : memref<!tpu.dma_semaphore, #tpu.memory_space<semaphore_mem>>) src(%35 : memref<16x128xbf16, #tpu.memory_space<any>>) dst(%36 : memref<16x128xbf16, #tpu.memory_space<vmem>>)
    %c0_i32_25 = arith.constant 0 : i32
    %39 = arith.cmpi eq, %arg1, %c0_i32_25 : i32
    %40 = arith.extui %39 : i1 to i32
    %c0_i32_26 = arith.constant 0 : i32
    %41 = arith.cmpi ne, %40, %c0_i32_26 : i32
    scf.if %41 {
      %cst_84 = arith.constant 0.000000e+00 : bf16
      %160 = vector.broadcast %cst_84 : bf16 to vector<16x128xbf16>
      %c0_85 = arith.constant 0 : index
      %c0_86 = arith.constant 0 : index
      %161 = vector.load %arg9[%c0_85, %c0_86] : memref<160x128xbf16, #tpu.memory_space<vmem>>, vector<16x128xbf16>
      tpu.vector_store %arg9[%c0_85, %c0_86], %160 {strides = array<i32>} : memref<160x128xbf16, #tpu.memory_space<vmem>>, vector<16x128xbf16>,
    } else {
    }
    %c1_i32_27 = arith.constant 1 : i32
    %42 = arith.cmpi eq, %arg1, %c1_i32_27 : i32
    %43 = arith.extui %42 : i1 to i32
    %c0_i32_28 = arith.constant 0 : i32
    %44 = arith.cmpi ne, %43, %c0_i32_28 : i32
    scf.if %44 {
      %cst_84 = arith.constant 0.000000e+00 : bf16
      %160 = vector.broadcast %cst_84 : bf16 to vector<16x128xbf16>
      %c144 = arith.constant 144 : index
      %c0_85 = arith.constant 0 : index
      %161 = vector.load %arg9[%c144, %c0_85] : memref<160x128xbf16, #tpu.memory_space<vmem>>, vector<16x128xbf16>
      tpu.vector_store %arg9[%c144, %c0_85], %160 {strides = array<i32>} : memref<160x128xbf16, #tpu.memory_space<vmem>>, vector<16x128xbf16>,
    } else {
    }
    %45 = tpu.iota {dimensions = array<i32: 0>} : vector<128x1xi32>
    %c16_i32_29 = arith.constant 16 : i32
    %c0_i32_30 = arith.constant 0 : i32
    %46 = arith.cmpi eq, %c16_i32_29, %c0_i32_30 : i32
    %c1_i32_31 = arith.constant 1 : i32
    %47 = arith.select %46, %c1_i32_31, %c16_i32_29 : i32
    %48 = vector.broadcast %47 : i32 to vector<128x1xi32>
    %49 = arith.remsi %45, %48 : vector<128x1xi32>
    %c0_i32_32 = arith.constant 0 : i32
    %50 = vector.broadcast %c0_i32_32 : i32 to vector<128x1xi32>
    %51 = arith.cmpi ne, %49, %50 : vector<128x1xi32>
    %c0_i32_33 = arith.constant 0 : i32
    %52 = vector.broadcast %c0_i32_33 : i32 to vector<128x1xi32>
    %53 = arith.cmpi slt, %49, %52 : vector<128x1xi32>
    %c0_i32_34 = arith.constant 0 : i32
    %54 = arith.cmpi slt, %47, %c0_i32_34 : i32
    %55 = vector.broadcast %54 : i1 to vector<128x1xi1>
    %56 = vector.broadcast %55 : vector<128x1xi1> to vector<128x1xi1>
    %57 = arith.xori %53, %56 : vector<128x1xi1>
    %58 = arith.andi %57, %51 : vector<128x1xi1>
    %59 = vector.broadcast %47 : i32 to vector<128x1xi32>
    %60 = arith.addi %49, %59 : vector<128x1xi32>
    %61 = arith.select %58, %60, %49 : vector<128x1xi1>, vector<128x1xi32>
    %c0_i32_35 = arith.constant 0 : i32
    %62 = vector.broadcast %c0_i32_35 : i32 to vector<128x1xi32>
    %63 = arith.cmpi ne, %61, %62 : vector<128x1xi32>
    %c15_i32_36 = arith.constant 15 : i32
    %64 = vector.broadcast %c15_i32_36 : i32 to vector<128x1xi32>
    %65 = arith.cmpi ne, %61, %64 : vector<128x1xi32>
    %cst = arith.constant 0.000000e+00 : f32
    %66 = vector.broadcast %cst : f32 to vector<128x128xf32>
    %c0 = arith.constant 0 : index
    %c0_37 = arith.constant 0 : index
    %67 = vector.load %arg9[%c0, %c0_37] : memref<160x128xbf16, #tpu.memory_space<vmem>>, vector<128x128xbf16>
    %cst_38 = arith.constant 0.000000e+00 : bf16
    %68 = vector.broadcast %cst_38 : bf16 to vector<128x128xbf16>
    %69 = vector.extract_strided_slice %67 {offsets = [127, 0], sizes = [1, 128], strides = [1, 1]} : vector<128x128xbf16> to vector<1x128xbf16>
    %70 = vector.extract_strided_slice %67 {offsets = [0, 0], sizes = [127, 128], strides = [1, 1]} : vector<128x128xbf16> to vector<127x128xbf16>
    %71 = tpu.concatenate %69, %70 in 0 : vector<1x128xbf16>, vector<127x128xbf16> -> vector<128x128xbf16>
    %72 = vector.shape_cast %63 : vector<128x1xi1> to vector<128x1xi1>
    %73 = vector.broadcast %72 : vector<128x1xi1> to vector<128x128xi1>
    %74 = arith.select %73, %71, %68 : vector<128x128xi1>, vector<128x128xbf16>
    %c0_39 = arith.constant 0 : index
    %c0_40 = arith.constant 0 : index
    %c0_41 = arith.constant 0 : index
    %75 = vector.load %arg5[%c0_39, %c0_40, %c0_41] : memref<9x128x128xbf16, #tpu.memory_space<vmem>>, vector<1x128x128xbf16>
    %76 = vector.shape_cast %75 : vector<1x128x128xbf16> to vector<128x128xbf16>
    %cst_42 = arith.constant dense<0.000000e+00> : vector<128x128xf32>
    %77 = tpu.matmul %74, %76, %cst_42 {dimension_numbers = #tpu.dot_dimension_numbers<[1], [0], [0], [1], [0, 0, 1, 1], [], []>} : vector<128x128xbf16>, vector<128x128xbf16>, vector<128x128xf32> -> vector<128x128xf32>
    %78 = arith.addf %66, %77 : vector<128x128xf32>
    %c1 = arith.constant 1 : index
    %c0_43 = arith.constant 0 : index
    %c0_44 = arith.constant 0 : index
    %79 = vector.load %arg5[%c1, %c0_43, %c0_44] : memref<9x128x128xbf16, #tpu.memory_space<vmem>>, vector<1x128x128xbf16>
    %80 = vector.shape_cast %79 : vector<1x128x128xbf16> to vector<128x128xbf16>
    %cst_45 = arith.constant dense<0.000000e+00> : vector<128x128xf32>
    %81 = tpu.matmul %67, %80, %cst_45 {dimension_numbers = #tpu.dot_dimension_numbers<[1], [0], [0], [1], [0, 0, 1, 1], [], []>} : vector<128x128xbf16>, vector<128x128xbf16>, vector<128x128xf32> -> vector<128x128xf32>
    %82 = arith.addf %78, %81 : vector<128x128xf32>
    %83 = vector.extract_strided_slice %67 {offsets = [1, 0], sizes = [127, 128], strides = [1, 1]} : vector<128x128xbf16> to vector<127x128xbf16>
    %84 = vector.extract_strided_slice %67 {offsets = [0, 0], sizes = [1, 128], strides = [1, 1]} : vector<128x128xbf16> to vector<1x128xbf16>
    %85 = tpu.concatenate %83, %84 in 0 : vector<127x128xbf16>, vector<1x128xbf16> -> vector<128x128xbf16>
    %86 = vector.shape_cast %65 : vector<128x1xi1> to vector<128x1xi1>
    %87 = vector.broadcast %86 : vector<128x1xi1> to vector<128x128xi1>
    %88 = arith.select %87, %85, %68 : vector<128x128xi1>, vector<128x128xbf16>
    %c2 = arith.constant 2 : index
    %c0_46 = arith.constant 0 : index
    %c0_47 = arith.constant 0 : index
    %89 = vector.load %arg5[%c2, %c0_46, %c0_47] : memref<9x128x128xbf16, #tpu.memory_space<vmem>>, vector<1x128x128xbf16>
    %90 = vector.shape_cast %89 : vector<1x128x128xbf16> to vector<128x128xbf16>
    %cst_48 = arith.constant dense<0.000000e+00> : vector<128x128xf32>
    %91 = tpu.matmul %88, %90, %cst_48 {dimension_numbers = #tpu.dot_dimension_numbers<[1], [0], [0], [1], [0, 0, 1, 1], [], []>} : vector<128x128xbf16>, vector<128x128xbf16>, vector<128x128xf32> -> vector<128x128xf32>
    %92 = arith.addf %82, %91 : vector<128x128xf32>
    %c16 = arith.constant 16 : index
    %c0_49 = arith.constant 0 : index
    %93 = vector.load %arg9[%c16, %c0_49] : memref<160x128xbf16, #tpu.memory_space<vmem>>, vector<128x128xbf16>
    %cst_50 = arith.constant 0.000000e+00 : bf16
    %94 = vector.broadcast %cst_50 : bf16 to vector<128x128xbf16>
    %95 = vector.extract_strided_slice %93 {offsets = [127, 0], sizes = [1, 128], strides = [1, 1]} : vector<128x128xbf16> to vector<1x128xbf16>
    %96 = vector.extract_strided_slice %93 {offsets = [0, 0], sizes = [127, 128], strides = [1, 1]} : vector<128x128xbf16> to vector<127x128xbf16>
    %97 = tpu.concatenate %95, %96 in 0 : vector<1x128xbf16>, vector<127x128xbf16> -> vector<128x128xbf16>
    %98 = vector.shape_cast %63 : vector<128x1xi1> to vector<128x1xi1>
    %99 = vector.broadcast %98 : vector<128x1xi1> to vector<128x128xi1>
    %100 = arith.select %99, %97, %94 : vector<128x128xi1>, vector<128x128xbf16>
    %c3 = arith.constant 3 : index
    %c0_51 = arith.constant 0 : index
    %c0_52 = arith.constant 0 : index
    %101 = vector.load %arg5[%c3, %c0_51, %c0_52] : memref<9x128x128xbf16, #tpu.memory_space<vmem>>, vector<1x128x128xbf16>
    %102 = vector.shape_cast %101 : vector<1x128x128xbf16> to vector<128x128xbf16>
    %cst_53 = arith.constant dense<0.000000e+00> : vector<128x128xf32>
    %103 = tpu.matmul %100, %102, %cst_53 {dimension_numbers = #tpu.dot_dimension_numbers<[1], [0], [0], [1], [0, 0, 1, 1], [], []>} : vector<128x128xbf16>, vector<128x128xbf16>, vector<128x128xf32> -> vector<128x128xf32>
    %104 = arith.addf %92, %103 : vector<128x128xf32>
    %c4 = arith.constant 4 : index
    %c0_54 = arith.constant 0 : index
    %c0_55 = arith.constant 0 : index
    %105 = vector.load %arg5[%c4, %c0_54, %c0_55] : memref<9x128x128xbf16, #tpu.memory_space<vmem>>, vector<1x128x128xbf16>
    %106 = vector.shape_cast %105 : vector<1x128x128xbf16> to vector<128x128xbf16>
    %cst_56 = arith.constant dense<0.000000e+00> : vector<128x128xf32>
    %107 = tpu.matmul %93, %106, %cst_56 {dimension_numbers = #tpu.dot_dimension_numbers<[1], [0], [0], [1], [0, 0, 1, 1], [], []>} : vector<128x128xbf16>, vector<128x128xbf16>, vector<128x128xf32> -> vector<128x128xf32>
    %108 = arith.addf %104, %107 : vector<128x128xf32>
    %109 = vector.extract_strided_slice %93 {offsets = [1, 0], sizes = [127, 128], strides = [1, 1]} : vector<128x128xbf16> to vector<127x128xbf16>
    %110 = vector.extract_strided_slice %93 {offsets = [0, 0], sizes = [1, 128], strides = [1, 1]} : vector<128x128xbf16> to vector<1x128xbf16>
    %111 = tpu.concatenate %109, %110 in 0 : vector<127x128xbf16>, vector<1x128xbf16> -> vector<128x128xbf16>
    %112 = vector.shape_cast %65 : vector<128x1xi1> to vector<128x1xi1>
    %113 = vector.broadcast %112 : vector<128x1xi1> to vector<128x128xi1>
    %114 = arith.select %113, %111, %94 : vector<128x128xi1>, vector<128x128xbf16>
    %c5 = arith.constant 5 : index
    %c0_57 = arith.constant 0 : index
    %c0_58 = arith.constant 0 : index
    %115 = vector.load %arg5[%c5, %c0_57, %c0_58] : memref<9x128x128xbf16, #tpu.memory_space<vmem>>, vector<1x128x128xbf16>
    %116 = vector.shape_cast %115 : vector<1x128x128xbf16> to vector<128x128xbf16>
    %cst_59 = arith.constant dense<0.000000e+00> : vector<128x128xf32>
    %117 = tpu.matmul %114, %116, %cst_59 {dimension_numbers = #tpu.dot_dimension_numbers<[1], [0], [0], [1], [0, 0, 1, 1], [], []>} : vector<128x128xbf16>, vector<128x128xbf16>, vector<128x128xf32> -> vector<128x128xf32>
    %118 = arith.addf %108, %117 : vector<128x128xf32>
    %c32 = arith.constant 32 : index
    %c0_60 = arith.constant 0 : index
    %119 = vector.load %arg9[%c32, %c0_60] : memref<160x128xbf16, #tpu.memory_space<vmem>>, vector<128x128xbf16>
    %cst_61 = arith.constant 0.000000e+00 : bf16
    %120 = vector.broadcast %cst_61 : bf16 to vector<128x128xbf16>
    %121 = vector.extract_strided_slice %119 {offsets = [127, 0], sizes = [1, 128], strides = [1, 1]} : vector<128x128xbf16> to vector<1x128xbf16>
    %122 = vector.extract_strided_slice %119 {offsets = [0, 0], sizes = [127, 128], strides = [1, 1]} : vector<128x128xbf16> to vector<127x128xbf16>
    %123 = tpu.concatenate %121, %122 in 0 : vector<1x128xbf16>, vector<127x128xbf16> -> vector<128x128xbf16>
    %124 = vector.shape_cast %63 : vector<128x1xi1> to vector<128x1xi1>
    %125 = vector.broadcast %124 : vector<128x1xi1> to vector<128x128xi1>
    %126 = arith.select %125, %123, %120 : vector<128x128xi1>, vector<128x128xbf16>
    %c6 = arith.constant 6 : index
    %c0_62 = arith.constant 0 : index
    %c0_63 = arith.constant 0 : index
    %127 = vector.load %arg5[%c6, %c0_62, %c0_63] : memref<9x128x128xbf16, #tpu.memory_space<vmem>>, vector<1x128x128xbf16>
    %128 = vector.shape_cast %127 : vector<1x128x128xbf16> to vector<128x128xbf16>
    %cst_64 = arith.constant dense<0.000000e+00> : vector<128x128xf32>
    %129 = tpu.matmul %126, %128, %cst_64 {dimension_numbers = #tpu.dot_dimension_numbers<[1], [0], [0], [1], [0, 0, 1, 1], [], []>} : vector<128x128xbf16>, vector<128x128xbf16>, vector<128x128xf32> -> vector<128x128xf32>
    %130 = arith.addf %118, %129 : vector<128x128xf32>
    %c7 = arith.constant 7 : index
    %c0_65 = arith.constant 0 : index
    %c0_66 = arith.constant 0 : index
    %131 = vector.load %arg5[%c7, %c0_65, %c0_66] : memref<9x128x128xbf16, #tpu.memory_space<vmem>>, vector<1x128x128xbf16>
    %132 = vector.shape_cast %131 : vector<1x128x128xbf16> to vector<128x128xbf16>
    %cst_67 = arith.constant dense<0.000000e+00> : vector<128x128xf32>
    %133 = tpu.matmul %119, %132, %cst_67 {dimension_numbers = #tpu.dot_dimension_numbers<[1], [0], [0], [1], [0, 0, 1, 1], [], []>} : vector<128x128xbf16>, vector<128x128xbf16>, vector<128x128xf32> -> vector<128x128xf32>
    %134 = arith.addf %130, %133 : vector<128x128xf32>
    %135 = vector.extract_strided_slice %119 {offsets = [1, 0], sizes = [127, 128], strides = [1, 1]} : vector<128x128xbf16> to vector<127x128xbf16>
    %136 = vector.extract_strided_slice %119 {offsets = [0, 0], sizes = [1, 128], strides = [1, 1]} : vector<128x128xbf16> to vector<1x128xbf16>
    %137 = tpu.concatenate %135, %136 in 0 : vector<127x128xbf16>, vector<1x128xbf16> -> vector<128x128xbf16>
    %138 = vector.shape_cast %65 : vector<128x1xi1> to vector<128x1xi1>
    %139 = vector.broadcast %138 : vector<128x1xi1> to vector<128x128xi1>
    %140 = arith.select %139, %137, %120 : vector<128x128xi1>, vector<128x128xbf16>
    %c8 = arith.constant 8 : index
    %c0_68 = arith.constant 0 : index
    %c0_69 = arith.constant 0 : index
    %141 = vector.load %arg5[%c8, %c0_68, %c0_69] : memref<9x128x128xbf16, #tpu.memory_space<vmem>>, vector<1x128x128xbf16>
    %142 = vector.shape_cast %141 : vector<1x128x128xbf16> to vector<128x128xbf16>
    %cst_70 = arith.constant dense<0.000000e+00> : vector<128x128xf32>
    %143 = tpu.matmul %140, %142, %cst_70 {dimension_numbers = #tpu.dot_dimension_numbers<[1], [0], [0], [1], [0, 0, 1, 1], [], []>} : vector<128x128xbf16>, vector<128x128xbf16>, vector<128x128xf32> -> vector<128x128xf32>
    %144 = arith.addf %134, %143 : vector<128x128xf32>
    %cst_71 = arith.constant dense<0.000000e+00> : vector<128xf32>
    %145 = vector.multi_reduction <add>, %144, %cst_71 [0] : vector<128x128xf32> to vector<128xf32>
    %146 = vector.shape_cast %145 : vector<128xf32> to vector<1x128xf32>
    %c0_72 = arith.constant 0 : index
    %c0_73 = arith.constant 0 : index
    %c0_74 = arith.constant 0 : index
    %c0_75 = arith.constant 0 : index
    %147 = vector.load %arg7[%c0_72, %c0_73, %c0_74, %c0_75] : memref<1x1x1x128xf32, #tpu.memory_space<vmem>>, vector<1x1x1x128xf32>
    %148 = vector.shape_cast %147 : vector<1x1x1x128xf32> to vector<1x128xf32>
    %149 = vector.shape_cast %146 : vector<1x128xf32> to vector<1x1x1x128xf32>
    tpu.vector_store %arg7[%c0_72, %c0_73, %c0_74, %c0_75], %149 {strides = array<i32>} : memref<1x1x1x128xf32, #tpu.memory_space<vmem>>, vector<1x1x1x128xf32>,
    %150 = arith.mulf %144, %144 : vector<128x128xf32>
    %cst_76 = arith.constant dense<0.000000e+00> : vector<128xf32>
    %151 = vector.multi_reduction <add>, %150, %cst_76 [0] : vector<128x128xf32> to vector<128xf32>
    %152 = vector.shape_cast %151 : vector<128xf32> to vector<1x128xf32>
    %c0_77 = arith.constant 0 : index
    %c0_78 = arith.constant 0 : index
    %c0_79 = arith.constant 0 : index
    %c0_80 = arith.constant 0 : index
    %153 = vector.load %arg8[%c0_77, %c0_78, %c0_79, %c0_80] : memref<1x1x1x128xf32, #tpu.memory_space<vmem>>, vector<1x1x1x128xf32>
    %154 = vector.shape_cast %153 : vector<1x1x1x128xf32> to vector<1x128xf32>
    %155 = vector.shape_cast %152 : vector<1x128xf32> to vector<1x1x1x128xf32>
    tpu.vector_store %arg8[%c0_77, %c0_78, %c0_79, %c0_80], %155 {strides = array<i32>} : memref<1x1x1x128xf32, #tpu.memory_space<vmem>>, vector<1x1x1x128xf32>,
    %156 = arith.truncf %144 : vector<128x128xf32> to vector<128x128xbf16>
    %c0_81 = arith.constant 0 : index
    %c0_82 = arith.constant 0 : index
    %c0_83 = arith.constant 0 : index
    %157 = vector.load %arg6[%c0_81, %c0_82, %c0_83] : memref<1x128x128xbf16, #tpu.memory_space<vmem>>, vector<1x128x128xbf16>
    %158 = vector.shape_cast %157 : vector<1x128x128xbf16> to vector<128x128xbf16>
    %159 = vector.shape_cast %156 : vector<128x128xbf16> to vector<1x128x128xbf16>
    tpu.vector_store %arg6[%c0_81, %c0_82, %c0_83], %159 {strides = array<i32>} : memref<1x128x128xbf16, #tpu.memory_space<vmem>>, vector<1x128x128xbf16>,
    return
  }
  func.func @transform_1(%arg0: i32, %arg1: i32) -> (i32, i32) {
    %c0_i32 = arith.constant 0 : i32
    %c0_i32_0 = arith.constant 0 : i32
    %c0_i32_1 = arith.constant 0 : i32
    return %c0_i32, %c0_i32_0 : i32, i32
  }
  func.func @transform_2(%arg0: i32, %arg1: i32) -> (i32, i32) {
    %c0_i32 = arith.constant 0 : i32
    %c0_i32_0 = arith.constant 0 : i32
    %c0_i32_1 = arith.constant 0 : i32
    return %c0_i32, %c0_i32_0 : i32, i32
  }
  func.func @transform_3(%arg0: i32, %arg1: i32) -> (i32, i32, i32) {
    %c0_i32 = arith.constant 0 : i32
    %c0_i32_0 = arith.constant 0 : i32
    %c0_i32_1 = arith.constant 0 : i32
    %c0_i32_2 = arith.constant 0 : i32
    return %c0_i32, %c0_i32_0, %c0_i32_1 : i32, i32, i32
  }
  func.func @transform_4(%arg0: i32, %arg1: i32) -> (i32, i32, i32) {
    %c0_i32 = arith.constant 0 : i32
    %c0_i32_0 = arith.constant 0 : i32
    return %arg0, %arg1, %c0_i32 : i32, i32, i32
  }
  func.func @transform_5(%arg0: i32, %arg1: i32) -> (i32, i32, i32, i32) {
    %c0_i32 = arith.constant 0 : i32
    %c0_i32_0 = arith.constant 0 : i32
    %c0_i32_1 = arith.constant 0 : i32
    return %arg0, %arg1, %c0_i32, %c0_i32_0 : i32, i32, i32, i32
  }
  func.func @transform_6(%arg0: i32, %arg1: i32) -> (i32, i32, i32, i32) {
    %c0_i32 = arith.constant 0 : i32
    %c0_i32_0 = arith.constant 0 : i32
    %c0_i32_1 = arith.constant 0 : i32
    return %arg0, %arg1, %c0_i32, %c0_i32_0 : i32, i32, i32, i32
  }
}

module attributes {stable_mosaic.version = 11 : i64} {
  func.func @_bn_lrelu_kernel(%arg0: i32, %arg1: i32, %arg2: memref<1x256x128xbf16, #tpu.memory_space<vmem>>, %arg3: memref<1x128xf32, #tpu.memory_space<vmem>>, %arg4: memref<1x128xf32, #tpu.memory_space<vmem>>, %arg5: memref<1x256x4xf32, #tpu.memory_space<vmem>>) attributes {dimension_semantics = [#tpu.dimension_semantics<parallel>, #tpu.dimension_semantics<parallel>], iteration_bounds = array<i64: 2, 1>, scalar_prefetch = 0 : i64, scratch_operands = 0 : i64, tpu.core_type = #tpu.core_type<tc>, window_params = [{transform_indices = @transform_0, window_bounds = array<i64: 1, 256, 128>}, {pipeline_mode = #tpu.pipeline_mode<synchronous>, transform_indices = @transform_1, window_bounds = array<i64: 1, 128>}, {pipeline_mode = #tpu.pipeline_mode<synchronous>, transform_indices = @transform_2, window_bounds = array<i64: 1, 128>}, {transform_indices = @transform_3, window_bounds = array<i64: 1, 256, 4>}]} {
    %c0 = arith.constant 0 : index
    %c0_0 = arith.constant 0 : index
    %c0_1 = arith.constant 0 : index
    %0 = vector.load %arg2[%c0, %c0_0, %c0_1] : memref<1x256x128xbf16, #tpu.memory_space<vmem>>, vector<1x256x128xbf16>
    %1 = vector.shape_cast %0 : vector<1x256x128xbf16> to vector<256x128xbf16>
    %2 = arith.extf %1 : vector<256x128xbf16> to vector<256x128xf32>
    %c0_2 = arith.constant 0 : index
    %c0_3 = arith.constant 0 : index
    %3 = vector.load %arg3[%c0_2, %c0_3] : memref<1x128xf32, #tpu.memory_space<vmem>>, vector<1x128xf32>
    %4 = vector.broadcast %3 : vector<1x128xf32> to vector<256x128xf32>
    %5 = arith.mulf %2, %4 : vector<256x128xf32>
    %c0_4 = arith.constant 0 : index
    %c0_5 = arith.constant 0 : index
    %6 = vector.load %arg4[%c0_4, %c0_5] : memref<1x128xf32, #tpu.memory_space<vmem>>, vector<1x128xf32>
    %7 = vector.broadcast %6 : vector<1x128xf32> to vector<256x128xf32>
    %8 = arith.addf %5, %7 : vector<256x128xf32>
    %cst = arith.constant 0.000000e+00 : f32
    %9 = vector.broadcast %cst : f32 to vector<256x128xf32>
    %10 = arith.cmpf ogt, %8, %9 : vector<256x128xf32>
    %cst_6 = arith.constant 0.00999999977 : f32
    %11 = vector.broadcast %cst_6 : f32 to vector<256x128xf32>
    %12 = arith.mulf %11, %8 : vector<256x128xf32>
    %13 = arith.select %10, %8, %12 : vector<256x128xi1>, vector<256x128xf32>
    %14 = vector.extract_strided_slice %13 {offsets = [0, 0], sizes = [256, 4], strides = [1, 1]} : vector<256x128xf32> to vector<256x4xf32>
    %c0_7 = arith.constant 0 : index
    %c0_8 = arith.constant 0 : index
    %c0_9 = arith.constant 0 : index
    %15 = vector.load %arg5[%c0_7, %c0_8, %c0_9] : memref<1x256x4xf32, #tpu.memory_space<vmem>>, vector<1x256x4xf32>
    %16 = vector.shape_cast %15 : vector<1x256x4xf32> to vector<256x4xf32>
    %17 = vector.shape_cast %14 : vector<256x4xf32> to vector<1x256x4xf32>
    tpu.vector_store %arg5[%c0_7, %c0_8, %c0_9], %17 {strides = array<i32>} : memref<1x256x4xf32, #tpu.memory_space<vmem>>, vector<1x256x4xf32>,
    return
  }
  func.func @transform_0(%arg0: i32, %arg1: i32) -> (i32, i32, i32) {
    %c0_i32 = arith.constant 0 : i32
    %c0_i32_0 = arith.constant 0 : i32
    return %arg0, %arg1, %c0_i32 : i32, i32, i32
  }
  func.func @transform_1(%arg0: i32, %arg1: i32) -> (i32, i32) {
    %c0_i32 = arith.constant 0 : i32
    %c0_i32_0 = arith.constant 0 : i32
    %c0_i32_1 = arith.constant 0 : i32
    return %c0_i32, %c0_i32_0 : i32, i32
  }
  func.func @transform_2(%arg0: i32, %arg1: i32) -> (i32, i32) {
    %c0_i32 = arith.constant 0 : i32
    %c0_i32_0 = arith.constant 0 : i32
    %c0_i32_1 = arith.constant 0 : i32
    return %c0_i32, %c0_i32_0 : i32, i32
  }
  func.func @transform_3(%arg0: i32, %arg1: i32) -> (i32, i32, i32) {
    %c0_i32 = arith.constant 0 : i32
    %c0_i32_0 = arith.constant 0 : i32
    return %arg0, %arg1, %c0_i32 : i32, i32, i32
  }
}

module attributes {stable_mosaic.version = 11 : i64} {
  func.func @_conv3x3_bn_stats_kernel(%arg0: i32, %arg1: i32, %arg2: memref<2x256x128xbf16, #tpu.memory_space<any>>, %arg3: memref<1x128xf32, #tpu.memory_space<vmem>>, %arg4: memref<1x128xf32, #tpu.memory_space<vmem>>, %arg5: memref<9x128x128xbf16, #tpu.memory_space<vmem>>, %arg6: memref<1x128x128xbf16, #tpu.memory_space<vmem>>, %arg7: memref<1x1x1x128xf32, #tpu.memory_space<vmem>>, %arg8: memref<1x1x1x128xf32, #tpu.memory_space<vmem>>, %arg9: memref<160x128xbf16, #tpu.memory_space<vmem>>, %arg10: memref<3x!tpu.dma_semaphore, #tpu.memory_space<semaphore_mem>>) attributes {dimension_semantics = [#tpu.dimension_semantics<parallel>, #tpu.dimension_semantics<parallel>], iteration_bounds = array<i64: 2, 2>, scalar_prefetch = 0 : i64, scratch_operands = 2 : i64, tpu.core_type = #tpu.core_type<tc>, window_params = [{}, {pipeline_mode = #tpu.pipeline_mode<synchronous>, transform_indices = @transform_1, window_bounds = array<i64: 1, 128>}, {pipeline_mode = #tpu.pipeline_mode<synchronous>, transform_indices = @transform_2, window_bounds = array<i64: 1, 128>}, {pipeline_mode = #tpu.pipeline_mode<synchronous>, transform_indices = @transform_3, window_bounds = array<i64: 9, 128, 128>}, {transform_indices = @transform_4, window_bounds = array<i64: 1, 128, 128>}, {transform_indices = @transform_5, window_bounds = array<i64: 1, 1, 1, 128>}, {transform_indices = @transform_6, window_bounds = array<i64: 1, 1, 1, 128>}]} {
    %c8_i32 = arith.constant 8 : i32
    %0 = arith.muli %arg1, %c8_i32 : i32
    %c1_i32 = arith.constant 1 : i32
    %1 = arith.subi %0, %c1_i32 : i32
    %c0_i32 = arith.constant 0 : i32
    %2 = arith.maxsi %1, %c0_i32 : i32
    %c8_i32_0 = arith.constant 8 : i32
    %3 = arith.muli %arg1, %c8_i32_0 : i32
    %c8_i32_1 = arith.constant 8 : i32
    %4 = arith.addi %3, %c8_i32_1 : i32
    %c15_i32 = arith.constant 15 : i32
    %5 = arith.minsi %4, %c15_i32 : i32
    %c16_i32 = arith.constant 16 : i32
    %6 = arith.muli %2, %c16_i32 : i32
    %c128_i32 = arith.constant 128 : i32
    %7 = arith.muli %arg1, %c128_i32 : i32
    %c16_i32_2 = arith.constant 16 : i32
    %8 = arith.muli %5, %c16_i32_2 : i32
    %c0_i32_3 = arith.constant 0 : i32
    %c0_i32_4 = arith.constant 0 : i32
    %9 = tpu.memref_slice %arg2[%arg0, %6, %c0_i32_4] : memref<2x256x128xbf16, #tpu.memory_space<any>> -> memref<1x16x128xbf16, #tpu.memory_space<any>>
    %10 = tpu.memref_squeeze %9 : memref<1x16x128xbf16, #tpu.memory_space<any>> -> memref<16x128xbf16, #tpu.memory_space<any>>
    %c0_i32_5 = arith.constant 0 : i32
    %c0_i32_6 = arith.constant 0 : i32
    %11 = tpu.memref_slice %arg9[%c0_i32_5, %c0_i32_6] : memref<160x128xbf16, #tpu.memory_space<vmem>> -> memref<16x128xbf16, #tpu.memory_space<vmem>>
    %12 = tpu.memref_slice %arg10[%c0_i32_3] : memref<3x!tpu.dma_semaphore, #tpu.memory_space<semaphore_mem>> -> memref<1x!tpu.dma_semaphore, #tpu.memory_space<semaphore_mem>>
    %13 = tpu.memref_squeeze %12 : memref<1x!tpu.dma_semaphore, #tpu.memory_space<semaphore_mem>> -> memref<!tpu.dma_semaphore, #tpu.memory_space<semaphore_mem>>
    tpu.enqueue_dma source(%10 : memref<16x128xbf16, #tpu.memory_space<any>>) target(%11 : memref<16x128xbf16, #tpu.memory_space<vmem>>) target_semaphore(%13 : memref<!tpu.dma_semaphore, #tpu.memory_space<semaphore_mem>>)
    %c1_i32_7 = arith.constant 1 : i32
    %c0_i32_8 = arith.constant 0 : i32
    %14 = tpu.memref_slice %arg2[%arg0, %7, %c0_i32_8] : memref<2x256x128xbf16, #tpu.memory_space<any>> -> memref<1x128x128xbf16, #tpu.memory_space<any>>
    %15 = tpu.memref_squeeze %14 : memref<1x128x128xbf16, #tpu.memory_space<any>> -> memref<128x128xbf16, #tpu.memory_space<any>>
    %c16_i32_9 = arith.constant 16 : i32
    %c0_i32_10 = arith.constant 0 : i32
    %16 = tpu.memref_slice %arg9[%c16_i32_9, %c0_i32_10] : memref<160x128xbf16, #tpu.memory_space<vmem>> -> memref<128x128xbf16, #tpu.memory_space<vmem>>
    %17 = tpu.memref_slice %arg10[%c1_i32_7] : memref<3x!tpu.dma_semaphore, #tpu.memory_space<semaphore_mem>> -> memref<1x!tpu.dma_semaphore, #tpu.memory_space<semaphore_mem>>
    %18 = tpu.memref_squeeze %17 : memref<1x!tpu.dma_semaphore, #tpu.memory_space<semaphore_mem>> -> memref<!tpu.dma_semaphore, #tpu.memory_space<semaphore_mem>>
    tpu.enqueue_dma source(%15 : memref<128x128xbf16, #tpu.memory_space<any>>) target(%16 : memref<128x128xbf16, #tpu.memory_space<vmem>>) target_semaphore(%18 : memref<!tpu.dma_semaphore, #tpu.memory_space<semaphore_mem>>)
    %c2_i32 = arith.constant 2 : i32
    %c0_i32_11 = arith.constant 0 : i32
    %19 = tpu.memref_slice %arg2[%arg0, %8, %c0_i32_11] : memref<2x256x128xbf16, #tpu.memory_space<any>> -> memref<1x16x128xbf16, #tpu.memory_space<any>>
    %20 = tpu.memref_squeeze %19 : memref<1x16x128xbf16, #tpu.memory_space<any>> -> memref<16x128xbf16, #tpu.memory_space<any>>
    %c144_i32 = arith.constant 144 : i32
    %c0_i32_12 = arith.constant 0 : i32
    %21 = tpu.memref_slice %arg9[%c144_i32, %c0_i32_12] : memref<160x128xbf16, #tpu.memory_space<vmem>> -> memref<16x128xbf16, #tpu.memory_space<vmem>>
    %22 = tpu.memref_slice %arg10[%c2_i32] : memref<3x!tpu.dma_semaphore, #tpu.memory_space<semaphore_mem>> -> memref<1x!tpu.dma_semaphore, #tpu.memory_space<semaphore_mem>>
    %23 = tpu.memref_squeeze %22 : memref<1x!tpu.dma_semaphore, #tpu.memory_space<semaphore_mem>> -> memref<!tpu.dma_semaphore, #tpu.memory_space<semaphore_mem>>
    tpu.enqueue_dma source(%20 : memref<16x128xbf16, #tpu.memory_space<any>>) target(%21 : memref<16x128xbf16, #tpu.memory_space<vmem>>) target_semaphore(%23 : memref<!tpu.dma_semaphore, #tpu.memory_space<semaphore_mem>>)
    %c0_i32_13 = arith.constant 0 : i32
    %c0_i32_14 = arith.constant 0 : i32
    %24 = tpu.memref_slice %arg2[%arg0, %6, %c0_i32_14] : memref<2x256x128xbf16, #tpu.memory_space<any>> -> memref<1x16x128xbf16, #tpu.memory_space<any>>
    %25 = tpu.memref_squeeze %24 : memref<1x16x128xbf16, #tpu.memory_space<any>> -> memref<16x128xbf16, #tpu.memory_space<any>>
    %c0_i32_15 = arith.constant 0 : i32
    %c0_i32_16 = arith.constant 0 : i32
    %26 = tpu.memref_slice %arg9[%c0_i32_15, %c0_i32_16] : memref<160x128xbf16, #tpu.memory_space<vmem>> -> memref<16x128xbf16, #tpu.memory_space<vmem>>
    %27 = tpu.memref_slice %arg10[%c0_i32_13] : memref<3x!tpu.dma_semaphore, #tpu.memory_space<semaphore_mem>> -> memref<1x!tpu.dma_semaphore, #tpu.memory_space<semaphore_mem>>
    %28 = tpu.memref_squeeze %27 : memref<1x!tpu.dma_semaphore, #tpu.memory_space<semaphore_mem>> -> memref<!tpu.dma_semaphore, #tpu.memory_space<semaphore_mem>>
    tpu.wait_dma2 semaphore(%28 : memref<!tpu.dma_semaphore, #tpu.memory_space<semaphore_mem>>) src(%25 : memref<16x128xbf16, #tpu.memory_space<any>>) dst(%26 : memref<16x128xbf16, #tpu.memory_space<vmem>>)
    %c1_i32_17 = arith.constant 1 : i32
    %c0_i32_18 = arith.constant 0 : i32
    %29 = tpu.memref_slice %arg2[%arg0, %7, %c0_i32_18] : memref<2x256x128xbf16, #tpu.memory_space<any>> -> memref<1x128x128xbf16, #tpu.memory_space<any>>
    %30 = tpu.memref_squeeze %29 : memref<1x128x128xbf16, #tpu.memory_space<any>> -> memref<128x128xbf16, #tpu.memory_space<any>>
    %c16_i32_19 = arith.constant 16 : i32
    %c0_i32_20 = arith.constant 0 : i32
    %31 = tpu.memref_slice %arg9[%c16_i32_19, %c0_i32_20] : memref<160x128xbf16, #tpu.memory_space<vmem>> -> memref<128x128xbf16, #tpu.memory_space<vmem>>
    %32 = tpu.memref_slice %arg10[%c1_i32_17] : memref<3x!tpu.dma_semaphore, #tpu.memory_space<semaphore_mem>> -> memref<1x!tpu.dma_semaphore, #tpu.memory_space<semaphore_mem>>
    %33 = tpu.memref_squeeze %32 : memref<1x!tpu.dma_semaphore, #tpu.memory_space<semaphore_mem>> -> memref<!tpu.dma_semaphore, #tpu.memory_space<semaphore_mem>>
    tpu.wait_dma2 semaphore(%33 : memref<!tpu.dma_semaphore, #tpu.memory_space<semaphore_mem>>) src(%30 : memref<128x128xbf16, #tpu.memory_space<any>>) dst(%31 : memref<128x128xbf16, #tpu.memory_space<vmem>>)
    %c2_i32_21 = arith.constant 2 : i32
    %c0_i32_22 = arith.constant 0 : i32
    %34 = tpu.memref_slice %arg2[%arg0, %8, %c0_i32_22] : memref<2x256x128xbf16, #tpu.memory_space<any>> -> memref<1x16x128xbf16, #tpu.memory_space<any>>
    %35 = tpu.memref_squeeze %34 : memref<1x16x128xbf16, #tpu.memory_space<any>> -> memref<16x128xbf16, #tpu.memory_space<any>>
    %c144_i32_23 = arith.constant 144 : i32
    %c0_i32_24 = arith.constant 0 : i32
    %36 = tpu.memref_slice %arg9[%c144_i32_23, %c0_i32_24] : memref<160x128xbf16, #tpu.memory_space<vmem>> -> memref<16x128xbf16, #tpu.memory_space<vmem>>
    %37 = tpu.memref_slice %arg10[%c2_i32_21] : memref<3x!tpu.dma_semaphore, #tpu.memory_space<semaphore_mem>> -> memref<1x!tpu.dma_semaphore, #tpu.memory_space<semaphore_mem>>
    %38 = tpu.memref_squeeze %37 : memref<1x!tpu.dma_semaphore, #tpu.memory_space<semaphore_mem>> -> memref<!tpu.dma_semaphore, #tpu.memory_space<semaphore_mem>>
    tpu.wait_dma2 semaphore(%38 : memref<!tpu.dma_semaphore, #tpu.memory_space<semaphore_mem>>) src(%35 : memref<16x128xbf16, #tpu.memory_space<any>>) dst(%36 : memref<16x128xbf16, #tpu.memory_space<vmem>>)
    %c0 = arith.constant 0 : index
    %c0_25 = arith.constant 0 : index
    %39 = vector.load %arg9[%c0, %c0_25] : memref<160x128xbf16, #tpu.memory_space<vmem>>, vector<160x128xbf16>
    %40 = arith.extf %39 : vector<160x128xbf16> to vector<160x128xf32>
    %c0_26 = arith.constant 0 : index
    %c0_27 = arith.constant 0 : index
    %41 = vector.load %arg3[%c0_26, %c0_27] : memref<1x128xf32, #tpu.memory_space<vmem>>, vector<1x128xf32>
    %42 = vector.broadcast %41 : vector<1x128xf32> to vector<160x128xf32>
    %43 = arith.mulf %40, %42 : vector<160x128xf32>
    %c0_28 = arith.constant 0 : index
    %c0_29 = arith.constant 0 : index
    %44 = vector.load %arg4[%c0_28, %c0_29] : memref<1x128xf32, #tpu.memory_space<vmem>>, vector<1x128xf32>
    %45 = vector.broadcast %44 : vector<1x128xf32> to vector<160x128xf32>
    %46 = arith.addf %43, %45 : vector<160x128xf32>
    %cst = arith.constant 0.000000e+00 : f32
    %47 = vector.broadcast %cst : f32 to vector<160x128xf32>
    %48 = arith.cmpf ogt, %46, %47 : vector<160x128xf32>
    %cst_30 = arith.constant 0.00999999977 : f32
    %49 = vector.broadcast %cst_30 : f32 to vector<160x128xf32>
    %50 = arith.mulf %49, %46 : vector<160x128xf32>
    %51 = arith.select %48, %46, %50 : vector<160x128xi1>, vector<160x128xf32>
    %52 = arith.truncf %51 : vector<160x128xf32> to vector<160x128xbf16>
    %c0_31 = arith.constant 0 : index
    %c0_32 = arith.constant 0 : index
    %53 = vector.load %arg9[%c0_31, %c0_32] : memref<160x128xbf16, #tpu.memory_space<vmem>>, vector<160x128xbf16>
    tpu.vector_store %arg9[%c0_31, %c0_32], %52 {strides = array<i32>} : memref<160x128xbf16, #tpu.memory_space<vmem>>, vector<160x128xbf16>,
    %c0_i32_33 = arith.constant 0 : i32
    %54 = arith.cmpi eq, %arg1, %c0_i32_33 : i32
    %55 = arith.extui %54 : i1 to i32
    %c0_i32_34 = arith.constant 0 : i32
    %56 = arith.cmpi ne, %55, %c0_i32_34 : i32
    scf.if %56 {
      %cst_94 = arith.constant 0.000000e+00 : bf16
      %175 = vector.broadcast %cst_94 : bf16 to vector<16x128xbf16>
      %c0_95 = arith.constant 0 : index
      %c0_96 = arith.constant 0 : index
      %176 = vector.load %arg9[%c0_95, %c0_96] : memref<160x128xbf16, #tpu.memory_space<vmem>>, vector<16x128xbf16>
      tpu.vector_store %arg9[%c0_95, %c0_96], %175 {strides = array<i32>} : memref<160x128xbf16, #tpu.memory_space<vmem>>, vector<16x128xbf16>,
    } else {
    }
    %c1_i32_35 = arith.constant 1 : i32
    %57 = arith.cmpi eq, %arg1, %c1_i32_35 : i32
    %58 = arith.extui %57 : i1 to i32
    %c0_i32_36 = arith.constant 0 : i32
    %59 = arith.cmpi ne, %58, %c0_i32_36 : i32
    scf.if %59 {
      %cst_94 = arith.constant 0.000000e+00 : bf16
      %175 = vector.broadcast %cst_94 : bf16 to vector<16x128xbf16>
      %c144 = arith.constant 144 : index
      %c0_95 = arith.constant 0 : index
      %176 = vector.load %arg9[%c144, %c0_95] : memref<160x128xbf16, #tpu.memory_space<vmem>>, vector<16x128xbf16>
      tpu.vector_store %arg9[%c144, %c0_95], %175 {strides = array<i32>} : memref<160x128xbf16, #tpu.memory_space<vmem>>, vector<16x128xbf16>,
    } else {
    }
    %60 = tpu.iota {dimensions = array<i32: 0>} : vector<128x1xi32>
    %c16_i32_37 = arith.constant 16 : i32
    %c0_i32_38 = arith.constant 0 : i32
    %61 = arith.cmpi eq, %c16_i32_37, %c0_i32_38 : i32
    %c1_i32_39 = arith.constant 1 : i32
    %62 = arith.select %61, %c1_i32_39, %c16_i32_37 : i32
    %63 = vector.broadcast %62 : i32 to vector<128x1xi32>
    %64 = arith.remsi %60, %63 : vector<128x1xi32>
    %c0_i32_40 = arith.constant 0 : i32
    %65 = vector.broadcast %c0_i32_40 : i32 to vector<128x1xi32>
    %66 = arith.cmpi ne, %64, %65 : vector<128x1xi32>
    %c0_i32_41 = arith.constant 0 : i32
    %67 = vector.broadcast %c0_i32_41 : i32 to vector<128x1xi32>
    %68 = arith.cmpi slt, %64, %67 : vector<128x1xi32>
    %c0_i32_42 = arith.constant 0 : i32
    %69 = arith.cmpi slt, %62, %c0_i32_42 : i32
    %70 = vector.broadcast %69 : i1 to vector<128x1xi1>
    %71 = vector.broadcast %70 : vector<128x1xi1> to vector<128x1xi1>
    %72 = arith.xori %68, %71 : vector<128x1xi1>
    %73 = arith.andi %72, %66 : vector<128x1xi1>
    %74 = vector.broadcast %62 : i32 to vector<128x1xi32>
    %75 = arith.addi %64, %74 : vector<128x1xi32>
    %76 = arith.select %73, %75, %64 : vector<128x1xi1>, vector<128x1xi32>
    %c0_i32_43 = arith.constant 0 : i32
    %77 = vector.broadcast %c0_i32_43 : i32 to vector<128x1xi32>
    %78 = arith.cmpi ne, %76, %77 : vector<128x1xi32>
    %c15_i32_44 = arith.constant 15 : i32
    %79 = vector.broadcast %c15_i32_44 : i32 to vector<128x1xi32>
    %80 = arith.cmpi ne, %76, %79 : vector<128x1xi32>
    %cst_45 = arith.constant 0.000000e+00 : f32
    %81 = vector.broadcast %cst_45 : f32 to vector<128x128xf32>
    %c0_46 = arith.constant 0 : index
    %c0_47 = arith.constant 0 : index
    %82 = vector.load %arg9[%c0_46, %c0_47] : memref<160x128xbf16, #tpu.memory_space<vmem>>, vector<128x128xbf16>
    %cst_48 = arith.constant 0.000000e+00 : bf16
    %83 = vector.broadcast %cst_48 : bf16 to vector<128x128xbf16>
    %84 = vector.extract_strided_slice %82 {offsets = [127, 0], sizes = [1, 128], strides = [1, 1]} : vector<128x128xbf16> to vector<1x128xbf16>
    %85 = vector.extract_strided_slice %82 {offsets = [0, 0], sizes = [127, 128], strides = [1, 1]} : vector<128x128xbf16> to vector<127x128xbf16>
    %86 = tpu.concatenate %84, %85 in 0 : vector<1x128xbf16>, vector<127x128xbf16> -> vector<128x128xbf16>
    %87 = vector.shape_cast %78 : vector<128x1xi1> to vector<128x1xi1>
    %88 = vector.broadcast %87 : vector<128x1xi1> to vector<128x128xi1>
    %89 = arith.select %88, %86, %83 : vector<128x128xi1>, vector<128x128xbf16>
    %c0_49 = arith.constant 0 : index
    %c0_50 = arith.constant 0 : index
    %c0_51 = arith.constant 0 : index
    %90 = vector.load %arg5[%c0_49, %c0_50, %c0_51] : memref<9x128x128xbf16, #tpu.memory_space<vmem>>, vector<1x128x128xbf16>
    %91 = vector.shape_cast %90 : vector<1x128x128xbf16> to vector<128x128xbf16>
    %cst_52 = arith.constant dense<0.000000e+00> : vector<128x128xf32>
    %92 = tpu.matmul %89, %91, %cst_52 {dimension_numbers = #tpu.dot_dimension_numbers<[1], [0], [0], [1], [0, 0, 1, 1], [], []>} : vector<128x128xbf16>, vector<128x128xbf16>, vector<128x128xf32> -> vector<128x128xf32>
    %93 = arith.addf %81, %92 : vector<128x128xf32>
    %c1 = arith.constant 1 : index
    %c0_53 = arith.constant 0 : index
    %c0_54 = arith.constant 0 : index
    %94 = vector.load %arg5[%c1, %c0_53, %c0_54] : memref<9x128x128xbf16, #tpu.memory_space<vmem>>, vector<1x128x128xbf16>
    %95 = vector.shape_cast %94 : vector<1x128x128xbf16> to vector<128x128xbf16>
    %cst_55 = arith.constant dense<0.000000e+00> : vector<128x128xf32>
    %96 = tpu.matmul %82, %95, %cst_55 {dimension_numbers = #tpu.dot_dimension_numbers<[1], [0], [0], [1], [0, 0, 1, 1], [], []>} : vector<128x128xbf16>, vector<128x128xbf16>, vector<128x128xf32> -> vector<128x128xf32>
    %97 = arith.addf %93, %96 : vector<128x128xf32>
    %98 = vector.extract_strided_slice %82 {offsets = [1, 0], sizes = [127, 128], strides = [1, 1]} : vector<128x128xbf16> to vector<127x128xbf16>
    %99 = vector.extract_strided_slice %82 {offsets = [0, 0], sizes = [1, 128], strides = [1, 1]} : vector<128x128xbf16> to vector<1x128xbf16>
    %100 = tpu.concatenate %98, %99 in 0 : vector<127x128xbf16>, vector<1x128xbf16> -> vector<128x128xbf16>
    %101 = vector.shape_cast %80 : vector<128x1xi1> to vector<128x1xi1>
    %102 = vector.broadcast %101 : vector<128x1xi1> to vector<128x128xi1>
    %103 = arith.select %102, %100, %83 : vector<128x128xi1>, vector<128x128xbf16>
    %c2 = arith.constant 2 : index
    %c0_56 = arith.constant 0 : index
    %c0_57 = arith.constant 0 : index
    %104 = vector.load %arg5[%c2, %c0_56, %c0_57] : memref<9x128x128xbf16, #tpu.memory_space<vmem>>, vector<1x128x128xbf16>
    %105 = vector.shape_cast %104 : vector<1x128x128xbf16> to vector<128x128xbf16>
    %cst_58 = arith.constant dense<0.000000e+00> : vector<128x128xf32>
    %106 = tpu.matmul %103, %105, %cst_58 {dimension_numbers = #tpu.dot_dimension_numbers<[1], [0], [0], [1], [0, 0, 1, 1], [], []>} : vector<128x128xbf16>, vector<128x128xbf16>, vector<128x128xf32> -> vector<128x128xf32>
    %107 = arith.addf %97, %106 : vector<128x128xf32>
    %c16 = arith.constant 16 : index
    %c0_59 = arith.constant 0 : index
    %108 = vector.load %arg9[%c16, %c0_59] : memref<160x128xbf16, #tpu.memory_space<vmem>>, vector<128x128xbf16>
    %cst_60 = arith.constant 0.000000e+00 : bf16
    %109 = vector.broadcast %cst_60 : bf16 to vector<128x128xbf16>
    %110 = vector.extract_strided_slice %108 {offsets = [127, 0], sizes = [1, 128], strides = [1, 1]} : vector<128x128xbf16> to vector<1x128xbf16>
    %111 = vector.extract_strided_slice %108 {offsets = [0, 0], sizes = [127, 128], strides = [1, 1]} : vector<128x128xbf16> to vector<127x128xbf16>
    %112 = tpu.concatenate %110, %111 in 0 : vector<1x128xbf16>, vector<127x128xbf16> -> vector<128x128xbf16>
    %113 = vector.shape_cast %78 : vector<128x1xi1> to vector<128x1xi1>
    %114 = vector.broadcast %113 : vector<128x1xi1> to vector<128x128xi1>
    %115 = arith.select %114, %112, %109 : vector<128x128xi1>, vector<128x128xbf16>
    %c3 = arith.constant 3 : index
    %c0_61 = arith.constant 0 : index
    %c0_62 = arith.constant 0 : index
    %116 = vector.load %arg5[%c3, %c0_61, %c0_62] : memref<9x128x128xbf16, #tpu.memory_space<vmem>>, vector<1x128x128xbf16>
    %117 = vector.shape_cast %116 : vector<1x128x128xbf16> to vector<128x128xbf16>
    %cst_63 = arith.constant dense<0.000000e+00> : vector<128x128xf32>
    %118 = tpu.matmul %115, %117, %cst_63 {dimension_numbers = #tpu.dot_dimension_numbers<[1], [0], [0], [1], [0, 0, 1, 1], [], []>} : vector<128x128xbf16>, vector<128x128xbf16>, vector<128x128xf32> -> vector<128x128xf32>
    %119 = arith.addf %107, %118 : vector<128x128xf32>
    %c4 = arith.constant 4 : index
    %c0_64 = arith.constant 0 : index
    %c0_65 = arith.constant 0 : index
    %120 = vector.load %arg5[%c4, %c0_64, %c0_65] : memref<9x128x128xbf16, #tpu.memory_space<vmem>>, vector<1x128x128xbf16>
    %121 = vector.shape_cast %120 : vector<1x128x128xbf16> to vector<128x128xbf16>
    %cst_66 = arith.constant dense<0.000000e+00> : vector<128x128xf32>
    %122 = tpu.matmul %108, %121, %cst_66 {dimension_numbers = #tpu.dot_dimension_numbers<[1], [0], [0], [1], [0, 0, 1, 1], [], []>} : vector<128x128xbf16>, vector<128x128xbf16>, vector<128x128xf32> -> vector<128x128xf32>
    %123 = arith.addf %119, %122 : vector<128x128xf32>
    %124 = vector.extract_strided_slice %108 {offsets = [1, 0], sizes = [127, 128], strides = [1, 1]} : vector<128x128xbf16> to vector<127x128xbf16>
    %125 = vector.extract_strided_slice %108 {offsets = [0, 0], sizes = [1, 128], strides = [1, 1]} : vector<128x128xbf16> to vector<1x128xbf16>
    %126 = tpu.concatenate %124, %125 in 0 : vector<127x128xbf16>, vector<1x128xbf16> -> vector<128x128xbf16>
    %127 = vector.shape_cast %80 : vector<128x1xi1> to vector<128x1xi1>
    %128 = vector.broadcast %127 : vector<128x1xi1> to vector<128x128xi1>
    %129 = arith.select %128, %126, %109 : vector<128x128xi1>, vector<128x128xbf16>
    %c5 = arith.constant 5 : index
    %c0_67 = arith.constant 0 : index
    %c0_68 = arith.constant 0 : index
    %130 = vector.load %arg5[%c5, %c0_67, %c0_68] : memref<9x128x128xbf16, #tpu.memory_space<vmem>>, vector<1x128x128xbf16>
    %131 = vector.shape_cast %130 : vector<1x128x128xbf16> to vector<128x128xbf16>
    %cst_69 = arith.constant dense<0.000000e+00> : vector<128x128xf32>
    %132 = tpu.matmul %129, %131, %cst_69 {dimension_numbers = #tpu.dot_dimension_numbers<[1], [0], [0], [1], [0, 0, 1, 1], [], []>} : vector<128x128xbf16>, vector<128x128xbf16>, vector<128x128xf32> -> vector<128x128xf32>
    %133 = arith.addf %123, %132 : vector<128x128xf32>
    %c32 = arith.constant 32 : index
    %c0_70 = arith.constant 0 : index
    %134 = vector.load %arg9[%c32, %c0_70] : memref<160x128xbf16, #tpu.memory_space<vmem>>, vector<128x128xbf16>
    %cst_71 = arith.constant 0.000000e+00 : bf16
    %135 = vector.broadcast %cst_71 : bf16 to vector<128x128xbf16>
    %136 = vector.extract_strided_slice %134 {offsets = [127, 0], sizes = [1, 128], strides = [1, 1]} : vector<128x128xbf16> to vector<1x128xbf16>
    %137 = vector.extract_strided_slice %134 {offsets = [0, 0], sizes = [127, 128], strides = [1, 1]} : vector<128x128xbf16> to vector<127x128xbf16>
    %138 = tpu.concatenate %136, %137 in 0 : vector<1x128xbf16>, vector<127x128xbf16> -> vector<128x128xbf16>
    %139 = vector.shape_cast %78 : vector<128x1xi1> to vector<128x1xi1>
    %140 = vector.broadcast %139 : vector<128x1xi1> to vector<128x128xi1>
    %141 = arith.select %140, %138, %135 : vector<128x128xi1>, vector<128x128xbf16>
    %c6 = arith.constant 6 : index
    %c0_72 = arith.constant 0 : index
    %c0_73 = arith.constant 0 : index
    %142 = vector.load %arg5[%c6, %c0_72, %c0_73] : memref<9x128x128xbf16, #tpu.memory_space<vmem>>, vector<1x128x128xbf16>
    %143 = vector.shape_cast %142 : vector<1x128x128xbf16> to vector<128x128xbf16>
    %cst_74 = arith.constant dense<0.000000e+00> : vector<128x128xf32>
    %144 = tpu.matmul %141, %143, %cst_74 {dimension_numbers = #tpu.dot_dimension_numbers<[1], [0], [0], [1], [0, 0, 1, 1], [], []>} : vector<128x128xbf16>, vector<128x128xbf16>, vector<128x128xf32> -> vector<128x128xf32>
    %145 = arith.addf %133, %144 : vector<128x128xf32>
    %c7 = arith.constant 7 : index
    %c0_75 = arith.constant 0 : index
    %c0_76 = arith.constant 0 : index
    %146 = vector.load %arg5[%c7, %c0_75, %c0_76] : memref<9x128x128xbf16, #tpu.memory_space<vmem>>, vector<1x128x128xbf16>
    %147 = vector.shape_cast %146 : vector<1x128x128xbf16> to vector<128x128xbf16>
    %cst_77 = arith.constant dense<0.000000e+00> : vector<128x128xf32>
    %148 = tpu.matmul %134, %147, %cst_77 {dimension_numbers = #tpu.dot_dimension_numbers<[1], [0], [0], [1], [0, 0, 1, 1], [], []>} : vector<128x128xbf16>, vector<128x128xbf16>, vector<128x128xf32> -> vector<128x128xf32>
    %149 = arith.addf %145, %148 : vector<128x128xf32>
    %150 = vector.extract_strided_slice %134 {offsets = [1, 0], sizes = [127, 128], strides = [1, 1]} : vector<128x128xbf16> to vector<127x128xbf16>
    %151 = vector.extract_strided_slice %134 {offsets = [0, 0], sizes = [1, 128], strides = [1, 1]} : vector<128x128xbf16> to vector<1x128xbf16>
    %152 = tpu.concatenate %150, %151 in 0 : vector<127x128xbf16>, vector<1x128xbf16> -> vector<128x128xbf16>
    %153 = vector.shape_cast %80 : vector<128x1xi1> to vector<128x1xi1>
    %154 = vector.broadcast %153 : vector<128x1xi1> to vector<128x128xi1>
    %155 = arith.select %154, %152, %135 : vector<128x128xi1>, vector<128x128xbf16>
    %c8 = arith.constant 8 : index
    %c0_78 = arith.constant 0 : index
    %c0_79 = arith.constant 0 : index
    %156 = vector.load %arg5[%c8, %c0_78, %c0_79] : memref<9x128x128xbf16, #tpu.memory_space<vmem>>, vector<1x128x128xbf16>
    %157 = vector.shape_cast %156 : vector<1x128x128xbf16> to vector<128x128xbf16>
    %cst_80 = arith.constant dense<0.000000e+00> : vector<128x128xf32>
    %158 = tpu.matmul %155, %157, %cst_80 {dimension_numbers = #tpu.dot_dimension_numbers<[1], [0], [0], [1], [0, 0, 1, 1], [], []>} : vector<128x128xbf16>, vector<128x128xbf16>, vector<128x128xf32> -> vector<128x128xf32>
    %159 = arith.addf %149, %158 : vector<128x128xf32>
    %cst_81 = arith.constant dense<0.000000e+00> : vector<128xf32>
    %160 = vector.multi_reduction <add>, %159, %cst_81 [0] : vector<128x128xf32> to vector<128xf32>
    %161 = vector.shape_cast %160 : vector<128xf32> to vector<1x128xf32>
    %c0_82 = arith.constant 0 : index
    %c0_83 = arith.constant 0 : index
    %c0_84 = arith.constant 0 : index
    %c0_85 = arith.constant 0 : index
    %162 = vector.load %arg7[%c0_82, %c0_83, %c0_84, %c0_85] : memref<1x1x1x128xf32, #tpu.memory_space<vmem>>, vector<1x1x1x128xf32>
    %163 = vector.shape_cast %162 : vector<1x1x1x128xf32> to vector<1x128xf32>
    %164 = vector.shape_cast %161 : vector<1x128xf32> to vector<1x1x1x128xf32>
    tpu.vector_store %arg7[%c0_82, %c0_83, %c0_84, %c0_85], %164 {strides = array<i32>} : memref<1x1x1x128xf32, #tpu.memory_space<vmem>>, vector<1x1x1x128xf32>,
    %165 = arith.mulf %159, %159 : vector<128x128xf32>
    %cst_86 = arith.constant dense<0.000000e+00> : vector<128xf32>
    %166 = vector.multi_reduction <add>, %165, %cst_86 [0] : vector<128x128xf32> to vector<128xf32>
    %167 = vector.shape_cast %166 : vector<128xf32> to vector<1x128xf32>
    %c0_87 = arith.constant 0 : index
    %c0_88 = arith.constant 0 : index
    %c0_89 = arith.constant 0 : index
    %c0_90 = arith.constant 0 : index
    %168 = vector.load %arg8[%c0_87, %c0_88, %c0_89, %c0_90] : memref<1x1x1x128xf32, #tpu.memory_space<vmem>>, vector<1x1x1x128xf32>
    %169 = vector.shape_cast %168 : vector<1x1x1x128xf32> to vector<1x128xf32>
    %170 = vector.shape_cast %167 : vector<1x128xf32> to vector<1x1x1x128xf32>
    tpu.vector_store %arg8[%c0_87, %c0_88, %c0_89, %c0_90], %170 {strides = array<i32>} : memref<1x1x1x128xf32, #tpu.memory_space<vmem>>, vector<1x1x1x128xf32>,
    %171 = arith.truncf %159 : vector<128x128xf32> to vector<128x128xbf16>
    %c0_91 = arith.constant 0 : index
    %c0_92 = arith.constant 0 : index
    %c0_93 = arith.constant 0 : index
    %172 = vector.load %arg6[%c0_91, %c0_92, %c0_93] : memref<1x128x128xbf16, #tpu.memory_space<vmem>>, vector<1x128x128xbf16>
    %173 = vector.shape_cast %172 : vector<1x128x128xbf16> to vector<128x128xbf16>
    %174 = vector.shape_cast %171 : vector<128x128xbf16> to vector<1x128x128xbf16>
    tpu.vector_store %arg6[%c0_91, %c0_92, %c0_93], %174 {strides = array<i32>} : memref<1x128x128xbf16, #tpu.memory_space<vmem>>, vector<1x128x128xbf16>,
    return
  }
  func.func @transform_1(%arg0: i32, %arg1: i32) -> (i32, i32) {
    %c0_i32 = arith.constant 0 : i32
    %c0_i32_0 = arith.constant 0 : i32
    %c0_i32_1 = arith.constant 0 : i32
    return %c0_i32, %c0_i32_0 : i32, i32
  }
  func.func @transform_2(%arg0: i32, %arg1: i32) -> (i32, i32) {
    %c0_i32 = arith.constant 0 : i32
    %c0_i32_0 = arith.constant 0 : i32
    %c0_i32_1 = arith.constant 0 : i32
    return %c0_i32, %c0_i32_0 : i32, i32
  }
  func.func @transform_3(%arg0: i32, %arg1: i32) -> (i32, i32, i32) {
    %c0_i32 = arith.constant 0 : i32
    %c0_i32_0 = arith.constant 0 : i32
    %c0_i32_1 = arith.constant 0 : i32
    %c0_i32_2 = arith.constant 0 : i32
    return %c0_i32, %c0_i32_0, %c0_i32_1 : i32, i32, i32
  }
  func.func @transform_4(%arg0: i32, %arg1: i32) -> (i32, i32, i32) {
    %c0_i32 = arith.constant 0 : i32
    %c0_i32_0 = arith.constant 0 : i32
    return %arg0, %arg1, %c0_i32 : i32, i32, i32
  }
  func.func @transform_5(%arg0: i32, %arg1: i32) -> (i32, i32, i32, i32) {
    %c0_i32 = arith.constant 0 : i32
    %c0_i32_0 = arith.constant 0 : i32
    %c0_i32_1 = arith.constant 0 : i32
    return %arg0, %arg1, %c0_i32, %c0_i32_0 : i32, i32, i32, i32
  }
  func.func @transform_6(%arg0: i32, %arg1: i32) -> (i32, i32, i32, i32) {
    %c0_i32 = arith.constant 0 : i32
    %c0_i32_0 = arith.constant 0 : i32
    %c0_i32_1 = arith.constant 0 : i32
    return %arg0, %arg1, %c0_i32, %c0_i32_0 : i32, i32, i32, i32
  }
}

</mosaic_0001>

<bundles_post_ra>
// kernel: upsample_bn_forward.5
= control target key start
LH: loop header
LB: loop body
LE: loop exit
PB: predicated region body
PF: predicated region fallthrough
CT: control target
= control target key end

     0   :  { %s730_s12 = smov 0   ;;  %s732_s13 = smov 0   ;;  %s925_s0 = inlined_call_operand.vmem [shape: bf16[2,256,128], index: 0, kind: input, shape index: {}]   ;;  %s926_s1 = inlined_call_operand.vmem [shape: f32[1,128], index: 1, kind: input, shape index: {}]   ;;  %s927_s2 = inlined_call_operand.vmem [shape: f32[1,128], index: 2, kind: input, shape index: {}]   ;;  %s928_s3 = inlined_call_operand.vmem [shape: f32[2,256,4], index: 3, kind: output, shape index: {}]  }
   0x1   :  { %s734_s14 = smov 0  }
   0x2 LB: > { %s25_s15 = sadd.s32 1, %s704_s13  ;;  %p572_p0 = scmp.ge.s32.totalorder %s708_s14, 1  ;;  %s708_s14 = sphi %s734_s14, %s13_s14   ;;  %s704_s13 = sphi %s732_s13, %s930_s13   ;;  %s700_s12 = sphi %s730_s12, %s929_s12  }
   0x3   : > { %p27_p1 = scmp.ge.s32.totalorder %s25_s15, 2  ;;  %p158_p2 = scmp.lt.s32.totalorder %s708_s14, 3 }
   0x5   : > { %s932_s15 = smov (%p27_p1, %s25_s15), 0  ;;  %p159_p3 = pnand %p572_p0, %p158_p2 }
   0x6   : > { %p191_p4 = scmp.lt.s32.totalorder (!%p159_p3), %s700_s12, 1 }
   0x7   : > { %162 = sbr.rel (%p159_p3) target bundleno = 70 (0x46), region = 32 }
   0xc   : > { %s934_s12 = smov (!%p191_p4, %s700_s12), 1  ;;  %v759_v0 = vld [vmem:[%s926_s1] ss:$0 sm:$0xff]  ;;  %vm448_vm0 = vcmask 31744  }
   0xd   : > { %s581_s16 = sshll.u32 %s934_s12, 7  ;;  %v768_v9 = vld [vmem:[%s927_s2] ss:$0 sm:$0xff]  ;;  %s582_s24 = sshll.u32 %s934_s12, 8 }
   0xe   : > { %s754_s19 = scalar_lea.vmem %s925_s0, %s581_s16  ;;  %s790_s27 = scalar_lea.vmem %s928_s3, %s582_s24 }
   0xf   : > { %v584_v1 = vld [vmem:[%s754_s19] sm:$0xff]   ;;  %v647_v2 = vld [vmem:[%s754_s19 + $0x8] sm:$0xff]   ;;  %v648_v3 = vld [vmem:[%s754_s19 + $0x10] sm:$0xff]  }
  0x10   : > { %v585_v4 = vunpack.c.l.bf16 %v584_v1  ;;  %v586_v5 = vunpack.c.h.bf16 %v584_v1  ;;  %v589_v6 = vunpack.c.l.bf16 %v647_v2  ;;  %v590_v7 = vunpack.c.h.bf16 %v647_v2  ;;  %v649_v8 = vld [vmem:[%s754_s19 + $0x18] sm:$0xff]   ;;  %v650_v37 = vld [vmem:[%s754_s19 + $0x20] sm:$0xff]   ;;  %v651_v41 = vld [vmem:[%s754_s19 + $0x28] sm:$0xff]  }
  0x11   : > { %v593_v10 = vunpack.c.l.bf16 %v648_v3  ;;  %v594_v11 = vunpack.c.h.bf16 %v648_v3  ;;  %v597_v12 = vunpack.c.l.bf16 %v649_v8  ;;  %v598_v13 = vunpack.c.h.bf16 %v649_v8  ;;  %v652_v42 = vld [vmem:[%s754_s19 + $0x30] sm:$0xff]   ;;  %v653_v49 = vld [vmem:[%s754_s19 + $0x38] sm:$0xff]  }
  0x12   : > { %v281_v14 = vmul.f32 %v585_v4, %v759_v0  ;;  %v282_v15 = vmul.f32 %v586_v5, %v759_v0  ;;  %v283_v16 = vmul.f32 %v589_v6, %v759_v0  ;;  %v284_v17 = vmul.f32 %v590_v7, %v759_v0  ;;  %v654_v7 = vld [vmem:[%s754_s19 + $0x40] sm:$0xff]  }
  0x13   : > { %v285_v18 = vmul.f32 %v593_v10, %v759_v0  ;;  %v286_v19 = vmul.f32 %v594_v11, %v759_v0  ;;  %v287_v20 = vmul.f32 %v597_v12, %v759_v0  ;;  %v288_v21 = vmul.f32 %v598_v13, %v759_v0 }
  0x14   : > { %v320_v22 = vadd.f32 %v768_v9, %v281_v14  ;;  %v321_v23 = vadd.f32 %v768_v9, %v282_v15  ;;  %v322_v24 = vadd.f32 %v768_v9, %v283_v16  ;;  %v323_v25 = vadd.f32 %v768_v9, %v284_v17 }
  0x15   : > { %v324_v26 = vadd.f32 %v768_v9, %v285_v18  ;;  %v325_v27 = vadd.f32 %v768_v9, %v286_v19  ;;  %v326_v28 = vadd.f32 %v768_v9, %v287_v20  ;;  %v327_v29 = vadd.f32 %v768_v9, %v288_v21  ;;  %v655_v20 = vld [vmem:[%s754_s19 + $0x48] sm:$0xff]  }
  0x16   : > { %vm352_vm1 = vcmp.gt.f32.partialorder %v320_v22, 0.0  ;;  %v384_v30 = vmul.f32 0.01, %v320_v22  ;;  %vm353_vm2 = vcmp.gt.f32.partialorder %v321_v23, 0.0  ;;  %v385_v31 = vmul.f32 0.01, %v321_v23 }
  0x17   : > { %vm354_vm3 = vcmp.gt.f32.partialorder %v322_v24, 0.0  ;;  %v386_v32 = vmul.f32 0.01, %v322_v24  ;;  %vm355_vm4 = vcmp.gt.f32.partialorder %v323_v25, 0.0  ;;  %v387_v33 = vmul.f32 0.01, %v323_v25 }
  0x18   : > { %v416_v34 = vsel %vm352_vm1, %v320_v22, %v384_v30  ;;  %v417_v35 = vsel %vm353_vm2, %v321_v23, %v385_v31  ;;  %vm356_vm5 = vcmp.gt.f32.partialorder %v324_v26, 0.0  ;;  %v388_v36 = vmul.f32 0.01, %v324_v26 }
  0x19   : > { %449 = vst.msk [vmem:[%s790_s27] sm:$0xff] %vm448_vm0, %v416_v34  ;;  %450 = vst.msk [vmem:[%s790_s27 + $0x8] sm:$0xff] %vm448_vm0, %v417_v35  ;;  %v418_v38 = vsel %vm354_vm3, %v322_v24, %v386_v32  ;;  %v419_v39 = vsel %vm355_vm4, %v323_v25, %v387_v33  ;;  %vm357_vm6 = vcmp.gt.f32.partialorder %v325_v27, 0.0  ;;  %v389_v40 = vmul.f32 0.01, %v325_v27  ;;  %v656_v25 = vld [vmem:[%s754_s19 + $0x50] sm:$0xff]  }
  0x1a   : > { %451 = vst.msk [vmem:[%s790_s27 + $0x10] sm:$0xff] %vm448_vm0, %v418_v38  ;;  %452 = vst.msk [vmem:[%s790_s27 + $0x18] sm:$0xff] %vm448_vm0, %v419_v39  ;;  %v420_v43 = vsel %vm356_vm5, %v324_v26, %v388_v36  ;;  %vm358_vm7 = vcmp.gt.f32.partialorder %v326_v28, 0.0  ;;  %v390_v44 = vmul.f32 0.01, %v326_v28  ;;  %vm359_vm8 = vcmp.gt.f32.partialorder %v327_v29, 0.0 }
  0x1b   : > { %453 = vst.msk [vmem:[%s790_s27 + $0x20] sm:$0xff] %vm448_vm0, %v420_v43  ;;  %v421_v45 = vsel %vm357_vm6, %v325_v27, %v389_v40  ;;  %v391_v46 = vmul.f32 0.01, %v327_v29  ;;  %v601_v47 = vunpack.c.l.bf16 %v650_v37  ;;  %v602_v48 = vunpack.c.h.bf16 %v650_v37  ;;  %v657_v43 = vld [vmem:[%s754_s19 + $0x58] sm:$0xff]  }
  0x1c   : > { %454 = vst.msk [vmem:[%s790_s27 + $0x28] sm:$0xff] %vm448_vm0, %v421_v45  ;;  %v422_v50 = vsel %vm358_vm7, %v326_v28, %v390_v44  ;;  %v605_v51 = vunpack.c.l.bf16 %v651_v41  ;;  %v606_v52 = vunpack.c.h.bf16 %v651_v41  ;;  %v609_v53 = vunpack.c.l.bf16 %v652_v42 }
  0x1d   : > { %455 = vst.msk [vmem:[%s790_s27 + $0x30] sm:$0xff] %vm448_vm0, %v422_v50  ;;  %v423_v54 = vsel %vm359_vm8, %v327_v29, %v391_v46  ;;  %v289_v55 = vmul.f32 %v601_v47, %v759_v0  ;;  %v290_v56 = vmul.f32 %v602_v48, %v759_v0  ;;  %v610_v57 = vunpack.c.h.bf16 %v652_v42 }
  0x1e   : > { %456 = vst.msk [vmem:[%s790_s27 + $0x38] sm:$0xff] %vm448_vm0, %v423_v54  ;;  %v291_v58 = vmul.f32 %v605_v51, %v759_v0  ;;  %v292_v59 = vmul.f32 %v606_v52, %v759_v0  ;;  %v293_v60 = vmul.f32 %v609_v53, %v759_v0  ;;  %v613_v61 = vunpack.c.l.bf16 %v653_v49  ;;  %v658_v54 = vld [vmem:[%s754_s19 + $0x60] sm:$0xff]  }
  0x1f   : > { %v328_v62 = vadd.f32 %v768_v9, %v289_v55  ;;  %v329_v63 = vadd.f32 %v768_v9, %v290_v56  ;;  %v294_v1 = vmul.f32 %v610_v57, %v759_v0  ;;  %v614_v2 = vunpack.c.h.bf16 %v653_v49 }
  0x20   : > { %v330_v3 = vadd.f32 %v768_v9, %v291_v58  ;;  %v331_v4 = vadd.f32 %v768_v9, %v292_v59  ;;  %v332_v5 = vadd.f32 %v768_v9, %v293_v60  ;;  %v295_v6 = vmul.f32 %v613_v61, %v759_v0 }
  0x21   : > { %vm360_vm9 = vcmp.gt.f32.partialorder %v328_v62, 0.0  ;;  %v392_v8 = vmul.f32 0.01, %v328_v62  ;;  %vm361_vm10 = vcmp.gt.f32.partialorder %v329_v63, 0.0  ;;  %v393_v10 = vmul.f32 0.01, %v329_v63 }
  0x22   : > { %vm362_vm11 = vcmp.gt.f32.partialorder %v330_v3, 0.0  ;;  %v394_v11 = vmul.f32 0.01, %v330_v3  ;;  %vm363_vm12 = vcmp.gt.f32.partialorder %v331_v4, 0.0  ;;  %v395_v12 = vmul.f32 0.01, %v331_v4 }
  0x23   : > { %v424_v13 = vsel %vm360_vm9, %v328_v62, %v392_v8  ;;  %v425_v14 = vsel %vm361_vm10, %v329_v63, %v393_v10  ;;  %vm364_vm13 = vcmp.gt.f32.partialorder %v332_v5, 0.0  ;;  %v396_v15 = vmul.f32 0.01, %v332_v5 }
  0x24   : > { %457 = vst.msk [vmem:[%s790_s27 + $0x40] sm:$0xff] %vm448_vm0, %v424_v13  ;;  %458 = vst.msk [vmem:[%s790_s27 + $0x48] sm:$0xff] %vm448_vm0, %v425_v14  ;;  %v426_v16 = vsel %vm362_vm11, %v330_v3, %v394_v11  ;;  %v427_v17 = vsel %vm363_vm12, %v331_v4, %v395_v12  ;;  %v333_v18 = vadd.f32 %v768_v9, %v294_v1  ;;  %v617_v23 = vunpack.c.l.bf16 %v654_v7  ;;  %v659_v1 = vld [vmem:[%s754_s19 + $0x68] sm:$0xff]  }
  0x25   : > { %v334_v19 = vadd.f32 %v768_v9, %v295_v6  ;;  %459 = vst.msk [vmem:[%s790_s27 + $0x50] sm:$0xff] %vm448_vm0, %v426_v16  ;;  %460 = vst.msk [vmem:[%s790_s27 + $0x58] sm:$0xff] %vm448_vm0, %v427_v17  ;;  %v428_v21 = vsel %vm364_vm13, %v332_v5, %v396_v15  ;;  %v296_v22 = vmul.f32 %v614_v2, %v759_v0  ;;  %v618_v24 = vunpack.c.h.bf16 %v654_v7  ;;  %v660_v2 = vld [vmem:[%s754_s19 + $0x70] sm:$0xff]  }
  0x26   : > { %461 = vst.msk [vmem:[%s790_s27 + $0x60] sm:$0xff] %vm448_vm0, %v428_v21  ;;  %vm365_vm14 = vcmp.gt.f32.partialorder %v333_v18, 0.0  ;;  %v397_v26 = vmul.f32 0.01, %v333_v18  ;;  %v297_v29 = vmul.f32 %v617_v23, %v759_v0  ;;  %v621_v31 = vunpack.c.l.bf16 %v655_v20  ;;  %v661_v21 = vld [vmem:[%s754_s19 + $0x78] sm:$0xff]  }
  0x27   : > { %vm366_vm15 = vcmp.gt.f32.partialorder %v334_v19, 0.0  ;;  %v398_v27 = vmul.f32 0.01, %v334_v19  ;;  %v335_v28 = vadd.f32 %v768_v9, %v296_v22  ;;  %v298_v30 = vmul.f32 %v618_v24, %v759_v0 }
  0x28   : > { %v429_v32 = vsel %vm365_vm14, %v333_v18, %v397_v26  ;;  %v622_v34 = vunpack.c.h.bf16 %v655_v20  ;;  %v625_v35 = vunpack.c.l.bf16 %v656_v25  ;;  %v336_v37 = vadd.f32 %v768_v9, %v297_v29 }
  0x29   : > { %v430_v33 = vsel %vm366_vm15, %v334_v19, %v398_v27  ;;  %462 = vst.msk [vmem:[%s790_s27 + $0x68] sm:$0xff] %vm448_vm0, %v429_v32  ;;  %vm367_vm1 = vcmp.gt.f32.partialorder %v335_v28, 0.0  ;;  %v399_v36 = vmul.f32 0.01, %v335_v28  ;;  %v337_v38 = vadd.f32 %v768_v9, %v298_v30 }
  0x2a   : > { %463 = vst.msk [vmem:[%s790_s27 + $0x70] sm:$0xff] %vm448_vm0, %v430_v33  ;;  %v299_v39 = vmul.f32 %v621_v31, %v759_v0  ;;  %v300_v40 = vmul.f32 %v622_v34, %v759_v0  ;;  %v301_v41 = vmul.f32 %v625_v35, %v759_v0  ;;  %v626_v42 = vunpack.c.h.bf16 %v656_v25 }
  0x2b   : > { %v431_v44 = vsel %vm367_vm1, %v335_v28, %v399_v36  ;;  %vm368_vm2 = vcmp.gt.f32.partialorder %v336_v37, 0.0  ;;  %v400_v45 = vmul.f32 0.01, %v336_v37  ;;  %vm369_vm3 = vcmp.gt.f32.partialorder %v337_v38, 0.0 }
  0x2c   : > { %464 = vst.msk [vmem:[%s790_s27 + $0x78] sm:$0xff] %vm448_vm0, %v431_v44  ;;  %v401_v46 = vmul.f32 0.01, %v337_v38  ;;  %v338_v47 = vadd.f32 %v768_v9, %v299_v39  ;;  %v339_v48 = vadd.f32 %v768_v9, %v300_v40  ;;  %v340_v49 = vadd.f32 %v768_v9, %v301_v41 }
  0x2d   : > { %v432_v50 = vsel %vm368_vm2, %v336_v37, %v400_v45  ;;  %v302_v51 = vmul.f32 %v626_v42, %v759_v0  ;;  %v629_v52 = vunpack.c.l.bf16 %v657_v43  ;;  %v630_v53 = vunpack.c.h.bf16 %v657_v43 }
  0x2e   : > { %465 = vst.msk [vmem:[%s790_s27 + $0x80] sm:$0xff] %vm448_vm0, %v432_v50  ;;  %v433_v55 = vsel %vm369_vm3, %v337_v38, %v401_v46  ;;  %vm370_vm4 = vcmp.gt.f32.partialorder %v338_v47, 0.0  ;;  %v402_v56 = vmul.f32 0.01, %v338_v47  ;;  %vm371_vm5 = vcmp.gt.f32.partialorder %v339_v48, 0.0 }
  0x2f   : > { %466 = vst.msk [vmem:[%s790_s27 + $0x88] sm:$0xff] %vm448_vm0, %v433_v55  ;;  %v403_v57 = vmul.f32 0.01, %v339_v48  ;;  %vm372_vm6 = vcmp.gt.f32.partialorder %v340_v49, 0.0  ;;  %v404_v58 = vmul.f32 0.01, %v340_v49  ;;  %v341_v59 = vadd.f32 %v768_v9, %v302_v51 }
  0x30   : > { %v434_v60 = vsel %vm370_vm4, %v338_v47, %v402_v56  ;;  %v303_v61 = vmul.f32 %v629_v52, %v759_v0  ;;  %v304_v62 = vmul.f32 %v630_v53, %v759_v0  ;;  %v633_v63 = vunpack.c.l.bf16 %v658_v54 }
  0x31   : > { %467 = vst.msk [vmem:[%s790_s27 + $0x90] sm:$0xff] %vm448_vm0, %v434_v60  ;;  %v435_v3 = vsel %vm371_vm5, %v339_v48, %v403_v57  ;;  %v436_v4 = vsel %vm372_vm6, %v340_v49, %v404_v58  ;;  %vm373_vm7 = vcmp.gt.f32.partialorder %v341_v59, 0.0  ;;  %v405_v5 = vmul.f32 0.01, %v341_v59 }
  0x32   : > { %468 = vst.msk [vmem:[%s790_s27 + $0x98] sm:$0xff] %vm448_vm0, %v435_v3  ;;  %469 = vst.msk [vmem:[%s790_s27 + $0xa0] sm:$0xff] %vm448_vm0, %v436_v4  ;;  %v342_v6 = vadd.f32 %v768_v9, %v303_v61  ;;  %v343_v7 = vadd.f32 %v768_v9, %v304_v62  ;;  %v305_v8 = vmul.f32 %v633_v63, %v759_v0  ;;  %v634_v10 = vunpack.c.h.bf16 %v658_v54 }
  0x33   : > { %v437_v11 = vsel %vm373_vm7, %v341_v59, %v405_v5  ;;  %v637_v12 = vunpack.c.l.bf16 %v659_v1  ;;  %v638_v13 = vunpack.c.h.bf16 %v659_v1  ;;  %v641_v14 = vunpack.c.l.bf16 %v660_v2 }
  0x34   : > { %470 = vst.msk [vmem:[%s790_s27 + $0xa8] sm:$0xff] %vm448_vm0, %v437_v11  ;;  %vm374_vm8 = vcmp.gt.f32.partialorder %v342_v6, 0.0  ;;  %v406_v15 = vmul.f32 0.01, %v342_v6  ;;  %vm375_vm9 = vcmp.gt.f32.partialorder %v343_v7, 0.0  ;;  %v344_v17 = vadd.f32 %v768_v9, %v305_v8 }
  0x35   : > { %v407_v16 = vmul.f32 0.01, %v343_v7  ;;  %v306_v18 = vmul.f32 %v634_v10, %v759_v0  ;;  %v307_v19 = vmul.f32 %v637_v12, %v759_v0  ;;  %v308_v20 = vmul.f32 %v638_v13, %v759_v0 }
  0x36   : > { %v438_v22 = vsel %vm374_vm8, %v342_v6, %v406_v15  ;;  %v309_v24 = vmul.f32 %v641_v14, %v759_v0  ;;  %v642_v25 = vunpack.c.h.bf16 %v660_v2  ;;  %vm376_vm10 = vcmp.gt.f32.partialorder %v344_v17, 0.0 }
  0x37   : > { %v439_v23 = vsel %vm375_vm9, %v343_v7, %v407_v16  ;;  %471 = vst.msk [vmem:[%s790_s27 + $0xb0] sm:$0xff] %vm448_vm0, %v438_v22  ;;  %v408_v26 = vmul.f32 0.01, %v344_v17  ;;  %v345_v27 = vadd.f32 %v768_v9, %v306_v18  ;;  %v346_v28 = vadd.f32 %v768_v9, %v307_v19 }
  0x38   : > { %472 = vst.msk [vmem:[%s790_s27 + $0xb8] sm:$0xff] %vm448_vm0, %v439_v23  ;;  %v347_v29 = vadd.f32 %v768_v9, %v308_v20  ;;  %v348_v30 = vadd.f32 %v768_v9, %v309_v24  ;;  %v310_v31 = vmul.f32 %v642_v25, %v759_v0  ;;  %v645_v32 = vunpack.c.l.bf16 %v661_v21 }
  0x39   : > { %v440_v33 = vsel %vm376_vm10, %v344_v17, %v408_v26  ;;  %vm377_vm11 = vcmp.gt.f32.partialorder %v345_v27, 0.0  ;;  %v409_v34 = vmul.f32 0.01, %v345_v27  ;;  %vm378_vm12 = vcmp.gt.f32.partialorder %v346_v28, 0.0 }
  0x3a   : > { %473 = vst.msk [vmem:[%s790_s27 + $0xc0] sm:$0xff] %vm448_vm0, %v440_v33  ;;  %v410_v35 = vmul.f32 0.01, %v346_v28  ;;  %vm379_vm13 = vcmp.gt.f32.partialorder %v347_v29, 0.0  ;;  %v411_v36 = vmul.f32 0.01, %v347_v29  ;;  %v349_v39 = vadd.f32 %v768_v9, %v310_v31 }
  0x3b   : > { %vm380_vm14 = vcmp.gt.f32.partialorder %v348_v30, 0.0  ;;  %v441_v37 = vsel %vm377_vm11, %v345_v27, %v409_v34  ;;  %v412_v38 = vmul.f32 0.01, %v348_v30  ;;  %v311_v40 = vmul.f32 %v645_v32, %v759_v0 }
  0x3c   : > { %474 = vst.msk [vmem:[%s790_s27 + $0xc8] sm:$0xff] %vm448_vm0, %v441_v37  ;;  %v442_v41 = vsel %vm378_vm12, %v346_v28, %v410_v35  ;;  %v443_v42 = vsel %vm379_vm13, %v347_v29, %v411_v36  ;;  %v646_v43 = vunpack.c.h.bf16 %v661_v21  ;;  %vm381_vm15 = vcmp.gt.f32.partialorder %v349_v39, 0.0 }
  0x3d   : > { %475 = vst.msk [vmem:[%s790_s27 + $0xd0] sm:$0xff] %vm448_vm0, %v442_v41  ;;  %476 = vst.msk [vmem:[%s790_s27 + $0xd8] sm:$0xff] %vm448_vm0, %v443_v42  ;;  %v444_v44 = vsel %vm380_vm14, %v348_v30, %v412_v38  ;;  %v413_v45 = vmul.f32 0.01, %v349_v39  ;;  %v350_v46 = vadd.f32 %v768_v9, %v311_v40 }
  0x3e   : > { %477 = vst.msk [vmem:[%s790_s27 + $0xe0] sm:$0xff] %vm448_vm0, %v444_v44  ;;  %v312_v47 = vmul.f32 %v646_v43, %v759_v0 }
  0x3f   : > { %v445_v48 = vsel %vm381_vm15, %v349_v39, %v413_v45  ;;  %vm382_vm1 = vcmp.gt.f32.partialorder %v350_v46, 0.0  ;;  %v414_v49 = vmul.f32 0.01, %v350_v46 }
  0x40   : > { %478 = vst.msk [vmem:[%s790_s27 + $0xe8] sm:$0xff] %vm448_vm0, %v445_v48  ;;  %v351_v50 = vadd.f32 %v768_v9, %v312_v47 }
  0x41   : > { %v446_v51 = vsel %vm382_vm1, %v350_v46, %v414_v49 }
  0x42   : > { %479 = vst.msk [vmem:[%s790_s27 + $0xf0] sm:$0xff] %vm448_vm0, %v446_v51  ;;  %vm383_vm2 = vcmp.gt.f32.partialorder %v351_v50, 0.0  ;;  %v415_v52 = vmul.f32 0.01, %v351_v50 }
  0x44   : > { %v447_v53 = vsel %vm383_vm2, %v351_v50, %v415_v52 }
  0x45   : > { %480 = vst.msk [vmem:[%s790_s27 + $0xf8] sm:$0xff] %vm448_vm0, %v447_v53 }
  0x46 PF: > { %s13_s14 = sadd.s32 1, %s708_s14   ;;  %s929_s12 = smov %s704_s13 }
  0x47   : > { %p10_p5 = scmp.ge.s32.totalorder %s13_s14, 4   ;;  %s930_s13 = smov %s932_s15 }
  0x49   :  { %12 = sbr.rel (!%p10_p5) target bundleno = 2 (0x2), region = 62 }

// kernel: upsample_bn_forward.3
= control target key start
LH: loop header
LB: loop body
LE: loop exit
PB: predicated region body
PF: predicated region fallthrough
CT: control target
= control target key end

     0   :  { %s4487_s21 = smov 0   ;;  %s4489_s22 = smov 0   ;;  %s5707_s0 = inlined_call_operand.vmem [shape: bf16[2,256,128], index: 0, kind: input, shape index: {}]   ;;  %s5708_s1 = inlined_call_operand.vmem [shape: f32[1,128], index: 1, kind: input, shape index: {}]   ;;  %s5709_s2 = inlined_call_operand.vmem [shape: f32[1,128], index: 2, kind: input, shape index: {}]   ;;  %s5710_s3 = inlined_call_operand.vmem [shape: bf16[9,128,128], index: 3, kind: input, shape index: {}]   ;;  %s5711_s4 = inlined_call_operand.vmem [shape: bf16[2,256,128], index: 4, kind: output, shape index: {0}]   ;;  %s5712_s5 = inlined_call_operand.vmem [shape: f32[2,2,1,128], index: 5, kind: output, shape index: {1}]   ;;  %s5713_s6 = inlined_call_operand.vmem [shape: f32[2,2,1,128], index: 6, kind: output, shape index: {2}]  }
   0x1   :  { %s4491_s1 = smov 0   ;;  %s4493_s23 = smov 0  }
   0x2   :  { %s4495_s2 = smov 0  }
   0x3 LB: > { %s26_s24 = sadd.s32 1, %s4438_s1  ;;  %s29_s25 = sadd.s32 1, %s4442_s23  ;;  %s4446_s2 = sphi %s4495_s2, %s17_s2   ;;  %s4442_s23 = sphi %s4493_s23, %s5846_s23   ;;  %s4438_s1 = sphi %s4491_s1, %s5845_s1   ;;  %s4434_s22 = sphi %s4489_s22, %s5844_s22   ;;  %s4430_s21 = sphi %s4487_s21, %s5843_s21  }
   0x4   : > { %p27_p0 = scmp.ge.s32.totalorder %s26_s24, 2  ;;  %p3413_p1 = scmp.ge.s32.totalorder %s4446_s2, 1 }
   0x5   : > { %p201_p2 = scmp.lt.s32.totalorder %s4446_s2, 5 }
   0x6   : > { %s5848_s24 = smov (%p27_p0, %s26_s24), 0  ;;  %s5850_s25 = smov (!%p27_p0, %s29_s25), %s4442_s23 }
   0x7   : > { %p202_p3 = pnand %p3413_p1, %p201_p2  ;;  %p31_p4 = scmp.ge.s32.totalorder %s5850_s25, 2 }
   0x9   : > { %s5852_s25 = smov (%p31_p4, %s5850_s25), 0  ;;  %205 = sbr.rel (%p202_p3) target bundleno = 479 (0x1df), region = 32 }
   0xe   : > { %s3414_s26 = sshll.u32 %s4430_s21, 4  ;;  %p243_p5 = scmp.lt.s32.totalorder %s4434_s22, 1 }
   0xf   : > { %p245_p6 = scmp.lt.s32.totalorder %s3414_s26, 31  ;;  %p254_p7 = scmp.lt.s32.totalorder %s4430_s21, 1 }
  0x10   : > { %s244_s27 = scalar_select %p243_p5, %s4434_s22, 1 }
  0x11   : > { %s5854_s26 = smov (!%p245_p6, %s3414_s26), 31  ;;  %s3419_s7 = sshll.u32 %s4430_s21, 3 }
  0x12   : > { %s3415_s28 = sshll.u32 %s244_s27, 5  ;;  %s3417_s29 = sshll.u32 %s244_s27, 1 }
  0x13   : > { %s248_s30 = sadd.s32 %s3415_s28, %s5854_s26  ;;  %s3420_s9 = sadd.s32 4294967295, %s3419_s7 }
  0x14   : > { %s3416_s8 = sshll.u32 %s248_s30, 2  ;;  %p271_p8 = scmp.gt.s32.totalorder %s3420_s9, 0 }
  0x15   : > { %s4529_s12 = scalar_lea.vmem %s5711_s4, %s3416_s8  ;;  %s273_s15 = sadd.s32 8, %s3419_s7 }
  0x16   : > { %s255_s13 = scalar_select %p254_p7, %s4430_s21, 1 }
  0x17   : > { %s5856_s9 = smov (!%p271_p8, %s3420_s9), 0  ;;  %p274_p9 = scmp.lt.s32.totalorder %s273_s15, 15 }
  0x18   : > { %s4532_s14 = sadd.s32 %s3417_s29, %s255_s13  ;;  %s3421_s27 = sshll.u32 %s5856_s9, 4 }
  0x19   : > { %s258_s18 = scalar_lea.vmem %s5712_s5, %s4532_s14  ;;  %s265_s26 = scalar_lea.vmem %s5713_s6, %s4532_s14 }
  0x1a   : > { %s3422_s28 = sshll.u32 %s4430_s21, 7  ;;  %s279_s30 = sshra.s32 %s3421_s27, 3 }
  0x1b   : > { %s5858_s15 = smov (!%p274_p9, %s273_s15), 15  ;;  %s4546_s29 = sshll.u32 %s4434_s22, 5 }
  0x1c   : > { %s3423_s8 = sshll.u32 %s5858_s15, 4  ;;  %s282_s7 = sadd.s32 %s4546_s29, %s279_s30 }
  0x1d   : > { %s3425_s10 = sshll.u32 %s282_s7, 2 }
  0x1e   : > { %s284_s16 = scalar_lea.vmem %s5707_s0, %s3425_s10 }
  0x1f   : > { %v318_v0 = vld [vmem:[%s284_s16] sm:$0xff] }
  0x20   : > { %319 = vst [vmem:[#allocation2] sm:$0xff] %v318_v0 }
  0x21   : > { %327 = vsyncadd [#allocation3], 128  ;;  %s328_s9 = sshra.s32 %s3422_s28, 3 }
  0x22   : > { %s330_s17 = sadd.s32 %s4546_s29, %s328_s9 }
  0x23   : > { %s3426_s19 = sshll.u32 %s330_s17, 2 }
  0x24   : > { %s332_s22 = scalar_lea.vmem %s5707_s0, %s3426_s19 }
  0x25   : > { %v368_v1 = vld [vmem:[%s332_s22] sm:$0xff]  ;;  %v370_v2 = vld [vmem:[%s332_s22 + $0x8] sm:$0xff]  ;;  %v372_v3 = vld [vmem:[%s332_s22 + $0x10] sm:$0xff] }
  0x26   : > { %369 = vst [vmem:[#allocation2 + $0x8] sm:$0xff] %v368_v1  ;;  %371 = vst [vmem:[#allocation2 + $0x10] sm:$0xff] %v370_v2  ;;  %v374_v4 = vld [vmem:[%s332_s22 + $0x18] sm:$0xff]  ;;  %v376_v5 = vld [vmem:[%s332_s22 + $0x20] sm:$0xff] }
  0x27   : > { %373 = vst [vmem:[#allocation2 + $0x18] sm:$0xff] %v372_v3  ;;  %v378_v6 = vld [vmem:[%s332_s22 + $0x28] sm:$0xff]  ;;  %375 = vst [vmem:[#allocation2 + $0x20] sm:$0xff] %v374_v4  ;;  %v380_v7 = vld [vmem:[%s332_s22 + $0x30] sm:$0xff] }
  0x28   : > { %377 = vst [vmem:[#allocation2 + $0x28] sm:$0xff] %v376_v5  ;;  %379 = vst [vmem:[#allocation2 + $0x30] sm:$0xff] %v378_v6  ;;  %v382_v8 = vld [vmem:[%s332_s22 + $0x38] sm:$0xff] }
  0x29   : > { %381 = vst [vmem:[#allocation2 + $0x38] sm:$0xff] %v380_v7  ;;  %383 = vst [vmem:[#allocation2 + $0x40] sm:$0xff] %v382_v8 }
  0x2a   : > { %391 = vsyncadd [#allocation3 + $0x1], 1024  ;;  %s392_s15 = sshra.s32 %s3423_s8, 3 }
  0x2b   : > { %s394_s28 = sadd.s32 %s4546_s29, %s392_s15 }
  0x2c   : > { %s3427_s30 = sshll.u32 %s394_s28, 2 }
  0x2d   : > { %s396_s11 = scalar_lea.vmem %s5707_s0, %s3427_s30 }
  0x2e   : > { %v432_v9 = vld [vmem:[%s396_s11] sm:$0xff] }
  0x2f   : > { %433 = vst [vmem:[#allocation2 + $0x48] sm:$0xff] %v432_v9 }
  0x30   : > { %441 = vsyncadd [#allocation3 + $0x2], 128 }
  0x31   : > { %4422 = dma.done.wait [#allocation3], 128 }
  0x32   : > { %4423 = vsyncadd [#allocation3], 4294967168 }
  0x33   : > { %4424 = dma.done.wait [#allocation3 + $0x1], 1024 }
  0x34   : > { %4425 = vsyncadd [#allocation3 + $0x1], 4294966272 }
  0x35   : > { %4426 = dma.done.wait [#allocation3 + $0x2], 128 }
  0x36   : > { %4427 = vsyncadd [#allocation3 + $0x2], 4294967168  ;;  %p3428_p10 = scmp.ne.s32.totalorder %s4430_s21, 0 }
  0x38   : > { %455 = sbr.rel (%p3428_p10) target bundleno = 63 (0x3f), region = 138 }
  0x3d   : > { %v4448_v10 = vmov 0  }
  0x3e   : > { %456 = vst [vmem:[#allocation2] sm:$0xf] %v4448_v10  ;;  %457 = vst [vmem:[#allocation2 + $0x4] sm:$0xf] %v4448_v10 }
  0x3f PF: > { %p3429_p11 = scmp.ne.s32.totalorder %s4430_s21, 1 }
  0x41   : > { %461 = sbr.rel (%p3429_p11) target bundleno = 72 (0x48), region = 142 }
  0x46   : > { %v4449_v11 = vmov 0  }
  0x47   : > { %462 = vst [vmem:[#allocation2 + $0x48] sm:$0xf] %v4449_v11  ;;  %463 = vst [vmem:[#allocation2 + $0x4c] sm:$0xf] %v4449_v11 }
  0x48 PF: > { %v4300_v12 = vld [vmem:[%s5710_s3 + $0x78] sm:$0xff]   ;;  %v464_v13 = vlaneseq  ;;  %v4302_v15 = vld [vmem:[%s5710_s3 + $0x70] sm:$0xff]   ;;  %v4304_v17 = vld [vmem:[%s5710_s3 + $0x68] sm:$0xff]   ;;  %vm5717_vm3 = vsmask.f32 256  ;;  %v4450_v40 = vmov 0  }
  0x49   : > { %v4301_v14 = vld [vmem:[%s5710_s3 + $0x38] sm:$0xff]   ;;  %3952 = vmatprep.subr.bf16.mxu0 %v4300_v12  ;;  %v4303_v16 = vld [vmem:[%s5710_s3 + $0x30] sm:$0xff]   ;;  %v4305_v19 = vld [vmem:[%s5710_s3 + $0x28] sm:$0xff]   ;;  %vm839_vm4 = vcmask 1040384   ;;  %vm4451_vm5 = vmmov 1   ;;  %v5742_v49 = vmov 0 }
  0x4a   : > { %3984 = vmatprep.subr.bf16.mxu1 %v4301_v14  ;;  %3953 = vmatpush3.bf16.msra.mxu0 %v4300_v12  ;;  %v4578_v18 = vshrl.u32 %v464_v13, 7  ;;  %v4306_v20 = vld [vmem:[%s5710_s3 + $0x60] sm:$0xff]   ;;  %v4308_v25 = vld [vmem:[%s5710_s3 + $0x58] sm:$0xff]   ;;  %v4310_v29 = vld [vmem:[%s5710_s3 + $0x50] sm:$0xff]   ;;  %v5736_v12 = vmov 0 }
  0x4b   : > { %3985 = vmatpush3.bf16.msra.mxu1 %v4301_v14  ;;  %3954 = vmatprep.subr.bf16.mxu0 %v4302_v15  ;;  %v4307_v22 = vld [vmem:[%s5710_s3 + $0x20] sm:$0xff]   ;;  %v4309_v27 = vld [vmem:[%s5710_s3 + $0x18] sm:$0xff]   ;;  %v4311_v31 = vld [vmem:[%s5710_s3 + $0x10] sm:$0xff]  }
  0x4c   : > { %3986 = vmatprep.subr.bf16.mxu1 %v4303_v16  ;;  %v467_v21 = vadd.s32 16, %v4578_v18  ;;  %v485_v23 = vand.u32 15, %v4578_v18  ;;  %v469_v24 = vadd.s32 32, %v4578_v18  ;;  %v471_v28 = vadd.s32 48, %v4578_v18  ;;  %v4609_v33 = vld [vmem:[#allocation2] sm:$0xf]  ;;  %vm875_vm6 = vmpackc.low %vm4451_vm5, %vm4451_vm5 }
  0x4d   : > { %v706_v34 = vld [vmem:[#allocation2 + $0x4] sm:$0xf]  ;;  %v4611_v35 = vld [vmem:[#allocation2 + $0x3c] sm:$0xf]  ;;  %v4626_v42 = vld [vmem:[#allocation2 + $0x8] sm:$0xff]   ;;  %v4635_v47 = vsel %vm875_vm6, 65537, %v4450_v40 }
  0x4e   : > { %3955 = vmatpush3.bf16.msra.mxu0 %v4302_v15  ;;  %v499_v26 = vand.u32 15, %v467_v21  ;;  %vm4602_vm0 = vcmp.ne.s32.totalorder %v485_v23, 0  ;;  %v513_v32 = vand.u32 15, %v469_v24  ;;  %v4614_v36 = vcombine.low %v4609_v33, %v706_v34  ;;  %v4312_v46 = vld [vmem:[%s5710_s3 + $0x48] sm:$0xff]   ;;  %v4314_v54 = vld [vmem:[%s5710_s3 + $0x40] sm:$0xff]   ;;  %vm4656_vm9 = vmand %vm839_vm4, %vm5717_vm3 }
  0x4f   : > { %3987 = vmatpush3.bf16.msra.mxu1 %v4303_v16  ;;  %3956 = vmatprep.subr.bf16.mxu0 %v4304_v17  ;;  %v3430_v37 = vcombine.low %v4611_v35, %v4611_v35  ;;  %vm874_vm1 = vmpackc.low %vm4602_vm0, %vm4602_vm0  ;;  %v527_v39 = vand.u32 15, %v471_v28  ;;  %v776_v48 = vshrl.u32 %v4626_v42, 16  ;;  %v4313_v50 = vld [vmem:[%s5710_s3 + $0x8] sm:$0xff]   ;;  %v779_v56 = vshll.u32 %v4626_v42, 16  ;;  %v4315_v60 = vld [vmem:[%s5710_s3] sm:$0xff]  }
  0x50   : > { %3988 = vmatprep.subr.bf16.mxu1 %v4305_v19  ;;  %vm4621_vm2 = vcmp.ne.s32.totalorder %v499_v26, 0  ;;  %v890_v41 = vsel %vm874_vm1, 65537, %v4450_v40  ;;  %v769_v43 = vshrl.u32 %v4614_v36, 16  ;;  %3968 = vmatprep.mubr.bf16.mxu0 %v4614_v36  ;;  %v772_v45 = vshll.u32 %v4614_v36, 16  ;;  %v4684_v2 = vld [vmem:[#allocation2 + $0x10] sm:$0xff]   ;;  %v4686_v3 = vld [vmem:[#allocation2 + $0x18] sm:$0xff]  }
  0x51   : > { %v725_v44 = vshrl.u32 %v3430_v37, 16  ;;  %vm876_vm7 = vmpackc.low %vm4621_vm2, %vm4621_vm2  ;;  %vm4641_vm8 = vcmp.ne.s32.totalorder %v513_v32, 0  ;;  %v3439_v53 = vcombine.low %v890_v41, %v4635_v47  ;;  %vm4662_vm10 = vcmp.ne.s32.totalorder %v527_v39, 0  ;;  %v4320_v10 = vld [vmem:[%s5710_s3 + $0xb8] sm:$0xff]   ;;  %v4322_v16 = vld [vmem:[%s5710_s3 + $0xb0] sm:$0xff]  }
  0x52   : > { %3957 = vmatpush3.bf16.msra.mxu0 %v4304_v17  ;;  %v771_v52 = vrot.slane %v769_v43, 7  ;;  %v892_v57 = vsel %vm876_vm7, 65537, %v4450_v40  ;;  %v473_v59 = vadd.s32 64, %v4578_v18  ;;  %v778_v63 = vrot.slane %v776_v48, 7  ;;  %vm878_vm12 = vmpackc.low %vm4641_vm8, %vm4641_vm8  ;;  %v4321_v13 = vld [vmem:[%s5710_s3 + $0xf8] sm:$0xff]   ;;  %v4323_v21 = vld [vmem:[%s5710_s3 + $0xf0] sm:$0xff]  }
  0x53   : > { %3989 = vmatpush3.bf16.msra.mxu1 %v4305_v19  ;;  %3958 = vmatprep.subr.bf16.mxu0 %v4306_v20  ;;  %v727_v51 = vrot.slane %v725_v44, 3  ;;  %vm4672_vm11 = vcmp.ne.s16.totalorder %v3439_v53, 0  ;;  %v3440_v1 = vcombine.low %v892_v57, %v4635_v47  ;;  %vm880_vm13 = vmpackc.low %vm4662_vm10, %vm4662_vm10  ;;  %v784_v5 = vshrl.u32 %v4684_v2, 16  ;;  %v4733_v24 = vld [vmem:[#allocation2 + $0x20] sm:$0xff]   ;;  %v4736_v26 = vld [vmem:[#allocation2 + $0x28] sm:$0xff]  }
  0x54   : > { %3990 = vmatprep.subr.bf16.mxu1 %v4307_v22  ;;  %v774_v61 = vor.u32 %v772_v45, %v771_v52  ;;  %v541_v4 = vand.u32 15, %v473_v59  ;;  %v787_v6 = vshll.u32 %v4684_v2, 16  ;;  %v894_v7 = vsel %vm878_vm12, 65537, %v4450_v40  ;;  %v4326_v34 = vld [vmem:[%s5710_s3 + $0xa8] sm:$0xff]   ;;  %v4790_v58 = vld [vmem:[#allocation2 + $0x30] sm:$0xff]   ;;  %v4388_v55 = vld [vmem:[%s5710_s3 + $0x238] sm:$0xff]  }
  0x55   : > { %v792_v8 = vshrl.u32 %v4686_v3, 16  ;;  %v781_v9 = vor.u32 %v779_v56, %v778_v63  ;;  %v475_v11 = vadd.s32 80, %v4578_v18  ;;  %vm4703_vm14 = vcmp.ne.s16.totalorder %v3440_v1, 0  ;;  %v4329_v1 = vld [vmem:[%s5710_s3 + $0xe0] sm:$0xff]   ;;  %v4389_v62 = vld [vmem:[%s5710_s3 + $0x230] sm:$0xff]  }
  0x56   : > { %3959 = vmatpush3.bf16.msra.mxu0 %v4306_v20  ;;  %v841_v0 = vsel %vm4656_vm9, %v727_v51, %v774_v61  ;;  %v5737_v12 = vsel %vm4703_vm14, 4294967295, %v5736_v12  ;;  %v786_v14 = vrot.slane %v784_v5, 7  ;;  %v896_v15 = vsel %vm880_vm13, 65537, %v4450_v40 }
  0x57   : > { %3991 = vmatpush3.bf16.msra.mxu1 %v4307_v22  ;;  %3960 = vmatprep.subr.bf16.mxu0 %v4308_v25  ;;  %v3441_v17 = vcombine.low %v894_v7, %v4635_v47  ;;  %v795_v19 = vshll.u32 %v4686_v3, 16  ;;  %v4725_v20 = vrot.slane %v792_v8, 7  ;;  %v782_v23 = vsel %vm5717_vm3, %v771_v52, %v781_v9  ;;  %v4328_v52 = vld [vmem:[%s5710_s3 + $0xa0] sm:$0xff]  }
  0x58   : > { %3992 = vmatprep.subr.bf16.mxu1 %v4309_v27  ;;  %4000 = vmatprep.mubr.msk.bf16.mxu1 %vm4672_vm11, %v841_v0  ;;  %v789_v22 = vor.u32 %v787_v6, %v786_v14  ;;  %vm681_vm15 = vcmp.ne.s32.totalorder %v541_v4, 0  ;;  %v477_v28 = vadd.s32 96, %v4578_v18  ;;  %v800_v30 = vshrl.u32 %v4733_v24, 16  ;;  %v719_v0 = vld [vmem:[#allocation2 + $0x38] sm:$0xf] }
  0x59   : > { %vm882_vm0 = vmpackc.low %vm681_vm15, %vm681_vm15  ;;  %vm4740_vm1 = vcmp.ne.s16.totalorder %v3441_v17, 0  ;;  %v803_v37 = vshll.u32 %v4733_v24, 16  ;;  %v808_v38 = vshrl.u32 %v4736_v26, 16  ;;  %v797_v41 = vor.u32 %v795_v19, %v4725_v20 }
  0x5a   : > { %3961 = vmatpush3.bf16.msra.mxu0 %v4308_v25  ;;  %v3442_v25 = vcombine.low %v896_v15, %v4635_v47  ;;  %v790_v32 = vsel %vm5717_vm3, %v778_v63, %v789_v22  ;;  %v4763_v44 = vrot.slane %v800_v30, 7  ;;  %v811_v53 = vshll.u32 %v4736_v26, 16  ;;  %v4333_v22 = vld [vmem:[%s5710_s3 + $0xd8] sm:$0xff]  }
  0x5b   : > { %3993 = vmatpush3.bf16.msra.mxu1 %v4309_v27  ;;  %3962 = vmatprep.subr.bf16.mxu0 %v4310_v29  ;;  %v555_v27 = vand.u32 15, %v475_v11  ;;  %v479_v59 = vadd.s32 112, %v4578_v18  ;;  %v810_v61 = vrot.slane %v808_v38, 7  ;;  %v5746_v4 = vmov 0 }
  0x5c   : > { %3994 = vmatprep.subr.bf16.mxu1 %v4311_v31  ;;  %vm4766_vm4 = vcmp.ne.s16.totalorder %v3442_v25, 0  ;;  %v805_v57 = vor.u32 %v803_v37, %v4763_v44  ;;  %v816_v7 = vshrl.u32 %v4790_v58, 16  ;;  %v466_v9 = vadd.s32 8, %v4578_v18  ;;  %v4334_v25 = vld [vmem:[%s5710_s3 + $0x90] sm:$0xff]  }
  0x5d   : > { %vm4754_vm2 = vcmp.ne.s32.totalorder %v555_v27, 0  ;;  %v5743_v49 = vsel %vm4766_vm4, 4294967295, %v5742_v49  ;;  %v4812_v11 = vcombine.low %v719_v0, %v4611_v35  ;;  %v813_v17 = vor.u32 %v811_v53, %v810_v61 }
  0x5e   : > { %3963 = vmatpush3.bf16.msra.mxu0 %v4310_v29  ;;  %v5738_v29 = vmov 0  ;;  %vm884_vm5 = vmpackc.low %vm4754_vm2, %vm4754_vm2 }
  0x5f   : > { %3995 = vmatpush3.bf16.msra.mxu1 %v4311_v31  ;;  %3964 = vmatprep.subr.bf16.mxu0 %v4312_v46  ;;  %v5739_v29 = vsel %vm4740_vm1, 4294967295, %v5738_v29  ;;  %v898_v31 = vsel %vm882_vm0, 65537, %v4450_v40  ;;  %v900_v63 = vsel %vm884_vm5, 65537, %v4450_v40 }
  0x60   : > { %3996 = vmatprep.subr.bf16.mxu1 %v4313_v50  ;;  %v3443_v51 = vcombine.low %v898_v31, %v4635_v47  ;;  %v3444_v15 = vcombine.low %v900_v63, %v4635_v47  ;;  %v4335_v63 = vld [vmem:[%s5710_s3 + $0xd0] sm:$0xff]  }
  0x62   : > { %3965 = vmatpush3.bf16.msra.mxu0 %v4312_v46  ;;  %v569_v46 = vand.u32 15, %v477_v28  ;;  %vm4803_vm8 = vcmp.ne.s16.totalorder %v3443_v51, 0  ;;  %vm4852_vm13 = vcmp.ne.s16.totalorder %v3444_v15, 0  ;;  %v4861_v51 = vld [vmem:[#allocation2 + $0x10] sm:$0xff]  }
  0x63   : > { %3997 = vmatpush3.bf16.msra.mxu1 %v4313_v50  ;;  %3966 = vmatprep.subr.bf16.mxu0 %v4314_v54  ;;  %v4327_v50 = vld [vmem:[%s5710_s3 + $0xe8] sm:$0xff]   ;;  %v5747_v4 = vsel %vm4803_vm8, 4294967295, %v5746_v4 }
  0x64   : > { %3998 = vmatprep.subr.bf16.mxu1 %v4315_v60  ;;  %vm4783_vm6 = vcmp.ne.s32.totalorder %v569_v46, 0  ;;  %v4340_v46 = vld [vmem:[%s5710_s3 + $0x80] sm:$0xff]  }
  0x65   : > { %vm886_vm7 = vmpackc.low %vm4783_vm6, %vm4783_vm6 }
  0x66   : > { %3967 = vmatpush3.bf16.msra.mxu0 %v4314_v54  ;;  %v902_v35 = vsel %vm886_vm7, 65537, %v4450_v40  ;;  %v814_v54 = vsel %vm5717_vm3, %v4763_v44, %v813_v17  ;;  %vm5720_vm7 = vsmask.f32 7424 }
  0x67   : > { %3999 = vmatpush3.bf16.msra.mxu1 %v4315_v60  ;;  %4016 = vmatprep.subr.bf16.mxu0 %v4320_v10  ;;  %v798_v60 = vsel %vm5717_vm3, %v786_v14, %v797_v41  ;;  %v806_v14 = vsel %vm5717_vm3, %v4725_v20, %v805_v57  ;;  %v4332_v20 = vld [vmem:[%s5710_s3 + $0x98] sm:$0xff]   ;;  %v3445_v28 = vcombine.low %v902_v35, %v4635_v47  ;;  %v827_v41 = vshll.u32 %v4812_v11, 16  ;;  %v4870_v57 = vld [vmem:[#allocation2 + $0x44] sm:$0xf] }
  0x68   : > { %4048 = vmatprep.subr.bf16.mxu1 %v4321_v13  ;;  %v3528_v0 = vcombine.low %v4870_v57, %v4870_v57 }
  0x69   : > { %3969 = vmatmul.mubr.bf16.vlgmr.msra.gmra.mxu0 %v4626_v42  ;;  %vm4885_vm2 = vcmp.ne.s16.totalorder %v3445_v28, 0 }
  0x6a   : > { %4001 = vmatmul.mubr.msk.bf16.vlgmr.msra.gmra.mxu1 %vm4703_vm14, %v782_v23  ;;  %4017 = vmatpush3.bf16.msra.mxu0 %v4320_v10  ;;  %v819_v10 = vshll.u32 %v4790_v58, 16  ;;  %v492_v23 = vand.u32 15, %v466_v9  ;;  %v1620_v15 = vshrl.u32 %v3528_v0, 16  ;;  %v4949_v0 = vld [vmem:[#allocation2 + $0x18] sm:$0xff]  }
  0x6b   : > { %4049 = vmatpush3.bf16.msra.mxu1 %v4321_v13  ;;  %4018 = vmatprep.subr.bf16.mxu0 %v4322_v16  ;;  %v583_v13 = vand.u32 15, %v479_v59 }
  0x6c   : > { %4050 = vmatprep.subr.bf16.mxu1 %v4323_v21  ;;  %3972 = vmatprep.mubr.bf16.mxu0 %v4684_v2  ;;  %vm4857_vm15 = vcmp.ne.s32.totalorder %v492_v23, 15  ;;  %v5716_v23 = vshrl.u32 %v4861_v51, 16 }
  0x6d   : > { %4004 = vmatprep.mubr.msk.bf16.mxu1 %vm4740_vm1, %v790_v32  ;;  %vm687_vm10 = vcmp.ne.s32.totalorder %v583_v13, 0  ;;  %v4849_v32 = vld [vmem:[#allocation2 + $0x8] sm:$0xf]  ;;  %vm1351_vm0 = vmpackc.low %vm4857_vm15, %vm4857_vm15  ;;  %v4400_v13 = vld [vmem:[%s5710_s3 + $0x200] sm:$0xff]  }
  0x6e   : > { %4019 = vmatpush3.bf16.msra.mxu0 %v4322_v16  ;;  %v4821_v16 = vrot.slane %v816_v7, 7  ;;  %vm888_vm12 = vmpackc.low %vm687_vm10, %vm687_vm10 }
  0x6f   : > { %4051 = vmatpush3.bf16.msra.mxu1 %v4323_v21  ;;  %4020 = vmatprep.subr.bf16.mxu0 %v4326_v34  ;;  %v824_v21 = vshrl.u32 %v4812_v11, 16  ;;  %v904_v31 = vsel %vm888_vm12, 65537, %v4450_v40 }
  0x70   : > { %4052 = vmatprep.subr.bf16.mxu1 %v4327_v50  ;;  %v821_v27 = vor.u32 %v819_v10, %v4821_v16  ;;  %v3446_v44 = vcombine.low %v904_v31, %v4635_v47  ;;  %v1280_v31 = vrot.slane %v779_v56, 1  ;;  %v4341_v56 = vld [vmem:[%s5710_s3 + $0xc0] sm:$0xff]  }
  0x71   : > { %3973 = vmatmul.mubr.bf16.gmra.mxu0 %v4686_v3 }
  0x72   : > { %4005 = vmatmul.mubr.msk.bf16.gmra.mxu1 %vm4766_vm4, %v798_v60  ;;  %4021 = vmatpush3.bf16.msra.mxu0 %v4326_v34  ;;  %v468_v34 = vadd.s32 24, %v4578_v18  ;;  %v1278_v60 = vrot.slane %v772_v45, 1  ;;  %v822_v9 = vsel %vm5717_vm3, %v810_v61, %v821_v27  ;;  %vm4908_vm10 = vcmp.ne.s16.totalorder %v3446_v44, 0 }
  0x73   : > { %4053 = vmatpush3.bf16.msra.mxu1 %v4327_v50  ;;  %4022 = vmatprep.subr.bf16.mxu0 %v4328_v52  ;;  %v1601_v50 = vld [vmem:[#allocation2 + $0xc] sm:$0xf]  ;;  %v4947_v44 = vrot.slane %v5716_v23, 7  ;;  %v1283_v45 = vrot.slane %v787_v6, 1  ;;  %v5714_v6 = vshrl.u32 %v4949_v0, 16 }
  0x74   : > { %4054 = vmatprep.subr.bf16.mxu1 %v4329_v1  ;;  %3976 = vmatprep.mubr.bf16.mxu0 %v4733_v24  ;;  %v506_v59 = vand.u32 15, %v468_v34  ;;  %v1279_v28 = vor.u32 %v1278_v60, %v769_v43  ;;  %v470_v43 = vadd.s32 40, %v4578_v18 }
  0x75   : > { %4008 = vmatprep.mubr.msk.bf16.mxu1 %vm4803_vm8, %v806_v14  ;;  %v1367_v14 = vsel %vm1351_vm0, 65537, %v4450_v40 }
  0x76   : > { %4023 = vmatpush3.bf16.msra.mxu0 %v4328_v52  ;;  %v826_v52 = vrot.slane %v824_v21, 7  ;;  %vm4889_vm5 = vcmp.ne.s32.totalorder %v506_v59, 15  ;;  %v1673_v59 = vshll.u32 %v4861_v51, 16 }
  0x77   : > { %4055 = vmatpush3.bf16.msra.mxu1 %v4329_v1  ;;  %4024 = vmatprep.subr.bf16.mxu0 %v4332_v20  ;;  %v4881_v1 = vcombine.low %v4849_v32, %v1601_v50  ;;  %vm1353_vm6 = vmpackc.low %vm4889_vm5, %vm4889_vm5  ;;  %v3488_v50 = vcombine.low %v4635_v47, %v1367_v14  ;;  %v1281_v14 = vsel %vm5720_vm7, %v1279_v28, %v1280_v31  ;;  %v474_v28 = vadd.s32 72, %v4578_v18 }
  0x78   : > { %4056 = vmatprep.subr.bf16.mxu1 %v4333_v22  ;;  %v829_v61 = vor.u32 %v827_v41, %v826_v52  ;;  %v1369_v36 = vsel %vm1353_vm6, 65537, %v4450_v40 }
  0x79   : > { %3977 = vmatmul.mubr.bf16.gmra.mxu0 %v4736_v26  ;;  %v1663_v35 = vshrl.u32 %v4881_v1, 16  ;;  %v1666_v17 = vshll.u32 %v4881_v1, 16  ;;  %vm4961_vm12 = vcmp.ne.s16.totalorder %v3488_v50, 0 }
  0x7a   : > { %4009 = vmatmul.mubr.msk.bf16.gmra.mxu1 %vm4852_vm13, %v814_v54  ;;  %4025 = vmatpush3.bf16.msra.mxu0 %v4332_v20  ;;  %v4338_v20 = vld [vmem:[%s5710_s3 + $0x88] sm:$0xff]   ;;  %v1622_v54 = vrot.slane %v1620_v15, 3  ;;  %v830_v60 = vsel %vm5717_vm3, %v4821_v16, %v829_v61  ;;  %v3489_v16 = vcombine.low %v4635_v47, %v1369_v36  ;;  %v4958_v15 = vld [vmem:[#allocation2 + $0x20] sm:$0xff]   ;;  %v1675_v36 = vor.u32 %v1673_v59, %v4947_v44 }
  0x7b   : > { %4057 = vmatpush3.bf16.msra.mxu1 %v4333_v22  ;;  %4026 = vmatprep.subr.bf16.mxu0 %v4334_v25  ;;  %v4339_v22 = vld [vmem:[%s5710_s3 + $0xc8] sm:$0xff]   ;;  %v4921_v34 = vrot.slane %v1663_v35, 7  ;;  %v5715_v50 = vshrl.u32 %v4958_v15, 16 }
  0x7c   : > { %4058 = vmatprep.subr.bf16.mxu1 %v4335_v63  ;;  %3980 = vmatprep.mubr.bf16.mxu0 %v4790_v58  ;;  %vm4996_vm5 = vcmp.ne.s16.totalorder %v3489_v16, 0 }
  0x7d   : > { %4012 = vmatprep.mubr.msk.bf16.mxu1 %vm4885_vm2, %v822_v9  ;;  %v1668_v52 = vor.u32 %v1666_v17, %v4921_v34  ;;  %v472_v9 = vadd.s32 56, %v4578_v18 }
  0x7e   : > { %4027 = vmatpush3.bf16.msra.mxu0 %v4334_v25  ;;  %v520_v25 = vand.u32 15, %v470_v43  ;;  %v4348_v43 = vld [vmem:[%s5710_s3 + $0x130] sm:$0xff]  }
  0x7f   : > { %4059 = vmatpush3.bf16.msra.mxu1 %v4335_v63  ;;  %4028 = vmatprep.subr.bf16.mxu0 %v4338_v20  ;;  %v1282_v63 = vor.u32 %v1280_v31, %v776_v48  ;;  %v1733_v42 = vsel %vm4656_vm9, %v1622_v54, %v1668_v52  ;;  %v1681_v48 = vshll.u32 %v4949_v0, 16  ;;  %v534_v31 = vand.u32 15, %v472_v9  ;;  %v4347_v54 = vld [vmem:[%s5710_s3 + $0x178] sm:$0xff]  }
  0x80   : > { %4060 = vmatprep.subr.bf16.mxu1 %v4339_v22  ;;  %vm4965_vm15 = vcmp.ne.s32.totalorder %v520_v25, 15  ;;  %v1285_v25 = vor.u32 %v1283_v45, %v784_v5 }
  0x81   : > { %3981 = vmatmul.mubr.bf16.gmra.mxu0 %v4812_v11  ;;  %vm1355_vm0 = vmpackc.low %vm4965_vm15, %vm4965_vm15  ;;  %vm696_vm6 = vcmp.ne.s32.totalorder %v534_v31, 15  ;;  %v1284_v9 = vsel %vm5720_vm7, %v1282_v63, %v1283_v45  ;;  %v5017_v45 = vrot.slane %v5715_v50, 7  ;;  %v1689_v63 = vshll.u32 %v4958_v15, 16  ;;  %v4364_v11 = vld [vmem:[%s5710_s3 + $0x148] sm:$0xff]  }
  0x82   : > { %4013 = vmatmul.mubr.msk.bf16.gmra.mxu1 %vm4908_vm10, %v830_v60  ;;  %4029 = vmatpush3.bf16.msra.mxu0 %v4338_v20  ;;  %v4346_v20 = vld [vmem:[%s5710_s3 + $0x138] sm:$0xff]   ;;  %v1371_v52 = vsel %vm1355_vm0, 65537, %v4450_v40  ;;  %v4992_v60 = vrot.slane %v5714_v6, 7  ;;  %vm1357_vm15 = vmpackc.low %vm696_vm6, %vm696_vm6  ;;  %v548_v6 = vand.u32 15, %v474_v28  ;;  %v4349_v28 = vld [vmem:[%s5710_s3 + $0x170] sm:$0xff]   ;;  %v1289_v31 = vrot.slane %v803_v37, 1 }
  0x83   : > { %4061 = vmatpush3.bf16.msra.mxu1 %v4339_v22  ;;  %4030 = vmatprep.subr.bf16.mxu0 %v4340_v46  ;;  %v3490_v16 = vcombine.low %v4635_v47, %v1371_v52  ;;  %v1373_v5 = vsel %vm1357_vm15, 65537, %v4450_v40  ;;  %v476_v50 = vadd.s32 88, %v4578_v18 }
  0x84   : > { %4062 = vmatprep.subr.bf16.mxu1 %v4341_v56  ;;  %4032 = vmatprep.mubr.msk.bf16.mxu0 %vm4961_vm12, %v1281_v14  ;;  %v1286_v14 = vrot.slane %v795_v19, 1  ;;  %v1683_v2 = vor.u32 %v1681_v48, %v4992_v60  ;;  %v1676_v19 = vsel %vm5717_vm3, %v4921_v34, %v1675_v36  ;;  %vm698_vm0 = vcmp.ne.s32.totalorder %v548_v6, 15  ;;  %v1614_v34 = vld [vmem:[#allocation2 + $0x40] sm:$0xf] }
  0x85   : > { %4064 = vmatprep.mubr.msk.bf16.mxu1 %vm4672_vm11, %v1733_v42  ;;  %v5020_v42 = vld [vmem:[#allocation2 + $0x28] sm:$0xff]   ;;  %v3491_v52 = vcombine.low %v4635_v47, %v1373_v5  ;;  %vm1359_vm6 = vmpackc.low %vm698_vm0, %vm698_vm0  ;;  %vm5037_vm15 = vcmp.ne.s16.totalorder %v3490_v16, 0 }
  0x86   : > { %4031 = vmatpush3.bf16.msra.mxu0 %v4340_v46  ;;  %v5024_v46 = vld [vmem:[#allocation2 + $0x30] sm:$0xff]   ;;  %v1287_v6 = vsel %vm5720_vm7, %v1285_v25, %v1286_v14  ;;  %v1288_v37 = vor.u32 %v1286_v14, %v792_v8  ;;  %v1375_v5 = vsel %vm1359_vm6, 65537, %v4450_v40  ;;  %v1684_v23 = vsel %vm5717_vm3, %v4947_v44, %v1683_v2  ;;  %v4352_v25 = vld [vmem:[%s5710_s3 + $0x128] sm:$0xff]  }
  0x87   : > { %4063 = vmatpush3.bf16.msra.mxu1 %v4341_v56  ;;  %4080 = vmatprep.subr.bf16.mxu0 %v4346_v20  ;;  %v5719_v56 = vshrl.u32 %v5020_v42, 16  ;;  %v1697_v3 = vshll.u32 %v5020_v42, 16  ;;  %v562_v8 = vand.u32 15, %v476_v50  ;;  %v1291_v44 = vor.u32 %v1289_v31, %v800_v30  ;;  %v5074_v30 = vld [vmem:[#allocation2 + $0x38] sm:$0xff]  }
  0x88   : > { %4112 = vmatprep.subr.bf16.mxu1 %v4347_v54  ;;  %v1292_v14 = vrot.slane %v811_v53, 1  ;;  %v1702_v16 = vshrl.u32 %v5024_v46, 16  ;;  %vm5066_vm0 = vcmp.ne.s16.totalorder %v3491_v52, 0  ;;  %v3492_v24 = vcombine.low %v4635_v47, %v1375_v5 }
  0x89   : > { %4033 = vmatmul.mubr.msk.bf16.vlgmr.msra.gmra.mxu0 %vm4996_vm5, %v1284_v9  ;;  %v5053_v9 = vrot.slane %v5719_v56, 7  ;;  %vm700_vm6 = vcmp.ne.s32.totalorder %v562_v8, 15  ;;  %v3487_v53 = vcombine.low %v4609_v33, %v4609_v33  ;;  %v5079_v2 = vcombine.low %v1614_v34, %v4870_v57 }
  0x8a   : > { %4065 = vmatmul.mubr.msk.bf16.vlgmr.msra.gmra.mxu1 %vm4703_vm14, %v1676_v19  ;;  %4081 = vmatpush3.bf16.msra.mxu0 %v4346_v20  ;;  %v1691_v20 = vor.u32 %v1689_v63, %v5017_v45  ;;  %v4354_v19 = vld [vmem:[%s5710_s3 + $0x120] sm:$0xff]   ;;  %vm1361_vm3 = vmpackc.low %vm700_vm6, %vm700_vm6  ;;  %v1705_v52 = vshll.u32 %v5024_v46, 16  ;;  %v1290_v5 = vsel %vm5720_vm7, %v1288_v37, %v1289_v31  ;;  %v1293_v8 = vsel %vm5720_vm7, %v1291_v44, %v1292_v14 }
  0x8b   : > { %4113 = vmatpush3.bf16.msra.mxu1 %v4347_v54  ;;  %4082 = vmatprep.subr.bf16.mxu0 %v4348_v43  ;;  %v4353_v54 = vld [vmem:[%s5710_s3 + $0x168] sm:$0xff]   ;;  %v1699_v33 = vor.u32 %v1697_v3, %v5053_v9  ;;  %v1377_v57 = vsel %vm1361_vm3, 65537, %v4450_v40  ;;  %v4355_v31 = vld [vmem:[%s5710_s3 + $0x160] sm:$0xff]   ;;  %vm5102_vm6 = vcmp.ne.s16.totalorder %v3492_v24, 0 }
  0x8c   : > { %4114 = vmatprep.subr.bf16.mxu1 %v4349_v28  ;;  %4036 = vmatprep.mubr.msk.bf16.mxu0 %vm5037_vm15, %v1287_v6  ;;  %v478_v6 = vadd.s32 104, %v4578_v18  ;;  %v3493_v44 = vcombine.low %v4635_v47, %v1377_v57 }
  0x8d   : > { %4068 = vmatprep.mubr.msk.bf16.mxu1 %vm4740_vm1, %v1684_v23  ;;  %v1710_v23 = vshrl.u32 %v5074_v30, 16  ;;  %vm5768_vm1 = vsmask.f32 256 }
  0x8e   : > { %4083 = vmatpush3.bf16.msra.mxu0 %v4348_v43  ;;  %v1692_v34 = vsel %vm5768_vm1, %v4992_v60, %v1691_v20  ;;  %v1704_v43 = vrot.slane %v1702_v16, 7  ;;  %v576_v56 = vand.u32 15, %v478_v6  ;;  %v1295_v60 = vrot.slane %v819_v10, 1 }
  0x8f   : > { %4115 = vmatpush3.bf16.msra.mxu1 %v4349_v28  ;;  %4084 = vmatprep.subr.bf16.mxu0 %v4352_v25  ;;  %v1294_v28 = vor.u32 %v1292_v14, %v808_v38  ;;  %v480_v20 = vadd.s32 120, %v4578_v18  ;;  %v5116_v24 = vrot.slane %v1710_v23, 7  ;;  %v1713_v6 = vshll.u32 %v5074_v30, 16  ;;  %v4358_v14 = vld [vmem:[%s5710_s3 + $0x118] sm:$0xff]  }
  0x90   : > { %4116 = vmatprep.subr.bf16.mxu1 %v4353_v54  ;;  %vm702_vm3 = vcmp.ne.s32.totalorder %v576_v56, 15  ;;  %v1700_v26 = vsel %vm5768_vm1, %v5017_v45, %v1699_v33  ;;  %v1718_v38 = vshrl.u32 %v5079_v2, 16  ;;  %v1311_v10 = vshll.u32 %v3487_v53, 16 }
  0x91   : > { %4037 = vmatmul.mubr.msk.bf16.gmra.mxu0 %vm5066_vm0, %v1290_v5  ;;  %vm1363_vm7 = vmpackc.low %vm702_vm3, %vm702_vm3  ;;  %v590_v18 = vand.u32 15, %v480_v20  ;;  %v1707_v56 = vor.u32 %v1705_v52, %v1704_v43  ;;  %vm5771_vm3 = vsmask.f32 7424  ;;  %v1297_v53 = vor.u32 %v1295_v60, %v816_v7 }
  0x92   : > { %4069 = vmatmul.mubr.msk.bf16.gmra.mxu1 %vm4766_vm4, %v1692_v34  ;;  %4085 = vmatpush3.bf16.msra.mxu0 %v4352_v25  ;;  %v1379_v5 = vsel %vm1363_vm7, 65537, %v4450_v40  ;;  %v1296_v45 = vsel %vm5771_vm3, %v1294_v28, %v1295_v60  ;;  %v4359_v25 = vld [vmem:[%s5710_s3 + $0x158] sm:$0xff]   ;;  %vm5138_vm4 = vcmp.ne.s16.totalorder %v3493_v44, 0  ;;  %v1298_v33 = vrot.slane %v827_v41, 1  ;;  %v4360_v34 = vld [vmem:[%s5710_s3 + $0x110] sm:$0xff]   ;;  %v4363_v44 = vld [vmem:[%s5710_s3 + $0x108] sm:$0xff]  }
  0x93   : > { %4117 = vmatpush3.bf16.msra.mxu1 %v4353_v54  ;;  %4086 = vmatprep.subr.bf16.mxu0 %v4354_v19  ;;  %vm704_vm1 = vcmp.ne.s32.totalorder %v590_v18, 15  ;;  %v3494_v57 = vcombine.low %v4635_v47, %v1379_v5  ;;  %v1720_v58 = vrot.slane %v1718_v38, 7  ;;  %v1721_v7 = vshll.u32 %v5079_v2, 16  ;;  %v4361_v60 = vld [vmem:[%s5710_s3 + $0x150] sm:$0xff]   ;;  %v4365_v5 = vld [vmem:[%s5710_s3 + $0x100] sm:$0xff]  }
  0x94   : > { %4118 = vmatprep.subr.bf16.mxu1 %v4355_v31  ;;  %4040 = vmatprep.mubr.msk.bf16.mxu0 %vm5102_vm6, %v1293_v8  ;;  %vm1365_vm7 = vmpackc.low %vm704_vm1, %vm704_vm1  ;;  %v1715_v8 = vor.u32 %v1713_v6, %v5116_v24  ;;  %vm5774_vm3 = vsmask.f32 256  ;;  %vm1315_vm1 = vcmask 1047552   ;;  %v1313_v20 = vrot.slane %v1311_v10, 1 }
  0x95   : > { %4072 = vmatprep.mubr.msk.bf16.mxu1 %vm4803_vm8, %v1700_v26  ;;  %v1381_v28 = vsel %vm1365_vm7, 65537, %v4450_v40  ;;  %v1708_v41 = vsel %vm5774_vm3, %v5053_v9, %v1707_v56  ;;  %vm5775_vm7 = vsmask.f32 7424  ;;  %vm5166_vm8 = vcmp.ne.s16.totalorder %v3494_v57, 0 }
  0x96   : > { %4087 = vmatpush3.bf16.msra.mxu0 %v4354_v19  ;;  %v3495_v19 = vcombine.low %v4635_v47, %v1381_v28  ;;  %v1299_v40 = vsel %vm5775_vm7, %v1297_v53, %v1298_v33  ;;  %v1716_v47 = vsel %vm5774_vm3, %v1704_v43, %v1715_v8  ;;  %v1300_v9 = vor.u32 %v1298_v33, %v824_v21  ;;  %vm5181_vm14 = vmand %vm1315_vm1, %vm5775_vm7  ;;  %v4367_v53 = vld [vmem:[%s5710_s3 + $0x1b8] sm:$0xff]   ;;  %v4370_v28 = vld [vmem:[%s5710_s3 + $0x1f0] sm:$0xff]  }
  0x97   : > { %4119 = vmatpush3.bf16.msra.mxu1 %v4355_v31  ;;  %4088 = vmatprep.subr.bf16.mxu0 %v4358_v14  ;;  %v2106_v26 = vrot.slane %v1666_v17, 1  ;;  %v1723_v43 = vor.u32 %v1721_v7, %v1720_v58  ;;  %v2108_v56 = vrot.slane %v1673_v59, 1  ;;  %v2111_v59 = vrot.slane %v1681_v48, 1  ;;  %v4368_v33 = vld [vmem:[%s5710_s3 + $0x1f8] sm:$0xff]  }
  0x98   : > { %4120 = vmatprep.subr.bf16.mxu1 %v4359_v25  ;;  %v1317_v21 = vsel %vm5181_vm14, %v1300_v9, %v1313_v20  ;;  %vm5196_vm1 = vcmp.ne.s16.totalorder %v3495_v19, 0  ;;  %v5783_v48 = vshrl.u32 %v4949_v0, 16  ;;  %v5786_v58 = vshrl.u32 %v4958_v15, 16  ;;  %v2331_v9 = vld [vmem:[#allocation2 + $0x14] sm:$0xf] }
  0x99   : > { %4041 = vmatmul.mubr.msk.bf16.gmra.mxu0 %vm5138_vm4, %v1296_v45  ;;  %v2107_v10 = vor.u32 %v2106_v26, %v1663_v35  ;;  %v4366_v45 = vld [vmem:[%s5710_s3 + $0x140] sm:$0xff]   ;;  %v2117_v19 = vrot.slane %v1697_v3, 1  ;;  %v2120_v20 = vrot.slane %v1705_v52, 1  ;;  %v5787_v3 = vshrl.u32 %v5020_v42, 16 }
  0x9a   : > { %4073 = vmatmul.mubr.msk.bf16.gmra.mxu1 %vm4852_vm13, %v1708_v41  ;;  %4089 = vmatpush3.bf16.msra.mxu0 %v4358_v14  ;;  %v1724_v14 = vsel %vm5774_vm3, %v5116_v24, %v1723_v43  ;;  %v5782_v24 = vshrl.u32 %v4861_v51, 16  ;;  %v2113_v57 = vor.u32 %v2111_v59, %v5783_v48  ;;  %vm5784_vm3 = vmmov %vm5775_vm7  ;;  %v4374_v52 = vld [vmem:[%s5710_s3 + $0x1e0] sm:$0xff]  }
  0x9b   : > { %4121 = vmatpush3.bf16.msra.mxu1 %v4359_v25  ;;  %4090 = vmatprep.subr.bf16.mxu0 %v4360_v34  ;;  %v2109_v35 = vsel %vm5775_vm7, %v2107_v10, %v2108_v56  ;;  %vm5785_vm7 = vmmov %vm5784_vm3  ;;  %v2123_v10 = vrot.slane %v1713_v6, 1 }
  0x9c   : > { %4122 = vmatprep.subr.bf16.mxu1 %v4361_v60  ;;  %4044 = vmatprep.mubr.msk.bf16.mxu0 %vm5166_vm8, %v1299_v40  ;;  %v2110_v25 = vor.u32 %v2108_v56, %v5782_v24  ;;  %v5260_v40 = vld [vmem:[#allocation2 + $0x10] sm:$0xf]  ;;  %v3593_v56 = vcombine.low %v4849_v32, %v4849_v32  ;;  %v2126_v32 = vrot.slane %v1721_v7, 1 }
  0x9d   : > { %4076 = vmatprep.mubr.msk.bf16.mxu1 %vm4885_vm2, %v1716_v47  ;;  %v2119_v47 = vor.u32 %v2117_v19, %v5787_v3  ;;  %v5273_v26 = vcombine.low %v5260_v40, %v2331_v9  ;;  %v4378_v24 = vld [vmem:[%s5710_s3 + $0x1d0] sm:$0xff]  }
  0x9e   : > { %4091 = vmatpush3.bf16.msra.mxu0 %v4360_v34  ;;  %v2114_v34 = vrot.slane %v1689_v63, 1  ;;  %v2112_v8 = vsel %vm5784_vm3, %v2110_v25, %v2111_v59  ;;  %v2139_v59 = vshll.u32 %v3593_v56, 16 }
  0x9f   : > { %4123 = vmatpush3.bf16.msra.mxu1 %v4361_v60  ;;  %4092 = vmatprep.subr.bf16.mxu0 %v4363_v44  ;;  %v4371_v60 = vld [vmem:[%s5710_s3 + $0x1a8] sm:$0xff]   ;;  %v2393_v6 = vshrl.u32 %v5273_v26, 16  ;;  %v2396_v25 = vshll.u32 %v5273_v26, 16 }
  0xa0   : > { %4124 = vmatprep.subr.bf16.mxu1 %v4364_v11  ;;  %v2115_v63 = vsel %vm5785_vm7, %v2113_v57, %v2114_v34  ;;  %v2116_v41 = vor.u32 %v2114_v34, %v5786_v58  ;;  %vm5788_vm7 = vmmov %vm5784_vm3  ;;  %v2141_v57 = vrot.slane %v2139_v59, 1  ;;  %v4380_v34 = vld [vmem:[%s5710_s3 + $0x188] sm:$0xff]  }
  0xa1   : > { %4045 = vmatmul.mubr.msk.bf16.gmra.mxu0 %vm5196_vm1, %v1317_v21  ;;  %v2121_v43 = vsel %vm5788_vm7, %v2119_v47, %v2120_v20  ;;  %v2122_v21 = vor.u32 %v2120_v20, %v1702_v16  ;;  %v2395_v7 = vrot.slane %v2393_v6, 7  ;;  %vm5789_vm7 = vmmov %vm5784_vm3  ;;  %v5354_v47 = vld [vmem:[#allocation2 + $0x30] sm:$0xff]  }
  0xa2   : > { %4077 = vmatmul.mubr.msk.bf16.gmra.mxu1 %vm4908_vm10, %v1724_v14  ;;  %4093 = vmatpush3.bf16.msra.mxu0 %v4363_v44  ;;  %v4373_v44 = vld [vmem:[%s5710_s3 + $0x1a0] sm:$0xff]   ;;  %v4376_v14 = vld [vmem:[%s5710_s3 + $0x1d8] sm:$0xff]  }
  0xa3   : > { %4125 = vmatpush3.bf16.msra.mxu1 %v4364_v11  ;;  %4094 = vmatprep.subr.bf16.mxu0 %v4365_v5  ;;  %v5278_v11 = vld [vmem:[#allocation2 + $0x4c] sm:$0xf] }
  0xa4   : > { %4126 = vmatprep.subr.bf16.mxu1 %v4366_v45  ;;  %4096 = vmatprep.mubr.bf16.mxu0 %v4881_v1  ;;  %v4369_v1 = vld [vmem:[%s5710_s3 + $0x1b0] sm:$0xff]   ;;  %v3626_v16 = vcombine.low %v5278_v11, %v5278_v11 }
  0xa5   : > { %4128 = vmatprep.mubr.msk.bf16.mxu1 %vm4961_vm12, %v2109_v35  ;;  %v4377_v35 = vld [vmem:[%s5710_s3 + $0x190] sm:$0xff]  }
  0xa6   : > { %4095 = vmatpush3.bf16.msra.mxu0 %v4365_v5  ;;  %v2125_v5 = vor.u32 %v2123_v10, %v1710_v23  ;;  %v2350_v23 = vshrl.u32 %v3626_v16, 16  ;;  %v5385_v16 = vld [vmem:[#allocation2 + $0x40] sm:$0xff]  }
  0xa7   : > { %4127 = vmatpush3.bf16.msra.mxu1 %v4366_v45  ;;  %4144 = vmatprep.subr.bf16.mxu0 %v4367_v53  ;;  %v2124_v45 = vsel %vm5784_vm3, %v2122_v21, %v2123_v10  ;;  %v5374_v10 = vld [vmem:[#allocation2 + $0x38] sm:$0xff]   ;;  %v2440_v59 = vshrl.u32 %v5385_v16, 16 }
  0xa8   : > { %4176 = vmatprep.subr.bf16.mxu1 %v4368_v33 }
  0xa9   : > { %4097 = vmatmul.mubr.bf16.vlgmr.msra.gmra.mxu0 %v4861_v51  ;;  %v4372_v51 = vld [vmem:[%s5710_s3 + $0x1e8] sm:$0xff]  }
  0xaa   : > { %4129 = vmatmul.mubr.msk.bf16.vlgmr.msra.gmra.mxu1 %vm4996_vm5, %v2112_v8  ;;  %4145 = vmatpush3.bf16.msra.mxu0 %v4367_v53  ;;  %v5315_v53 = vld [vmem:[#allocation2 + $0x20] sm:$0xff]   ;;  %v4381_v8 = vld [vmem:[%s5710_s3 + $0x1c8] sm:$0xff]  }
  0xab   : > { %4177 = vmatpush3.bf16.msra.mxu1 %v4368_v33  ;;  %4146 = vmatprep.subr.bf16.mxu0 %v4369_v1  ;;  %v2127_v33 = vsel %vm5789_vm7, %v2125_v5, %v2126_v32  ;;  %v2411_v3 = vshll.u32 %v5315_v53, 16  ;;  %vm5793_vm7 = vnez %v5739_v29  ;;  %v4393_v29 = vld [vmem:[%s5710_s3 + $0x220] sm:$0xff]  }
  0xac   : > { %4178 = vmatprep.subr.bf16.mxu1 %v4370_v28  ;;  %4100 = vmatprep.mubr.bf16.mxu0 %v4949_v0  ;;  %v2118_v0 = vsel %vm5784_vm3, %v2116_v41, %v2117_v19  ;;  %v4382_v19 = vld [vmem:[%s5710_s3 + $0x180] sm:$0xff]  }
  0xad   : > { %4132 = vmatprep.mubr.msk.bf16.mxu1 %vm5037_vm15, %v2115_v63 }
  0xae   : > { %4147 = vmatpush3.bf16.msra.mxu0 %v4369_v1  ;;  %v2352_v1 = vrot.slane %v2350_v23, 3 }
  0xaf   : > { %4179 = vmatpush3.bf16.msra.mxu1 %v4370_v28  ;;  %4148 = vmatprep.subr.bf16.mxu0 %v4371_v60  ;;  %v2398_v28 = vor.u32 %v2396_v25, %v2395_v7 }
  0xb0   : > { %4180 = vmatprep.subr.bf16.mxu1 %v4372_v51 }
  0xb1   : > { %4101 = vmatmul.mubr.bf16.gmra.mxu0 %v4958_v15  ;;  %v4375_v15 = vld [vmem:[%s5710_s3 + $0x198] sm:$0xff]  }
  0xb2   : > { %4133 = vmatmul.mubr.msk.bf16.gmra.mxu1 %vm5066_vm0, %v2118_v0  ;;  %4149 = vmatpush3.bf16.msra.mxu0 %v4371_v60  ;;  %v4383_v60 = vld [vmem:[%s5710_s3 + $0x1c0] sm:$0xff]  }
  0xb3   : > { %4181 = vmatpush3.bf16.msra.mxu1 %v4372_v51  ;;  %4150 = vmatprep.subr.bf16.mxu0 %v4373_v44  ;;  %v2463_v51 = vsel %vm4656_vm9, %v2352_v1, %v2398_v28  ;;  %vm5790_vm9 = vsmask.f32 256 }
  0xb4   : > { %4182 = vmatprep.subr.bf16.mxu1 %v4374_v52  ;;  %4104 = vmatprep.mubr.bf16.mxu0 %v5020_v42  ;;  %v5302_v42 = vld [vmem:[#allocation2 + $0x18] sm:$0xff]   ;;  %vm5792_vm3 = vmmov %vm5790_vm9 }
  0xb5   : > { %4136 = vmatprep.mubr.msk.bf16.mxu1 %vm5102_vm6, %v2121_v43  ;;  %v2400_v48 = vshrl.u32 %v5302_v42, 16  ;;  %v2403_v58 = vshll.u32 %v5302_v42, 16 }
  0xb6   : > { %4151 = vmatpush3.bf16.msra.mxu0 %v4373_v44  ;;  %v2424_v44 = vshrl.u32 %v5354_v47, 16 }
  0xb7   : > { %4183 = vmatpush3.bf16.msra.mxu1 %v4374_v52  ;;  %4152 = vmatprep.subr.bf16.mxu0 %v4375_v15  ;;  %v2402_v63 = vrot.slane %v2400_v48, 7 }
  0xb8   : > { %4184 = vmatprep.subr.bf16.mxu1 %v4376_v14  ;;  %v2426_v56 = vrot.slane %v2424_v44, 7 }
  0xb9   : > { %4105 = vmatmul.mubr.bf16.gmra.mxu0 %v5024_v46  ;;  %v2128_v46 = vor.u32 %v2126_v32, %v1718_v38  ;;  %v2408_v38 = vshrl.u32 %v5315_v53, 16  ;;  %v2405_v9 = vor.u32 %v2403_v58, %v2402_v63  ;;  %v2432_v32 = vshrl.u32 %v5374_v10, 16 }
  0xba   : > { %4137 = vmatmul.mubr.msk.bf16.gmra.mxu1 %vm5138_vm4, %v2124_v45  ;;  %4153 = vmatpush3.bf16.msra.mxu0 %v4375_v15  ;;  %v2344_v45 = vld [vmem:[#allocation2 + $0x48] sm:$0xf] }
  0xbb   : > { %4185 = vmatpush3.bf16.msra.mxu1 %v4376_v14  ;;  %4154 = vmatprep.subr.bf16.mxu0 %v4377_v35  ;;  %v2143_v41 = vsel %vm5181_vm14, %v2128_v46, %v2141_v57  ;;  %v2410_v20 = vrot.slane %v2408_v38, 7  ;;  %v2406_v52 = vsel %vm5790_vm9, %v2395_v7, %v2405_v9  ;;  %v2427_v14 = vshll.u32 %v5354_v47, 16  ;;  %vm5794_vm9 = vmmov %vm5792_vm3  ;;  %v4399_v9 = vld [vmem:[%s5710_s3 + $0x208] sm:$0xff]  }
  0xbc   : > { %4186 = vmatprep.subr.bf16.mxu1 %v4378_v24  ;;  %4108 = vmatprep.mubr.bf16.mxu0 %v5074_v30  ;;  %v5338_v30 = vld [vmem:[#allocation2 + $0x28] sm:$0xff]   ;;  %v2434_v7 = vrot.slane %v2432_v32, 7  ;;  %v2442_v46 = vrot.slane %v2440_v59, 7  ;;  %v2443_v57 = vshll.u32 %v5385_v16, 16 }
  0xbd   : > { %4140 = vmatprep.mubr.msk.bf16.mxu1 %vm5166_vm8, %v2127_v33  ;;  %v2416_v0 = vshrl.u32 %v5338_v30, 16  ;;  %v2419_v21 = vshll.u32 %v5338_v30, 16  ;;  %v2435_v33 = vshll.u32 %v5374_v10, 16 }
  0xbe   : > { %4155 = vmatpush3.bf16.msra.mxu0 %v4377_v35  ;;  %v2429_v35 = vor.u32 %v2427_v14, %v2426_v56  ;;  %v2445_v1 = vor.u32 %v2443_v57, %v2442_v46 }
  0xbf   : > { %4187 = vmatpush3.bf16.msra.mxu1 %v4378_v24  ;;  %4156 = vmatprep.subr.bf16.mxu0 %v4380_v34  ;;  %v2418_v43 = vrot.slane %v2416_v0, 7  ;;  %v5399_v24 = vcombine.low %v2344_v45, %v5278_v11 }
  0xc0   : > { %4188 = vmatprep.subr.bf16.mxu1 %v4381_v8 }
  0xc1   : > { %4109 = vmatmul.mubr.bf16.gmra.mxu0 %v5079_v2  ;;  %v2413_v2 = vor.u32 %v2411_v3, %v2410_v20  ;;  %v2421_v5 = vor.u32 %v2419_v21, %v2418_v43  ;;  %v2430_v11 = vsel %vm5792_vm3, %v2418_v43, %v2429_v35 }
  0xc2   : > { %4141 = vmatmul.mubr.msk.bf16.gmra.mxu1 %vm5196_vm1, %v2143_v41  ;;  %4157 = vmatpush3.bf16.msra.mxu0 %v4380_v34  ;;  %v2437_v34 = vor.u32 %v2435_v33, %v2434_v7  ;;  %v2451_v41 = vshll.u32 %v5399_v24, 16 }
  0xc3   : > { %4189 = vmatpush3.bf16.msra.mxu1 %v4381_v8  ;;  %4158 = vmatprep.subr.bf16.mxu0 %v4382_v19  ;;  %v2414_v15 = vsel %vm5792_vm3, %v2402_v63, %v2413_v2  ;;  %v2422_v23 = vsel %vm5794_vm9, %v2410_v20, %v2421_v5  ;;  %v2448_v8 = vshrl.u32 %v5399_v24, 16  ;;  %vm5797_vm9 = vmmov %vm5792_vm3  ;;  %v2847_v20 = vrot.slane %v2427_v14, 1 }
  0xc4   : > { %4190 = vmatprep.subr.bf16.mxu1 %v4383_v60  ;;  %4160 = vmatprep.mubr.msk.bf16.mxu0 %vm4672_vm11, %v2463_v51  ;;  %vm5791_vm11 = vnez %v5737_v12  ;;  %v4392_v12 = vld [vmem:[%s5710_s3 + $0x228] sm:$0xff]   ;;  %v2438_v28 = vsel %vm5797_vm9, %v2426_v56, %v2437_v34 }
  0xc5   : > { %4192 = vmatprep.mubr.bf16.mxu1 %v5273_v26  ;;  %v2450_v63 = vrot.slane %v2448_v8, 7  ;;  %v2849_v2 = vor.u32 %v2847_v20, %v2424_v44  ;;  %v2841_v26 = vrot.slane %v2411_v3, 1  ;;  %v2844_v3 = vrot.slane %v2419_v21, 1 }
  0xc6   : > { %4159 = vmatpush3.bf16.msra.mxu0 %v4382_v19  ;;  %v4397_v19 = vld [vmem:[%s5710_s3 + $0x210] sm:$0xff]  }
  0xc7   : > { %4191 = vmatpush3.bf16.msra.mxu1 %v4383_v60  ;;  %4208 = vmatprep.subr.bf16.mxu0 %v4388_v55  ;;  %v2836_v60 = vrot.slane %v2396_v25, 1  ;;  %v2453_v51 = vor.u32 %v2451_v41, %v2450_v63  ;;  %v2838_v25 = vrot.slane %v2403_v58, 1  ;;  %v2853_v58 = vrot.slane %v2443_v57, 1 }
  0xc8   : > { %4240 = vmatprep.subr.bf16.mxu1 %v4388_v55  ;;  %v2843_v27 = vor.u32 %v2841_v26, %v2408_v38  ;;  %v2846_v61 = vor.u32 %v2844_v3, %v2416_v0 }
  0xc9   : > { %4161 = vmatmul.mubr.msk.bf16.vlgmr.msra.gmra.mxu0 %vm5791_vm11, %v2406_v52  ;;  %vm5795_vm11 = vnez %v5743_v49  ;;  %v4396_v49 = vld [vmem:[%s5710_s3 + $0x218] sm:$0xff]   ;;  %v2837_v39 = vor.u32 %v2836_v60, %v2393_v6  ;;  %v2850_v52 = vrot.slane %v2435_v33, 1 }
  0xca   : > { %4193 = vmatmul.mubr.bf16.vlgmr.msra.gmra.mxu1 %v5302_v42  ;;  %4209 = vmatpush3.bf16.msra.mxu0 %v4388_v55  ;;  %v2855_v42 = vor.u32 %v2853_v58, %v2440_v59 }
  0xcb   : > { %4248 = vmatpush3.bf16.msra.mxu1 %v4388_v55  ;;  %4210 = vmatprep.subr.bf16.mxu0 %v4389_v62  ;;  %v2852_v43 = vor.u32 %v2850_v52, %v2432_v32 }
  0xcc   : > { %4241 = vmatprep.subr.bf16.mxu1 %v4389_v62  ;;  %4164 = vmatprep.mubr.msk.bf16.mxu0 %vm5793_vm7, %v2414_v15  ;;  %vm5796_vm7 = vnez %v5747_v4 }
  0xcd   : > { %4196 = vmatprep.mubr.bf16.mxu1 %v5315_v53 }
  0xce   : > { %4211 = vmatpush3.bf16.msra.mxu0 %v4389_v62 }
  0xcf   : > { %4249 = vmatpush3.bf16.msra.mxu1 %v4389_v62  ;;  %4212 = vmatprep.subr.bf16.mxu0 %v4392_v12  ;;  %v3691_v62 = vcombine.low %v5260_v40, %v5260_v40 }
  0xd0   : > { %4242 = vmatprep.subr.bf16.mxu1 %v4392_v12 }
  0xd1   : > { %4165 = vmatmul.mubr.msk.bf16.gmra.mxu0 %vm5795_vm11, %v2422_v23  ;;  %vm5798_vm11 = vmmov %vm5792_vm3  ;;  %v2869_v40 = vshll.u32 %v3691_v62, 16 }
  0xd2   : > { %4197 = vmatmul.mubr.bf16.gmra.mxu1 %v5338_v30  ;;  %4213 = vmatpush3.bf16.msra.mxu0 %v4392_v12  ;;  %v2446_v4 = vsel %vm5798_vm11, %v2434_v7, %v2445_v1 }
  0xd3   : > { %4250 = vmatpush3.bf16.msra.mxu1 %v4392_v12  ;;  %4214 = vmatprep.subr.bf16.mxu0 %v4393_v29  ;;  %v2871_v15 = vrot.slane %v2869_v40, 1 }
  0xd4   : > { %4243 = vmatprep.subr.bf16.mxu1 %v4393_v29  ;;  %4168 = vmatprep.mubr.msk.bf16.mxu0 %vm5796_vm7, %v2430_v11 }
  0xd5   : > { %4200 = vmatprep.mubr.bf16.mxu1 %v5354_v47  ;;  %v2840_v47 = vor.u32 %v2838_v25, %v2400_v48  ;;  %v2856_v48 = vrot.slane %v2451_v41, 1 }
  0xd6   : > { %4215 = vmatpush3.bf16.msra.mxu0 %v4393_v29 }
  0xd7   : > { %4251 = vmatpush3.bf16.msra.mxu1 %v4393_v29  ;;  %4216 = vmatprep.subr.bf16.mxu0 %v4396_v49  ;;  %v2858_v37 = vor.u32 %v2856_v48, %v2448_v8 }
  0xd8   : > { %4244 = vmatprep.subr.bf16.mxu1 %v4396_v49 }
  0xd9   : > { %4169 = vmatmul.mubr.msk.bf16.gmra.mxu0 %vm4852_vm13, %v2438_v28  ;;  %vm5799_vm13 = vmmov %vm5792_vm3  ;;  %v2873_v22 = vsel %vm5181_vm14, %v2858_v37, %v2871_v15 }
  0xda   : > { %4201 = vmatmul.mubr.bf16.gmra.mxu1 %v5374_v10  ;;  %4217 = vmatpush3.bf16.msra.mxu0 %v4396_v49  ;;  %v2454_v55 = vsel %vm5799_vm13, %v2442_v46, %v2453_v51 }
  0xdb   : > { %4252 = vmatpush3.bf16.msra.mxu1 %v4396_v49  ;;  %4218 = vmatprep.subr.bf16.mxu0 %v4397_v19 }
  0xdc   : > { %4245 = vmatprep.subr.bf16.mxu1 %v4397_v19  ;;  %4172 = vmatprep.mubr.msk.bf16.mxu0 %vm4885_vm2, %v2446_v4  ;;  %vm5800_vm2 = vsmask.f32 7424 }
  0xdd   : > { %4204 = vmatprep.mubr.bf16.mxu1 %v5385_v16  ;;  %v2839_v6 = vsel %vm5800_vm2, %v2837_v39, %v2838_v25  ;;  %vm5801_vm3 = vmmov %vm5800_vm2 }
  0xde   : > { %4219 = vmatpush3.bf16.msra.mxu0 %v4397_v19  ;;  %v2851_v44 = vsel %vm5801_vm3, %v2849_v2, %v2850_v52  ;;  %vm5803_vm7 = vmmov %vm5800_vm2 }
  0xdf   : > { %4253 = vmatpush3.bf16.msra.mxu1 %v4397_v19  ;;  %4220 = vmatprep.subr.bf16.mxu0 %v4399_v9  ;;  %v2854_v38 = vsel %vm5803_vm7, %v2852_v43, %v2853_v58  ;;  %vm5804_vm9 = vmmov %vm5800_vm2 }
  0xe0   : > { %4246 = vmatprep.subr.bf16.mxu1 %v4399_v9  ;;  %v2845_v21 = vsel %vm5804_vm9, %v2843_v27, %v2844_v3  ;;  %vm5805_vm11 = vmmov %vm5800_vm2 }
  0xe1   : > { %4173 = vmatmul.mubr.msk.bf16.gmra.mxu0 %vm4908_vm10, %v2454_v55  ;;  %vm5802_vm10 = vmmov %vm5800_vm2  ;;  %v2857_v10 = vsel %vm5805_vm11, %v2855_v42, %v2856_v48 }
  0xe2   : > { %4205 = vmatmul.mubr.bf16.gmra.mxu1 %v5399_v24  ;;  %4221 = vmatpush3.bf16.msra.mxu0 %v4399_v9  ;;  %v2842_v53 = vsel %vm5802_vm10, %v2840_v47, %v2841_v26 }
  0xe3   : > { %4254 = vmatpush3.bf16.msra.mxu1 %v4399_v9  ;;  %4222 = vmatprep.subr.bf16.mxu0 %v4400_v13 }
  0xe4   : > { %4247 = vmatprep.subr.bf16.mxu1 %v4400_v13  ;;  %4224 = vmatprep.mubr.msk.bf16.mxu0 %vm4961_vm12, %v2839_v6  ;;  %vm5806_vm12 = vmmov %vm5800_vm2 }
  0xe5   : > { %4232 = vmatprep.mubr.msk.bf16.mxu1 %vm5102_vm6, %v2851_v44  ;;  %v2848_v56 = vsel %vm5806_vm12, %v2846_v61, %v2847_v20 }
  0xe6   : > { %4223 = vmatpush3.bf16.msra.mxu0 %v4400_v13 }
  0xe7   : > { %4255 = vmatpush3.bf16.msra.mxu1 %v4400_v13 }
  0xe9   : > { %4225 = vmatmul.mubr.msk.bf16.vlgmr.msra.gmra.mxu0 %vm4996_vm5, %v2842_v53 }
  0xea   : > { %4233 = vmatmul.mubr.msk.bf16.vlgmr.msra.gmra.mxu1 %vm5138_vm4, %v2854_v38  ;;  %4228 = vmatprep.mubr.msk.bf16.mxu0 %vm5037_vm15, %v2845_v21 }
  0xeb   : > { %4236 = vmatprep.mubr.msk.bf16.mxu1 %vm5166_vm8, %v2857_v10 }
  0xf1   : > { %4229 = vmatmul.mubr.msk.bf16.gmra.mxu0 %vm5066_vm0, %v2848_v56 }
  0xf2   : > { %4237 = vmatmul.mubr.msk.bf16.gmra.mxu1 %vm5196_vm1, %v2873_v22 }
 0x129   : > { %v3970_v36 = vpop.f32.mrf.mxu0 }
 0x12a   : > { %v4002_v54 = vpop.f32.mrf.mxu1 }
 0x12b   : > { %v1223_v30 = vadd.f32 %v4002_v54, %v3970_v36  ;;  %v1069_v31 = vpop.f32.mrf.mxu0 }
 0x12c   : > { %v1214_v0 = vpop.f32.mrf.mxu1 }
 0x12d   : > { %v1215_v14 = vadd.f32 %v1214_v0, %v1069_v31  ;;  %v3971_v16 = vpop.f32.mrf.mxu0 }
 0x12e   : > { %v4003_v5 = vpop.f32.mrf.mxu1 }
 0x12f   : > { %v1226_v32 = vadd.f32 %v4003_v5, %v3971_v16  ;;  %v1072_v45 = vpop.f32.mrf.mxu0 }
 0x130   : > { %v1217_v12 = vpop.f32.mrf.mxu1 }
 0x131   : > { %v1218_v35 = vadd.f32 %v1217_v12, %v1072_v45  ;;  %v3974_v18 = vpop.f32.mrf.mxu0 }
 0x132   : > { %v4006_v59 = vpop.f32.mrf.mxu1 }
 0x133   : > { %v1239_v24 = vadd.f32 %v4006_v59, %v3974_v18  ;;  %v1085_v50 = vpop.f32.mrf.mxu0 }
 0x134   : > { %v1230_v23 = vpop.f32.mrf.mxu1 }
 0x135   : > { %v1231_v7 = vadd.f32 %v1230_v23, %v1085_v50  ;;  %v3975_v17 = vpop.f32.mrf.mxu0 }
 0x136   : > { %v4007_v33 = vpop.f32.mrf.mxu1 }
 0x137   : > { %v1242_v29 = vadd.f32 %v4007_v33, %v3975_v17  ;;  %v1088_v11 = vpop.f32.mrf.mxu0 }
 0x138   : > { %v1233_v46 = vpop.f32.mrf.mxu1 }
 0x139   : > { %v1234_v57 = vadd.f32 %v1233_v46, %v1088_v11  ;;  %v3978_v34 = vpop.f32.mrf.mxu0 }
 0x13a   : > { %v4010_v8 = vpop.f32.mrf.mxu1 }
 0x13b   : > { %v1255_v49 = vadd.f32 %v4010_v8, %v3978_v34  ;;  %v1101_v1 = vpop.f32.mrf.mxu0 }
 0x13c   : > { %v1246_v28 = vpop.f32.mrf.mxu1 }
 0x13d   : > { %v1247_v63 = vadd.f32 %v1246_v28, %v1101_v1  ;;  %v3979_v41 = vpop.f32.mrf.mxu0 }
 0x13e   : > { %v4011_v19 = vpop.f32.mrf.mxu1 }
 0x13f   : > { %v1258_v4 = vadd.f32 %v4011_v19, %v3979_v41  ;;  %v1104_v60 = vpop.f32.mrf.mxu0 }
 0x140   : > { %v1249_v51 = vpop.f32.mrf.mxu1 }
 0x141   : > { %v1250_v20 = vadd.f32 %v1249_v51, %v1104_v60  ;;  %v3982_v9 = vpop.f32.mrf.mxu0 }
 0x142   : > { %v4014_v39 = vpop.f32.mrf.mxu1 }
 0x143   : > { %v1271_v25 = vadd.f32 %v4014_v39, %v3982_v9  ;;  %v1117_v55 = vpop.f32.mrf.mxu0 }
 0x144   : > { %v1262_v2 = vpop.f32.mrf.mxu1 }
 0x145   : > { %v1263_v52 = vadd.f32 %v1262_v2, %v1117_v55  ;;  %v3983_v13 = vpop.f32.mrf.mxu0 }
 0x146   : > { %v4015_v26 = vpop.f32.mrf.mxu1 }
 0x147   : > { %v1274_v6 = vadd.f32 %v4015_v26, %v3983_v13  ;;  %v1120_v58 = vpop.f32.mrf.mxu0 }
 0x148   : > { %v1265_v47 = vpop.f32.mrf.mxu1 }
 0x149   : > { %v1266_v44 = vadd.f32 %v1265_v47, %v1120_v58  ;;  %v4034_v43 = vpop.f32.mrf.mxu0 }
 0x14a   : > { %v1586_v27 = vadd.f32 %v4034_v43, %v1223_v30  ;;  %v4066_v3 = vpop.f32.mrf.mxu1 }
 0x14b   : > { %v1521_v62 = vpop.f32.mrf.mxu0 }
 0x14c   : > { %v5497_v42 = vadd.f32 %v4066_v3, %v1586_v27  ;;  %v1584_v48 = vadd.f32 %v1521_v62, %v1215_v14  ;;  %v1841_v53 = vpop.f32.mrf.mxu1 }
 0x14d   : > { %v4035_v38 = vpop.f32.mrf.mxu0 }
 0x14e   : > { %v5499_v21 = vadd.f32 %v1841_v53, %v1584_v48  ;;  %v1587_v40 = vadd.f32 %v4035_v38, %v1226_v32  ;;  %v4067_v10 = vpop.f32.mrf.mxu1 }
 0x14f   : > { %v1524_v61 = vpop.f32.mrf.mxu0 }
 0x150   : > { %v5501_v37 = vadd.f32 %v4067_v10, %v1587_v40  ;;  %v1585_v15 = vadd.f32 %v1524_v61, %v1218_v35  ;;  %v1844_v56 = vpop.f32.mrf.mxu1 }
 0x151   : > { %v4038_v22 = vpop.f32.mrf.mxu0 }
 0x152   : > { %v5503_v36 = vadd.f32 %v1844_v56, %v1585_v15  ;;  %v1590_v54 = vadd.f32 %v4038_v22, %v1239_v24  ;;  %v4070_v30 = vpop.f32.mrf.mxu1 }
 0x153   : > { %v1537_v31 = vpop.f32.mrf.mxu0 }
 0x154   : > { %v5505_v0 = vadd.f32 %v4070_v30, %v1590_v54  ;;  %v1588_v14 = vadd.f32 %v1537_v31, %v1231_v7  ;;  %v1857_v16 = vpop.f32.mrf.mxu1 }
 0x155   : > { %v4039_v5 = vpop.f32.mrf.mxu0 }
 0x156   : > { %v5507_v45 = vadd.f32 %v1857_v16, %v1588_v14  ;;  %v1591_v32 = vadd.f32 %v4039_v5, %v1242_v29  ;;  %v4071_v12 = vpop.f32.mrf.mxu1 }
 0x157   : > { %v1540_v18 = vpop.f32.mrf.mxu0 }
 0x158   : > { %v5509_v59 = vadd.f32 %v4071_v12, %v1591_v32  ;;  %v1589_v35 = vadd.f32 %v1540_v18, %v1234_v57  ;;  %v1860_v50 = vpop.f32.mrf.mxu1 }
 0x159   : > { %v4042_v23 = vpop.f32.mrf.mxu0 }
 0x15a   : > { %v5511_v17 = vadd.f32 %v1860_v50, %v1589_v35  ;;  %v1594_v24 = vadd.f32 %v4042_v23, %v1255_v49  ;;  %v4074_v33 = vpop.f32.mrf.mxu1 }
 0x15b   : > { %v1553_v11 = vpop.f32.mrf.mxu0 }
 0x15c   : > { %v5513_v46 = vadd.f32 %v4074_v33, %v1594_v24  ;;  %v1592_v7 = vadd.f32 %v1553_v11, %v1247_v63  ;;  %v1873_v34 = vpop.f32.mrf.mxu1 }
 0x15d   : > { %v4043_v8 = vpop.f32.mrf.mxu0 }
 0x15e   : > { %v5515_v1 = vadd.f32 %v1873_v34, %v1592_v7  ;;  %v1595_v29 = vadd.f32 %v4043_v8, %v1258_v4  ;;  %v4075_v28 = vpop.f32.mrf.mxu1 }
 0x15f   : > { %v1556_v41 = vpop.f32.mrf.mxu0 }
 0x160   : > { %v5517_v19 = vadd.f32 %v4075_v28, %v1595_v29  ;;  %v1593_v57 = vadd.f32 %v1556_v41, %v1250_v20  ;;  %v1876_v60 = vpop.f32.mrf.mxu1 }
 0x161   : > { %v4046_v51 = vpop.f32.mrf.mxu0 }
 0x162   : > { %v5519_v9 = vadd.f32 %v1876_v60, %v1593_v57  ;;  %v1598_v49 = vadd.f32 %v4046_v51, %v1271_v25  ;;  %v4078_v39 = vpop.f32.mrf.mxu1 }
 0x163   : > { %v1569_v55 = vpop.f32.mrf.mxu0 }
 0x164   : > { %v5521_v2 = vadd.f32 %v4078_v39, %v1598_v49  ;;  %v1596_v63 = vadd.f32 %v1569_v55, %v1263_v52  ;;  %v1889_v13 = vpop.f32.mrf.mxu1 }
 0x165   : > { %v4047_v26 = vpop.f32.mrf.mxu0 }
 0x166   : > { %v5523_v58 = vadd.f32 %v1889_v13, %v1596_v63  ;;  %v1599_v4 = vadd.f32 %v4047_v26, %v1274_v6  ;;  %v4079_v47 = vpop.f32.mrf.mxu1 }
 0x167   : > { %v1572_v43 = vpop.f32.mrf.mxu0 }
 0x168   : > { %v5525_v27 = vadd.f32 %v4079_v47, %v1599_v4  ;;  %v1597_v20 = vadd.f32 %v1572_v43, %v1266_v44  ;;  %v1892_v3 = vpop.f32.mrf.mxu1 }
 0x169   : > { %v4098_v62 = vpop.f32.mrf.mxu0 }
 0x16a   : > { %v5527_v48 = vadd.f32 %v1892_v3, %v1597_v20  ;;  %v5529_v25 = vpop.f32.mrf.mxu1 }
 0x16b   : > { %v2027_v53 = vpop.f32.mrf.mxu0 }
 0x16c   : > { %v5531_v38 = vpop.f32.mrf.mxu1 }
 0x16d   : > { %v4099_v52 = vpop.f32.mrf.mxu0 }
 0x16e   : > { %v5533_v40 = vpop.f32.mrf.mxu1 }
 0x16f   : > { %v2030_v10 = vpop.f32.mrf.mxu0 }
 0x170   : > { %v5535_v61 = vpop.f32.mrf.mxu1 }
 0x171   : > { %v4102_v6 = vpop.f32.mrf.mxu0 }
 0x172   : > { %v5537_v15 = vpop.f32.mrf.mxu1 }
 0x173   : > { %v2043_v56 = vpop.f32.mrf.mxu0 }
 0x174   : > { %v5539_v44 = vpop.f32.mrf.mxu1 }
 0x175   : > { %v5541_v22 = vpop.f32.mrf.mxu0 }
 0x176   : > { %v5543_v54 = vpop.f32.mrf.mxu1 }
 0x177   : > { %v5545_v30 = vpop.f32.mrf.mxu0 }
 0x178   : > { %v5547_v31 = vpop.f32.mrf.mxu1 }
 0x179   : > { %5807 = vst [vmem:[#allocation10_spill] sm:$0xff] %v5547_v31  ;;  %v4106_v14 = vpop.f32.mrf.mxu0 }
 0x17a   : > { %v4138_v16 = vpop.f32.mrf.mxu1 }
 0x17b   : > { %v2059_v5 = vpop.f32.mrf.mxu0 }
 0x17c   : > { %v2283_v32 = vpop.f32.mrf.mxu1 }
 0x17d   : > { %v4107_v12 = vpop.f32.mrf.mxu0 }
 0x17e   : > { %v5549_v18 = vpop.f32.mrf.mxu1 }
 0x17f   : > { %v2062_v35 = vpop.f32.mrf.mxu0 }
 0x180   : > { %v2286_v50 = vpop.f32.mrf.mxu1 }
 0x181   : > { %v4110_v23 = vpop.f32.mrf.mxu0 }
 0x182   : > { %v5551_v24 = vpop.f32.mrf.mxu1 }
 0x183   : > { %5808 = vst [vmem:[#allocation11_spill] sm:$0xff] %v5551_v24  ;;  %v2075_v33 = vpop.f32.mrf.mxu0 }
 0x184   : > { %v5553_v11 = vpop.f32.mrf.mxu1 }
 0x185   : > { %5809 = vst [vmem:[#allocation12_spill] sm:$0xff] %v5553_v11  ;;  %v4111_v7 = vpop.f32.mrf.mxu0 }
 0x186   : > { %v5555_v34 = vpop.f32.mrf.mxu1 }
 0x187   : > { %5810 = vst [vmem:[#allocation13_spill] sm:$0xff] %v5555_v34  ;;  %v2078_v8 = vpop.f32.mrf.mxu0 }
 0x188   : > { %v5557_v29 = vpop.f32.mrf.mxu1 }
 0x189   : > { %5811 = vst [vmem:[#allocation14_spill] sm:$0xff] %v5557_v29  ;;  %v4162_v28 = vpop.f32.mrf.mxu0 }
 0x18a   : > { %v5559_v41 = vpop.f32.mrf.mxu1 }
 0x18b   : > { %5812 = vst [vmem:[#allocation15_spill] sm:$0xff] %v5559_v41  ;;  %v2571_v57 = vpop.f32.mrf.mxu0 }
 0x18c   : > { %v5561_v60 = vpop.f32.mrf.mxu1 }
 0x18d   : > { %5813 = vst [vmem:[#allocation16_spill] sm:$0xff] %v5561_v60  ;;  %v4163_v51 = vpop.f32.mrf.mxu0 }
 0x18e   : > { %v5563_v49 = vpop.f32.mrf.mxu1 }
 0x18f   : > { %5814 = vst [vmem:[#allocation17_spill] sm:$0xff] %v5563_v49  ;;  %v2574_v39 = vpop.f32.mrf.mxu0 }
 0x190   : > { %v5565_v55 = vpop.f32.mrf.mxu1 }
 0x191   : > { %5815 = vst [vmem:[#allocation18_spill] sm:$0xff] %v5565_v55  ;;  %v4166_v63 = vpop.f32.mrf.mxu0 }
 0x192   : > { %v5567_v13 = vpop.f32.mrf.mxu1 }
 0x193   : > { %5816 = vst [vmem:[#allocation19_spill] sm:$0xff] %v5567_v13  ;;  %v2587_v26 = vpop.f32.mrf.mxu0 }
 0x194   : > { %v5569_v4 = vpop.f32.mrf.mxu1 }
 0x195   : > { %5817 = vst [vmem:[#allocation20_spill] sm:$0xff] %v5569_v4  ;;  %v5571_v47 = vpop.f32.mrf.mxu0  ;;  %v2092_v4 = vadd.f32 %v4098_v62, %v5497_v42  ;;  %v2101_v42 = vadd.f32 %v4107_v12, %v5517_v19  ;;  %v2097_v19 = vadd.f32 %v5541_v22, %v5509_v59 }
 0x196   : > { %5818 = vst [vmem:[#allocation21_spill] sm:$0xff] %v5571_v47  ;;  %v5573_v43 = vpop.f32.mrf.mxu1  ;;  %v2090_v47 = vadd.f32 %v2027_v53, %v5499_v21  ;;  %v2099_v21 = vadd.f32 %v2062_v35, %v5519_v9  ;;  %v2095_v9 = vadd.f32 %v5545_v30, %v5511_v17 }
 0x197   : > { %5819 = vst [vmem:[#allocation22_spill] sm:$0xff] %v5573_v43  ;;  %v5575_v20 = vpop.f32.mrf.mxu0  ;;  %v2093_v43 = vadd.f32 %v4099_v52, %v5501_v37  ;;  %v2321_v35 = vadd.f32 %v5543_v54, %v2097_v19 }
 0x198   : > { %5820 = vst [vmem:[#allocation23_spill] sm:$0xff] %v5575_v20  ;;  %v5577_v3 = vpop.f32.mrf.mxu1  ;;  %v2091_v20 = vadd.f32 %v2030_v10, %v5503_v36  ;;  %v2316_v36 = vadd.f32 %v5529_v25, %v2092_v4  ;;  %v5833_v4 = vld [vmem:[#allocation18_spill] sm:$0xff] }
 0x199   : > { %5821 = vst [vmem:[#allocation24_spill] sm:$0xff] %v5577_v3  ;;  %v4170_v60 = vpop.f32.mrf.mxu0  ;;  %v2096_v3 = vadd.f32 %v4102_v6, %v5505_v0  ;;  %v2314_v0 = vadd.f32 %v5531_v38, %v2090_v47  ;;  %v2104_v38 = vadd.f32 %v4110_v23, %v5521_v2  ;;  %v2325_v6 = vadd.f32 %v5549_v18, %v2101_v42  ;;  %v5825_v18 = vld [vmem:[#allocation10_spill] sm:$0xff]  ;;  %v5826_v23 = vld [vmem:[#allocation11_spill] sm:$0xff] }
 0x19a   : > { %v5579_v41 = vpop.f32.mrf.mxu1  ;;  %v2315_v62 = vadd.f32 %v5535_v61, %v2091_v20  ;;  %v2636_v22 = vadd.f32 %v4162_v28, %v2316_v36  ;;  %v5834_v20 = vld [vmem:[#allocation19_spill] sm:$0xff] }
 0x19b   : > { %5822 = vst [vmem:[#allocation25_spill] sm:$0xff] %v5579_v41  ;;  %v2603_v49 = vpop.f32.mrf.mxu0  ;;  %v2094_v41 = vadd.f32 %v2043_v56, %v5507_v45  ;;  %v2317_v45 = vadd.f32 %v5533_v40, %v2093_v43  ;;  %v2102_v40 = vadd.f32 %v2075_v33, %v5523_v58  ;;  %v2105_v56 = vadd.f32 %v4111_v7, %v5525_v27  ;;  %v5827_v33 = vld [vmem:[#allocation12_spill] sm:$0xff] }
 0x19c   : > { %v5581_v29 = vpop.f32.mrf.mxu1  ;;  %v2635_v30 = vadd.f32 %v2574_v39, %v2315_v62  ;;  %v2328_v27 = vadd.f32 %v5826_v23, %v2104_v38  ;;  %v5830_v39 = vld [vmem:[#allocation15_spill] sm:$0xff]  ;;  %v5835_v42 = vld [vmem:[#allocation20_spill] sm:$0xff] }
 0x19d   : > { %5823 = vst [vmem:[#allocation26_spill] sm:$0xff] %v5581_v29  ;;  %v4171_v55 = vpop.f32.mrf.mxu0  ;;  %v2100_v29 = vadd.f32 %v4106_v14, %v5513_v46  ;;  %v2320_v46 = vadd.f32 %v5537_v15, %v2096_v3  ;;  %v2323_v15 = vadd.f32 %v2286_v50, %v2099_v21  ;;  %v2634_v14 = vadd.f32 %v2571_v57, %v2314_v0 }
 0x19e   : > { %v5583_v34 = vpop.f32.mrf.mxu1  ;;  %v2637_v17 = vadd.f32 %v4163_v51, %v2317_v45  ;;  %v2645_v58 = vadd.f32 %v4171_v55, %v2325_v6  ;;  %v2319_v50 = vadd.f32 %v5825_v18, %v2095_v9  ;;  %v5831_v55 = vld [vmem:[#allocation16_spill] sm:$0xff]  ;;  %v2821_v47 = vadd.f32 %v5833_v4, %v2635_v30 }
 0x19f   : > { %5824 = vst [vmem:[#allocation27_spill] sm:$0xff] %v5583_v34  ;;  %v2606_v13 = vpop.f32.mrf.mxu0  ;;  %v2098_v34 = vadd.f32 %v2059_v5, %v5515_v1  ;;  %v2318_v1 = vadd.f32 %v5539_v44, %v2094_v41  ;;  %v2324_v25 = vadd.f32 %v4138_v16, %v2100_v29  ;;  %v2103_v44 = vadd.f32 %v2078_v8, %v5527_v48  ;;  %v5829_v29 = vld [vmem:[#allocation14_spill] sm:$0xff] }
 0x1a0   : > { %v5589_v11 = vpop.f32.mrf.mxu1  ;;  %v2640_v5 = vadd.f32 %v4166_v63, %v2320_v46  ;;  %v2326_v48 = vadd.f32 %v5827_v33, %v2102_v40  ;;  %v2643_v57 = vadd.f32 %v2606_v13, %v2323_v15  ;;  %v2820_v63 = vadd.f32 %v5831_v55, %v2634_v14  ;;  %v5838_v13 = vld [vmem:[#allocation21_spill] sm:$0xff] }
 0x1a1   : > { %v5593_v24 = vpop.f32.mrf.mxu0  ;;  %v2322_v10 = vadd.f32 %v2283_v32, %v2098_v34  ;;  %v2638_v2 = vadd.f32 %v2587_v26, %v2318_v1  ;;  %v2644_v32 = vadd.f32 %v4170_v60, %v2324_v25  ;;  %v5828_v34 = vld [vmem:[#allocation13_spill] sm:$0xff]  ;;  %v2327_v28 = vadd.f32 %v5829_v29, %v2103_v44  ;;  %v5840_v44 = vld [vmem:[#allocation23_spill] sm:$0xff] }
 0x1a2   : > { %v5597_v31 = vpop.f32.mrf.mxu1  ;;  %v2329_v8 = vadd.f32 %v5828_v34, %v2105_v56  ;;  %v2822_v60 = vadd.f32 %v5830_v39, %v2636_v22  ;;  %v5832_v26 = vld [vmem:[#allocation17_spill] sm:$0xff]  ;;  %v2826_v3 = vadd.f32 %v5834_v20, %v2640_v5  ;;  %v2641_v46 = vadd.f32 %v5838_v13, %v2321_v35 }
 0x1a3   : > { %v5601_v37 = vpop.f32.mrf.mxu0  ;;  %v2642_v41 = vadd.f32 %v2603_v49, %v2322_v10  ;;  %v2823_v54 = vadd.f32 %v5832_v26, %v2637_v17  ;;  %v2824_v21 = vadd.f32 %v5835_v42, %v2638_v2  ;;  %v5836_v36 = vld [vmem:[#allocation25_spill] sm:$0xff]  ;;  %v2829_v40 = vadd.f32 %v5589_v11, %v2643_v57 }
 0x1a4   : > { %v5607_v53 = vpop.f32.mrf.mxu1  ;;  %v2830_v0 = vadd.f32 %v5836_v36, %v2644_v32  ;;  %v5839_v10 = vld [vmem:[#allocation26_spill] sm:$0xff]  ;;  %v2639_v22 = vadd.f32 %v5840_v44, %v2319_v50  ;;  %v2648_v14 = vadd.f32 %v5593_v24, %v2328_v27 }
 0x1a5   : > { %v4175_v52 = vpop.f32.mrf.mxu0  ;;  %v2828_v38 = vadd.f32 %v5839_v10, %v2642_v41  ;;  %v5841_v27 = vld [vmem:[#allocation22_spill] sm:$0xff] }
 0x1a6   : > { %v5617_v61 = vpop.f32.mrf.mxu1  ;;  %v5837_v45 = vld [vmem:[#allocation27_spill] sm:$0xff]  ;;  %v2649_v2 = vadd.f32 %v4175_v52, %v2329_v8  ;;  %v2827_v33 = vadd.f32 %v5841_v27, %v2641_v46  ;;  %v2646_v52 = vadd.f32 %v5601_v37, %v2326_v48 }
 0x1a7   : > { %v2622_v59 = vpop.f32.mrf.mxu0  ;;  %v2831_v62 = vadd.f32 %v5837_v45, %v2645_v58 }
 0x1a8   : > { %v5622_v16 = vpop.f32.mrf.mxu1  ;;  %v2835_v26 = vadd.f32 %v5617_v61, %v2649_v2 }
 0x1a9   : > { %v4226_v12 = vpop.f32.mrf.mxu0 }
 0x1aa   : > { %v4234_v7 = vpop.f32.mrf.mxu1  ;;  %v3046_v1 = vadd.f32 %v4226_v12, %v2822_v60  ;;  %v5842_v60 = vld [vmem:[#allocation24_spill] sm:$0xff] }
 0x1ab   : > { %v2981_v51 = vpop.f32.mrf.mxu0  ;;  %v5641_v6 = vadd.f32 %v4234_v7, %v2830_v0  ;;  %v2647_v7 = vadd.f32 %v2622_v59, %v2327_v28  ;;  %v2825_v55 = vadd.f32 %v5842_v60, %v2639_v22 }
 0x1ac   : > { %v3013_v43 = vpop.f32.mrf.mxu1  ;;  %v3044_v19 = vadd.f32 %v2981_v51, %v2820_v63  ;;  %v3084_v29 = vmul.f32 %v3046_v1, %v3046_v1  ;;  %v2834_v63 = vadd.f32 %v5597_v31, %v2648_v14 }
 0x1ad   : > { %v4227_v49 = vpop.f32.mrf.mxu0  ;;  %v5647_v32 = vadd.f32 %v3013_v43, %v2828_v38  ;;  %v2832_v43 = vadd.f32 %v5607_v53, %v2646_v52  ;;  %v2833_v20 = vadd.f32 %v5622_v16, %v2647_v7 }
 0x1ae   : > { %v3047_v9 = vadd.f32 %v4227_v49, %v2823_v54  ;;  %v4235_v25 = vpop.f32.mrf.mxu1  ;;  %v3082_v35 = vmul.f32 %v3044_v19, %v3044_v19 }
 0x1af   : > { %v5643_v15 = vadd.f32 %v4235_v25, %v2831_v62  ;;  %v2984_v56 = vpop.f32.mrf.mxu0  ;;  %v3090_v22 = vmul.f32 %v5647_v32, %v5647_v32 }
 0x1b0   : > { %v3769_v17 = vpack.c.bf16 %v3047_v9, %v3046_v1  ;;  %v3045_v30 = vadd.f32 %v2984_v56, %v2821_v47  ;;  %v3016_v5 = vpop.f32.mrf.mxu1  ;;  %v3085_v54 = vmul.f32 %v3047_v9, %v3047_v9 }
 0x1b1   : > { %v3789_v58 = vpack.c.bf16 %v5643_v15, %v5641_v6  ;;  %v5651_v11 = vadd.f32 %v3016_v5, %v2829_v40  ;;  %v4230_v12 = vpop.f32.mrf.mxu0 }
 0x1b2   : > { %3801 = vst [vmem:[%s4529_s12 + $0x8] sm:$0xff] %v3769_v17   ;;  %v3060_v18 = vadd.f32 %v3045_v30, %v3044_v19  ;;  %v3083_v50 = vmul.f32 %v3045_v30, %v3045_v30  ;;  %v3764_v23 = vpack.c.bf16 %v3045_v30, %v3044_v19  ;;  %v4238_v24 = vpop.f32.mrf.mxu1  ;;  %v3050_v48 = vadd.f32 %v4230_v12, %v2826_v3 }
 0x1b3   : > { %3805 = vst [vmem:[%s4529_s12 + $0x28] sm:$0xff] %v3789_v58   ;;  %v3784_v34 = vpack.c.bf16 %v5651_v11, %v5647_v32  ;;  %v2997_v8 = vpop.f32.mrf.mxu0  ;;  %v3058_v42 = vadd.f32 %v4238_v24, %v2834_v63  ;;  %v3091_v30 = vmul.f32 %v5651_v11, %v5651_v11  ;;  %v3092_v58 = vmul.f32 %v5641_v6, %v5641_v6 }
 0x1b4   : > { %v3061_v41 = vadd.f32 %v3060_v18, %v3046_v1  ;;  %v3098_v57 = vadd.f32 %v3083_v50, %v3082_v35  ;;  %3765 = vst [vmem:[%s4529_s12] sm:$0xff] %v3764_v23   ;;  %v3048_v51 = vadd.f32 %v2997_v8, %v2824_v21  ;;  %v3029_v39 = vpop.f32.mrf.mxu1  ;;  %v3088_v25 = vmul.f32 %v3050_v48, %v3050_v48 }
 0x1b5   : > { %3804 = vst [vmem:[%s4529_s12 + $0x20] sm:$0xff] %v3784_v34   ;;  %v4231_v37 = vpop.f32.mrf.mxu0  ;;  %v3056_v1 = vadd.f32 %v3029_v39, %v2832_v43  ;;  %v3093_v18 = vmul.f32 %v5643_v15, %v5643_v15  ;;  %v3096_v34 = vmul.f32 %v3058_v42, %v3058_v42 }
 0x1b6   : > { %v3099_v59 = vadd.f32 %v3098_v57, %v3084_v29  ;;  %v3062_v28 = vadd.f32 %v3061_v41, %v3047_v9  ;;  %v3051_v4 = vadd.f32 %v4231_v37, %v2827_v33  ;;  %v4239_v47 = vpop.f32.mrf.mxu1  ;;  %v3086_v0 = vmul.f32 %v3048_v51, %v3048_v51 }
 0x1b7   : > { %v3059_v21 = vadd.f32 %v4239_v47, %v2835_v26  ;;  %v3000_v36 = vpop.f32.mrf.mxu0 }
 0x1b8   : > { %v3063_v31 = vadd.f32 %v3062_v28, %v3048_v51  ;;  %v3100_v61 = vadd.f32 %v3099_v59, %v3085_v54  ;;  %v3779_v45 = vpack.c.bf16 %v3051_v4, %v3050_v48  ;;  %v3032_v62 = vpop.f32.mrf.mxu1  ;;  %v3049_v49 = vadd.f32 %v3000_v36, %v2825_v55 }
 0x1b9   : > { %v3799_v3 = vpack.c.bf16 %v3059_v21, %v3058_v42  ;;  %v3057_v13 = vadd.f32 %v3032_v62, %v2833_v20  ;;  %v3089_v40 = vmul.f32 %v3051_v4, %v3051_v4  ;;  %v3097_v29 = vmul.f32 %v3059_v21, %v3059_v21 }
 0x1ba   : > { %v3101_v46 = vadd.f32 %v3100_v61, %v3086_v0  ;;  %3803 = vst [vmem:[%s4529_s12 + $0x18] sm:$0xff] %v3779_v45   ;;  %v3064_v53 = vadd.f32 %v3063_v31, %v3049_v49  ;;  %v3087_v19 = vmul.f32 %v3049_v49, %v3049_v49  ;;  %v3774_v16 = vpack.c.bf16 %v3049_v49, %v3048_v51 }
 0x1bb   : > { %3807 = vst [vmem:[%s4529_s12 + $0x38] sm:$0xff] %v3799_v3   ;;  %v3794_v9 = vpack.c.bf16 %v3057_v13, %v3056_v1  ;;  %v3095_v52 = vmul.f32 %v3057_v13, %v3057_v13 }
 0x1bc   : > { %v3065_v10 = vadd.f32 %v3064_v53, %v3050_v48  ;;  %v3102_v38 = vadd.f32 %v3101_v46, %v3087_v19  ;;  %3802 = vst [vmem:[%s4529_s12 + $0x10] sm:$0xff] %v3774_v16  }
 0x1bd   : > { %3806 = vst [vmem:[%s4529_s12 + $0x30] sm:$0xff] %v3794_v9  }
 0x1be   : > { %v3066_v56 = vadd.f32 %v3065_v10, %v3051_v4  ;;  %v3103_v44 = vadd.f32 %v3102_v38, %v3088_v25 }
 0x1c0   : > { %v3067_v14 = vadd.f32 %v3066_v56, %v5647_v32  ;;  %v3104_v17 = vadd.f32 %v3103_v44, %v3089_v40  ;;  %v3094_v32 = vmul.f32 %v3056_v1, %v3056_v1 }
 0x1c2   : > { %v3105_v5 = vadd.f32 %v3104_v17, %v3090_v22  ;;  %v3068_v2 = vadd.f32 %v3067_v14, %v5651_v11 }
 0x1c4   : > { %v3069_v12 = vadd.f32 %v3068_v2, %v5641_v6  ;;  %v3106_v35 = vadd.f32 %v3105_v5, %v3091_v30 }
 0x1c6   : > { %v3070_v50 = vadd.f32 %v3069_v12, %v5643_v15  ;;  %v3107_v23 = vadd.f32 %v3106_v35, %v3092_v58 }
 0x1c8   : > { %v3071_v24 = vadd.f32 %v3070_v50, %v3056_v1  ;;  %v3108_v27 = vadd.f32 %v3107_v23, %v3093_v18 }
 0x1ca   : > { %v3072_v33 = vadd.f32 %v3071_v24, %v3057_v13  ;;  %v3109_v7 = vadd.f32 %v3108_v27, %v3094_v32 }
 0x1cc   : > { %v3073_v11 = vadd.f32 %v3072_v33, %v3058_v42  ;;  %v3110_v8 = vadd.f32 %v3109_v7, %v3095_v52 }
 0x1ce   : > { %v3074_v41 = vadd.f32 %v3073_v11, %v3059_v21  ;;  %v3111_v6 = vadd.f32 %v3110_v8, %v3096_v34 }
 0x1d0   : > { %v3075_v57 = vrot.slane %v3074_v41, 4  ;;  %v3112_v51 = vadd.f32 %v3111_v6, %v3097_v29 }
 0x1d2   : > { %v3076_v39 = vadd.f32 %v3075_v57, %v3074_v41  ;;  %v3113_v60 = vrot.slane %v3112_v51, 4 }
 0x1d4   : > { %v3077_v15 = vrot.slane %v3076_v39, 2  ;;  %v3114_v55 = vadd.f32 %v3113_v60, %v3112_v51 }
 0x1d6   : > { %v3078_v63 = vadd.f32 %v3077_v15, %v3076_v39  ;;  %v3115_v26 = vrot.slane %v3114_v55, 2 }
 0x1d8   : > { %v3079_v54 = vrot.slane %v3078_v63, 1  ;;  %v3116_v37 = vadd.f32 %v3115_v26, %v3114_v55 }
 0x1da   : > { %v3080_v59 = vadd.f32 %v3079_v54, %v3078_v63  ;;  %v3117_v48 = vrot.slane %v3116_v37, 1 }
 0x1dc   : > { %3081 = vst [vmem:[%s258_s18] sm:$0x1] %v3080_v59  ;;  %v3118_v28 = vadd.f32 %v3117_v48, %v3116_v37 }
 0x1de   : > { %3119 = vst [vmem:[%s265_s26] sm:$0x1] %v3118_v28 }
 0x1df PF: > { %s17_s2 = sadd.s32 1, %s4446_s2   ;;  %s5843_s21 = smov %s4438_s1 }
 0x1e0   : > { %p14_p12 = scmp.ge.s32.totalorder %s17_s2, 6   ;;  %s5844_s22 = smov %s4442_s23 }
 0x1e1   : > { %s5845_s1 = smov %s5848_s24  ;;  %s5846_s23 = smov %s5852_s25 }
 0x1e2   :  { %16 = sbr.rel (!%p14_p12) target bundleno = 3 (0x3), region = 234 }
 0x1e7   :  { %3270 = vsyncmov [#allocation3] }
 0x1ea   :  { %s3271_s14 = vpop.sfrf %3270 }
 0x1eb   :  { %p3742_p13 = scmp.ne.s32.totalorder %s3271_s14, 0 }
 0x1ed   :  { %3275 = shalt.err (%p3742_p13)  }
 0x1ee   :  { %3277 = vsyncmov [#allocation3 + $0x1] }
 0x1f1   :  { %s3278_s18 = vpop.sfrf %3277 }
 0x1f2   :  { %p3743_p0 = scmp.ne.s32.totalorder %s3278_s18, 0 }
 0x1f4   :  { %3282 = shalt.err (%p3743_p0)  }
 0x1f5   :  { %3284 = vsyncmov [#allocation3 + $0x2] }
 0x1f8   :  { %s3285_s26 = vpop.sfrf %3284 }
 0x1f9   :  { %p3744_p1 = scmp.ne.s32.totalorder %s3285_s26, 0 }
 0x1fb   :  { %3289 = shalt.err (%p3744_p1)  }

// kernel: upsample_bn_forward.4
= control target key start
LH: loop header
LB: loop body
LE: loop exit
PB: predicated region body
PF: predicated region fallthrough
CT: control target
= control target key end

     0   :  { %s4891_s21 = smov 0   ;;  %s4893_s22 = smov 0   ;;  %s6162_s0 = inlined_call_operand.vmem [shape: bf16[2,256,128], index: 0, kind: input, shape index: {}]   ;;  %s6163_s1 = inlined_call_operand.vmem [shape: f32[1,128], index: 1, kind: input, shape index: {}]   ;;  %s6164_s2 = inlined_call_operand.vmem [shape: f32[1,128], index: 2, kind: input, shape index: {}]   ;;  %s6165_s3 = inlined_call_operand.vmem [shape: bf16[9,128,128], index: 3, kind: input, shape index: {}]   ;;  %s6166_s4 = inlined_call_operand.vmem [shape: bf16[2,256,128], index: 4, kind: output, shape index: {0}]   ;;  %s6167_s5 = inlined_call_operand.vmem [shape: f32[2,2,1,128], index: 5, kind: output, shape index: {1}]   ;;  %s6168_s6 = inlined_call_operand.vmem [shape: f32[2,2,1,128], index: 6, kind: output, shape index: {2}]  }
   0x1   :  { %6179 = sst [smem:[#allocation28_spill]] %s6166_s4  ;;  %s4895_s23 = smov 0  }
   0x2   :  { %s4897_s24 = smov 0   ;;  %s4899_s25 = smov 0  }
   0x3 LB: > { %s26_s26 = sadd.s32 1, %s4842_s23  ;;  %s29_s27 = sadd.s32 1, %s4846_s24  ;;  %s4850_s25 = sphi %s4899_s25, %s17_s25   ;;  %s4846_s24 = sphi %s4897_s24, %s6304_s24   ;;  %s4842_s23 = sphi %s4895_s23, %s6303_s23   ;;  %s4838_s22 = sphi %s4893_s22, %s6302_s22   ;;  %s4834_s21 = sphi %s4891_s21, %s6301_s21  }
   0x4   : > { %p27_p0 = scmp.ge.s32.totalorder %s26_s26, 2  ;;  %p3667_p1 = scmp.ge.s32.totalorder %s4850_s25, 1 }
   0x5   : > { %p201_p2 = scmp.lt.s32.totalorder %s4850_s25, 5 }
   0x6   : > { %s6306_s26 = smov (%p27_p0, %s26_s26), 0  ;;  %s6308_s27 = smov (!%p27_p0, %s29_s27), %s4846_s24 }
   0x7   : > { %p202_p3 = pnand %p3667_p1, %p201_p2  ;;  %p31_p4 = scmp.ge.s32.totalorder %s6308_s27, 2 }
   0x9   : > { %s6310_s27 = smov (%p31_p4, %s6308_s27), 0  ;;  %205 = sbr.rel (%p202_p3) target bundleno = 510 (0x1fe), region = 32 }
   0xe   : > { %s3668_s28 = sshll.u32 %s4834_s21, 4  ;;  %p243_p5 = scmp.lt.s32.totalorder %s4838_s22, 1 }
   0xf   : > { %p245_p6 = scmp.lt.s32.totalorder %s3668_s28, 31  ;;  %p254_p7 = scmp.lt.s32.totalorder %s4834_s21, 1 }
  0x10   : > { %s244_s29 = scalar_select %p243_p5, %s4838_s22, 1 }
  0x11   : > { %s6312_s28 = smov (!%p245_p6, %s3668_s28), 31  ;;  %s3673_s9 = sshll.u32 %s4834_s21, 3 }
  0x12   : > { %s3669_s30 = sshll.u32 %s244_s29, 5  ;;  %s3671_s7 = sshll.u32 %s244_s29, 1 }
  0x13   : > { %s248_s8 = sadd.s32 %s3669_s30, %s6312_s28  ;;  %s3674_s11 = sadd.s32 4294967295, %s3673_s9 }
  0x14   : > { %s3670_s10 = sshll.u32 %s248_s8, 2  ;;  %s6180_s4 = sld [smem:[#allocation28_spill]] }
  0x15   : > { %p271_p8 = scmp.gt.s32.totalorder %s3674_s11, 0  ;;  %s273_s17 = sadd.s32 8, %s3673_s9 }
  0x16   : > { %s255_s15 = scalar_select %p254_p7, %s4834_s21, 1 }
  0x17   : > { %s6314_s11 = smov (!%p271_p8, %s3674_s11), 0  ;;  %p274_p9 = scmp.lt.s32.totalorder %s273_s17, 15 }
  0x18   : > { %s4936_s16 = sadd.s32 %s3671_s7, %s255_s15  ;;  %s3675_s8 = sshll.u32 %s6314_s11, 4 }
  0x19   : > { %s258_s20 = scalar_lea.vmem %s6167_s5, %s4936_s16  ;;  %s279_s12 = sshra.s32 %s3675_s8, 3 }
  0x1a   : > { %s4933_s14 = scalar_lea.vmem %s6180_s4, %s3670_s10  ;;  %s3676_s10 = sshll.u32 %s4834_s21, 7 }
  0x1b   : > { %s6316_s17 = smov (!%p274_p9, %s273_s17), 15  ;;  %s4950_s7 = sshll.u32 %s4838_s22, 5 }
  0x1c   : > { %s3677_s13 = sshll.u32 %s6316_s17, 4  ;;  %s282_s9 = sadd.s32 %s4950_s7, %s279_s12 }
  0x1d   : > { %s3679_s15 = sshll.u32 %s282_s9, 2 }
  0x1e   : > { %s284_s19 = scalar_lea.vmem %s6162_s0, %s3679_s15 }
  0x1f   : > { %v318_v0 = vld [vmem:[%s284_s19] sm:$0xff] }
  0x20   : > { %319 = vst [vmem:[#allocation2] sm:$0xff] %v318_v0 }
  0x21   : > { %327 = vsyncadd [#allocation3], 128  ;;  %s328_s11 = sshra.s32 %s3676_s10, 3 }
  0x22   : > { %s330_s28 = sadd.s32 %s4950_s7, %s328_s11 }
  0x23   : > { %s3680_s29 = sshll.u32 %s330_s28, 2 }
  0x24   : > { %s332_s22 = scalar_lea.vmem %s6162_s0, %s3680_s29 }
  0x25   : > { %v368_v1 = vld [vmem:[%s332_s22] sm:$0xff]  ;;  %v370_v2 = vld [vmem:[%s332_s22 + $0x8] sm:$0xff]  ;;  %v372_v3 = vld [vmem:[%s332_s22 + $0x10] sm:$0xff] }
  0x26   : > { %369 = vst [vmem:[#allocation2 + $0x8] sm:$0xff] %v368_v1  ;;  %371 = vst [vmem:[#allocation2 + $0x10] sm:$0xff] %v370_v2  ;;  %v374_v4 = vld [vmem:[%s332_s22 + $0x18] sm:$0xff]  ;;  %v376_v5 = vld [vmem:[%s332_s22 + $0x20] sm:$0xff] }
  0x27   : > { %373 = vst [vmem:[#allocation2 + $0x18] sm:$0xff] %v372_v3  ;;  %v378_v6 = vld [vmem:[%s332_s22 + $0x28] sm:$0xff]  ;;  %375 = vst [vmem:[#allocation2 + $0x20] sm:$0xff] %v374_v4  ;;  %v380_v7 = vld [vmem:[%s332_s22 + $0x30] sm:$0xff] }
  0x28   : > { %377 = vst [vmem:[#allocation2 + $0x28] sm:$0xff] %v376_v5  ;;  %379 = vst [vmem:[#allocation2 + $0x30] sm:$0xff] %v378_v6  ;;  %v382_v8 = vld [vmem:[%s332_s22 + $0x38] sm:$0xff] }
  0x29   : > { %381 = vst [vmem:[#allocation2 + $0x38] sm:$0xff] %v380_v7  ;;  %383 = vst [vmem:[#allocation2 + $0x40] sm:$0xff] %v382_v8 }
  0x2a   : > { %391 = vsyncadd [#allocation3 + $0x1], 1024  ;;  %s392_s4 = sshra.s32 %s3677_s13, 3 }
  0x2b   : > { %s394_s17 = sadd.s32 %s4950_s7, %s392_s4 }
  0x2c   : > { %s3681_s30 = sshll.u32 %s394_s17, 2 }
  0x2d   : > { %s396_s9 = scalar_lea.vmem %s6162_s0, %s3681_s30 }
  0x2e   : > { %v432_v9 = vld [vmem:[%s396_s9] sm:$0xff] }
  0x2f   : > { %433 = vst [vmem:[#allocation2 + $0x48] sm:$0xff] %v432_v9 }
  0x30   : > { %441 = vsyncadd [#allocation3 + $0x2], 128 }
  0x31   : > { %4826 = dma.done.wait [#allocation3], 128 }
  0x32   : > { %4827 = vsyncadd [#allocation3], 4294967168 }
  0x33   : > { %4828 = dma.done.wait [#allocation3 + $0x1], 1024 }
  0x34   : > { %4829 = vsyncadd [#allocation3 + $0x1], 4294966272 }
  0x35   : > { %4830 = dma.done.wait [#allocation3 + $0x2], 128 }
  0x36   : > { %4831 = vsyncadd [#allocation3 + $0x2], 4294967168  ;;  %v4058_v10 = vld [vmem:[#allocation2] sm:$0xff]   ;;  %v4187_v14 = vld [vmem:[#allocation2 + $0x8] sm:$0xff]   ;;  %p3704_p10 = scmp.ne.s32.totalorder %s4834_s21, 0 }
  0x37   : > { %v4968_v11 = vld [vmem:[%s6163_s1] ss:$0 sm:$0xff]  ;;  %v4059_v12 = vunpack.c.l.bf16 %v4058_v10  ;;  %v4060_v13 = vunpack.c.h.bf16 %v4058_v10  ;;  %v4188_v15 = vld [vmem:[#allocation2 + $0x10] sm:$0xff]   ;;  %v4189_v16 = vld [vmem:[#allocation2 + $0x18] sm:$0xff]   ;;  %v4063_v18 = vunpack.c.l.bf16 %v4187_v14  ;;  %v4064_v19 = vunpack.c.h.bf16 %v4187_v14 }
  0x38   : > { %v4973_v17 = vld [vmem:[%s6164_s2] ss:$0 sm:$0xff]  ;;  %v4067_v20 = vunpack.c.l.bf16 %v4188_v15  ;;  %v4068_v21 = vunpack.c.h.bf16 %v4188_v15  ;;  %v4071_v24 = vunpack.c.l.bf16 %v4189_v16  ;;  %v4072_v25 = vunpack.c.h.bf16 %v4189_v16  ;;  %v4191_v45 = vld [vmem:[#allocation2 + $0x28] sm:$0xff]   ;;  %v4192_v58 = vld [vmem:[#allocation2 + $0x30] sm:$0xff]  }
  0x39   : > { %v499_v22 = vmul.f32 %v4059_v12, %v4968_v11  ;;  %v500_v23 = vmul.f32 %v4060_v13, %v4968_v11  ;;  %v501_v26 = vmul.f32 %v4063_v18, %v4968_v11  ;;  %v502_v27 = vmul.f32 %v4064_v19, %v4968_v11  ;;  %v4190_v44 = vld [vmem:[#allocation2 + $0x20] sm:$0xff]   ;;  %v4193_v14 = vld [vmem:[#allocation2 + $0x38] sm:$0xff]  }
  0x3a   : > { %v503_v28 = vmul.f32 %v4067_v20, %v4968_v11  ;;  %v504_v29 = vmul.f32 %v4068_v21, %v4968_v11  ;;  %v505_v32 = vmul.f32 %v4071_v24, %v4968_v11  ;;  %v506_v33 = vmul.f32 %v4072_v25, %v4968_v11  ;;  %v4194_v25 = vld [vmem:[#allocation2 + $0x40] sm:$0xff]  }
  0x3b   : > { %v526_v30 = vadd.f32 %v4973_v17, %v499_v22  ;;  %v527_v31 = vadd.f32 %v4973_v17, %v500_v23  ;;  %v528_v34 = vadd.f32 %v4973_v17, %v501_v26  ;;  %v529_v35 = vadd.f32 %v4973_v17, %v502_v27 }
  0x3c   : > { %v530_v36 = vadd.f32 %v4973_v17, %v503_v28  ;;  %v531_v37 = vadd.f32 %v4973_v17, %v504_v29  ;;  %v532_v52 = vadd.f32 %v4973_v17, %v505_v32  ;;  %v533_v53 = vadd.f32 %v4973_v17, %v506_v33 }
  0x3d   : > { %vm546_vm0 = vcmp.gt.f32.partialorder %v526_v30, 0.0  ;;  %vm547_vm1 = vcmp.gt.f32.partialorder %v527_v31, 0.0  ;;  %v566_v38 = vmul.f32 0.01, %v526_v30  ;;  %v567_v39 = vmul.f32 0.01, %v527_v31 }
  0x3e   : > { %vm548_vm2 = vcmp.gt.f32.partialorder %v528_v34, 0.0  ;;  %vm549_vm3 = vcmp.gt.f32.partialorder %v529_v35, 0.0  ;;  %v568_v40 = vmul.f32 0.01, %v528_v34  ;;  %v569_v41 = vmul.f32 0.01, %v529_v35 }
  0x3f   : > { %v586_v42 = vsel %vm546_vm0, %v526_v30, %v566_v38  ;;  %v587_v43 = vsel %vm547_vm1, %v527_v31, %v567_v39  ;;  %vm550_vm4 = vcmp.gt.f32.partialorder %v530_v36, 0.0  ;;  %vm551_vm5 = vcmp.gt.f32.partialorder %v531_v37, 0.0 }
  0x40   : > { %v4100_v46 = vpack.c.bf16 %v587_v43, %v586_v42  ;;  %v588_v47 = vsel %vm548_vm2, %v528_v34, %v568_v40  ;;  %v589_v48 = vsel %vm549_vm3, %v529_v35, %v569_v41  ;;  %v570_v49 = vmul.f32 0.01, %v530_v36 }
  0x41   : > { %v4105_v50 = vpack.c.bf16 %v589_v48, %v588_v47  ;;  %v571_v51 = vmul.f32 0.01, %v531_v37  ;;  %v4075_v55 = vunpack.c.l.bf16 %v4190_v44  ;;  %v4076_v56 = vunpack.c.h.bf16 %v4190_v44 }
  0x42   : > { %4101 = vst [vmem:[#allocation2] sm:$0xff] %v4100_v46   ;;  %v590_v54 = vsel %vm550_vm4, %v530_v36, %v570_v49  ;;  %v4079_v57 = vunpack.c.l.bf16 %v4191_v45  ;;  %vm552_vm6 = vcmp.gt.f32.partialorder %v532_v52, 0.0  ;;  %vm553_vm7 = vcmp.gt.f32.partialorder %v533_v53, 0.0  ;;  %v4195_v36 = vld [vmem:[#allocation2 + $0x48] sm:$0xff]  }
  0x43   : > { %4196 = vst [vmem:[#allocation2 + $0x8] sm:$0xff] %v4105_v50   ;;  %v591_v59 = vsel %vm551_vm5, %v531_v37, %v571_v51  ;;  %v572_v60 = vmul.f32 0.01, %v532_v52  ;;  %v573_v62 = vmul.f32 0.01, %v533_v53  ;;  %v507_v63 = vmul.f32 %v4075_v55, %v4968_v11 }
  0x44   : > { %v4110_v61 = vpack.c.bf16 %v591_v59, %v590_v54  ;;  %v508_v0 = vmul.f32 %v4076_v56, %v4968_v11  ;;  %v4080_v2 = vunpack.c.h.bf16 %v4191_v45  ;;  %v509_v3 = vmul.f32 %v4079_v57, %v4968_v11 }
  0x45   : > { %v592_v1 = vsel %vm552_vm6, %v532_v52, %v572_v60  ;;  %v4083_v4 = vunpack.c.l.bf16 %v4192_v58  ;;  %v593_v5 = vsel %vm553_vm7, %v533_v53, %v573_v62  ;;  %v534_v6 = vadd.f32 %v4973_v17, %v507_v63 }
  0x46   : > { %4197 = vst [vmem:[#allocation2 + $0x10] sm:$0xff] %v4110_v61   ;;  %v535_v7 = vadd.f32 %v4973_v17, %v508_v0  ;;  %v4084_v8 = vunpack.c.h.bf16 %v4192_v58  ;;  %v4115_v9 = vpack.c.bf16 %v593_v5, %v592_v1  ;;  %v510_v10 = vmul.f32 %v4080_v2, %v4968_v11 }
  0x47   : > { %v536_v12 = vadd.f32 %v4973_v17, %v509_v3  ;;  %v511_v13 = vmul.f32 %v4083_v4, %v4968_v11  ;;  %vm554_vm8 = vcmp.gt.f32.partialorder %v534_v6, 0.0  ;;  %v574_v15 = vmul.f32 0.01, %v534_v6 }
  0x48   : > { %vm555_vm9 = vcmp.gt.f32.partialorder %v535_v7, 0.0  ;;  %v575_v16 = vmul.f32 0.01, %v535_v7  ;;  %4198 = vst [vmem:[#allocation2 + $0x18] sm:$0xff] %v4115_v9   ;;  %v537_v18 = vadd.f32 %v4973_v17, %v510_v10  ;;  %v512_v20 = vmul.f32 %v4084_v8, %v4968_v11 }
  0x49   : > { %vm556_vm10 = vcmp.gt.f32.partialorder %v536_v12, 0.0  ;;  %v576_v19 = vmul.f32 0.01, %v536_v12  ;;  %v594_v21 = vsel %vm554_vm8, %v534_v6, %v574_v15  ;;  %v538_v23 = vadd.f32 %v4973_v17, %v511_v13 }
  0x4a   : > { %v595_v22 = vsel %vm555_vm9, %v535_v7, %v575_v16  ;;  %v4087_v24 = vunpack.c.l.bf16 %v4193_v14  ;;  %vm557_vm11 = vcmp.gt.f32.partialorder %v537_v18, 0.0  ;;  %v577_v27 = vmul.f32 0.01, %v537_v18 }
  0x4b   : > { %v4120_v26 = vpack.c.bf16 %v595_v22, %v594_v21  ;;  %v596_v28 = vsel %vm556_vm10, %v536_v12, %v576_v19  ;;  %v539_v29 = vadd.f32 %v4973_v17, %v512_v20  ;;  %vm558_vm12 = vcmp.gt.f32.partialorder %v538_v23, 0.0 }
  0x4c   : > { %v578_v30 = vmul.f32 0.01, %v538_v23  ;;  %v4088_v31 = vunpack.c.h.bf16 %v4193_v14  ;;  %v597_v32 = vsel %vm557_vm11, %v537_v18, %v577_v27  ;;  %v513_v33 = vmul.f32 %v4087_v24, %v4968_v11 }
  0x4d   : > { %4199 = vst [vmem:[#allocation2 + $0x20] sm:$0xff] %v4120_v26   ;;  %v4091_v34 = vunpack.c.l.bf16 %v4194_v25  ;;  %v4092_v35 = vunpack.c.h.bf16 %v4194_v25  ;;  %v4125_v37 = vpack.c.bf16 %v597_v32, %v596_v28  ;;  %vm559_vm13 = vcmp.gt.f32.partialorder %v539_v29, 0.0 }
  0x4e   : > { %v579_v38 = vmul.f32 0.01, %v539_v29  ;;  %v598_v39 = vsel %vm558_vm12, %v538_v23, %v578_v30  ;;  %v514_v40 = vmul.f32 %v4088_v31, %v4968_v11  ;;  %v540_v41 = vadd.f32 %v4973_v17, %v513_v33 }
  0x4f   : > { %v515_v42 = vmul.f32 %v4091_v34, %v4968_v11  ;;  %v516_v43 = vmul.f32 %v4092_v35, %v4968_v11  ;;  %4200 = vst [vmem:[#allocation2 + $0x28] sm:$0xff] %v4125_v37   ;;  %v4095_v45 = vunpack.c.l.bf16 %v4195_v36  ;;  %v4096_v46 = vunpack.c.h.bf16 %v4195_v36 }
  0x50   : > { %v599_v44 = vsel %vm559_vm13, %v539_v29, %v579_v38  ;;  %v541_v48 = vadd.f32 %v4973_v17, %v514_v40  ;;  %vm560_vm14 = vcmp.gt.f32.partialorder %v540_v41, 0.0  ;;  %v580_v49 = vmul.f32 0.01, %v540_v41 }
  0x51   : > { %v4130_v47 = vpack.c.bf16 %v599_v44, %v598_v39  ;;  %v542_v50 = vadd.f32 %v4973_v17, %v515_v42  ;;  %v543_v51 = vadd.f32 %v4973_v17, %v516_v43  ;;  %v517_v52 = vmul.f32 %v4095_v45, %v4968_v11 }
  0x52   : > { %v518_v53 = vmul.f32 %v4096_v46, %v4968_v11  ;;  %vm561_vm15 = vcmp.gt.f32.partialorder %v541_v48, 0.0  ;;  %v581_v54 = vmul.f32 0.01, %v541_v48  ;;  %v600_v55 = vsel %vm560_vm14, %v540_v41, %v580_v49 }
  0x53   : > { %4201 = vst [vmem:[#allocation2 + $0x30] sm:$0xff] %v4130_v47   ;;  %vm562_vm0 = vcmp.gt.f32.partialorder %v542_v50, 0.0  ;;  %vm563_vm1 = vcmp.gt.f32.partialorder %v543_v51, 0.0  ;;  %v582_v56 = vmul.f32 0.01, %v542_v50  ;;  %v544_v59 = vadd.f32 %v4973_v17, %v517_v52 }
  0x54   : > { %v583_v57 = vmul.f32 0.01, %v543_v51  ;;  %v601_v58 = vsel %vm561_vm15, %v541_v48, %v581_v54  ;;  %v545_v60 = vadd.f32 %v4973_v17, %v518_v53 }
  0x55   : > { %v4135_v61 = vpack.c.bf16 %v601_v58, %v600_v55  ;;  %v602_v62 = vsel %vm562_vm0, %v542_v50, %v582_v56  ;;  %vm564_vm2 = vcmp.gt.f32.partialorder %v544_v59, 0.0  ;;  %v584_v11 = vmul.f32 0.01, %v544_v59 }
  0x56   : > { %v603_v63 = vsel %vm563_vm1, %v543_v51, %v583_v57  ;;  %vm565_vm3 = vcmp.gt.f32.partialorder %v545_v60, 0.0  ;;  %v585_v1 = vmul.f32 0.01, %v545_v60 }
  0x57   : > { %v4140_v0 = vpack.c.bf16 %v603_v63, %v602_v62  ;;  %4202 = vst [vmem:[#allocation2 + $0x38] sm:$0xff] %v4135_v61   ;;  %v604_v2 = vsel %vm564_vm2, %v544_v59, %v584_v11  ;;  %709 = sbr.rel (%p3704_p10) target bundleno = 94 (0x5e), region = 138 }
  0x58   : > { %v605_v3 = vsel %vm565_vm3, %v545_v60, %v585_v1 }
  0x59   : > { %4203 = vst [vmem:[#allocation2 + $0x40] sm:$0xff] %v4140_v0   ;;  %v4145_v4 = vpack.c.bf16 %v605_v3, %v604_v2 }
  0x5b   : > { %4204 = vst [vmem:[#allocation2 + $0x48] sm:$0xff] %v4145_v4  }
  0x5c   : > { %v4852_v5 = vmov 0  }
  0x5d   : > { %710 = vst [vmem:[#allocation2] sm:$0xf] %v4852_v5  ;;  %711 = vst [vmem:[#allocation2 + $0x4] sm:$0xf] %v4852_v5 }
  0x5e PF: > { %p3705_p11 = scmp.ne.s32.totalorder %s4834_s21, 1 }
  0x60   : > { %715 = sbr.rel (%p3705_p11) target bundleno = 103 (0x67), region = 142 }
  0x65   : > { %v4853_v17 = vmov 0  }
  0x66   : > { %716 = vst [vmem:[#allocation2 + $0x48] sm:$0xf] %v4853_v17  ;;  %717 = vst [vmem:[#allocation2 + $0x4c] sm:$0xf] %v4853_v17 }
  0x67 PF: > { %v4704_v6 = vld [vmem:[%s6165_s3 + $0x78] sm:$0xff]   ;;  %v718_v7 = vlaneseq  ;;  %v4706_v9 = vld [vmem:[%s6165_s3 + $0x70] sm:$0xff]   ;;  %v4708_v12 = vld [vmem:[%s6165_s3 + $0x68] sm:$0xff]   ;;  %vm6172_vm7 = vsmask.f32 256  ;;  %v4854_v36 = vmov 0   ;;  %s6300_s12 = scalar_lea.vmem %s6168_s6, %s4936_s16 }
  0x68   : > { %v4705_v8 = vld [vmem:[%s6165_s3 + $0x38] sm:$0xff]   ;;  %4356 = vmatprep.subr.bf16.mxu0 %v4704_v6  ;;  %v4707_v10 = vld [vmem:[%s6165_s3 + $0x30] sm:$0xff]   ;;  %v4709_v14 = vld [vmem:[%s6165_s3 + $0x28] sm:$0xff]   ;;  %vm1093_vm8 = vcmask 1040384   ;;  %vm4855_vm9 = vmmov 1   ;;  %v6199_v45 = vmov 0 }
  0x69   : > { %4388 = vmatprep.subr.bf16.mxu1 %v4705_v8  ;;  %4357 = vmatpush3.bf16.msra.mxu0 %v4704_v6  ;;  %v5033_v13 = vshrl.u32 %v718_v7, 7  ;;  %v4710_v15 = vld [vmem:[%s6165_s3 + $0x60] sm:$0xff]   ;;  %v4712_v21 = vld [vmem:[%s6165_s3 + $0x58] sm:$0xff]   ;;  %v4714_v25 = vld [vmem:[%s6165_s3 + $0x50] sm:$0xff]   ;;  %v6193_v6 = vmov 0 }
  0x6a   : > { %4389 = vmatpush3.bf16.msra.mxu1 %v4705_v8  ;;  %4358 = vmatprep.subr.bf16.mxu0 %v4706_v9  ;;  %v4711_v18 = vld [vmem:[%s6165_s3 + $0x20] sm:$0xff]   ;;  %v4713_v23 = vld [vmem:[%s6165_s3 + $0x18] sm:$0xff]   ;;  %v4715_v27 = vld [vmem:[%s6165_s3 + $0x10] sm:$0xff]  }
  0x6b   : > { %4390 = vmatprep.subr.bf16.mxu1 %v4707_v10  ;;  %v721_v16 = vadd.s32 16, %v5033_v13  ;;  %v739_v19 = vand.u32 15, %v5033_v13  ;;  %v723_v20 = vadd.s32 32, %v5033_v13  ;;  %v725_v24 = vadd.s32 48, %v5033_v13  ;;  %v5064_v29 = vld [vmem:[#allocation2] sm:$0xf]  ;;  %vm1129_vm10 = vmpackc.low %vm4855_vm9, %vm4855_vm9 }
  0x6c   : > { %v960_v30 = vld [vmem:[#allocation2 + $0x4] sm:$0xf]  ;;  %v5066_v31 = vld [vmem:[#allocation2 + $0x3c] sm:$0xf]  ;;  %v5081_v38 = vld [vmem:[#allocation2 + $0x8] sm:$0xff]   ;;  %v5090_v43 = vsel %vm1129_vm10, 65537, %v4854_v36 }
  0x6d   : > { %4359 = vmatpush3.bf16.msra.mxu0 %v4706_v9  ;;  %v753_v22 = vand.u32 15, %v721_v16  ;;  %vm5057_vm4 = vcmp.ne.s32.totalorder %v739_v19, 0  ;;  %v767_v28 = vand.u32 15, %v723_v20  ;;  %v5069_v32 = vcombine.low %v5064_v29, %v960_v30  ;;  %v4716_v42 = vld [vmem:[%s6165_s3 + $0x48] sm:$0xff]   ;;  %v4718_v50 = vld [vmem:[%s6165_s3 + $0x40] sm:$0xff]   ;;  %vm5111_vm13 = vmand %vm1093_vm8, %vm6172_vm7 }
  0x6e   : > { %4391 = vmatpush3.bf16.msra.mxu1 %v4707_v10  ;;  %4360 = vmatprep.subr.bf16.mxu0 %v4708_v12  ;;  %v3706_v33 = vcombine.low %v5066_v31, %v5066_v31  ;;  %vm1128_vm5 = vmpackc.low %vm5057_vm4, %vm5057_vm4  ;;  %v781_v35 = vand.u32 15, %v725_v24  ;;  %v1030_v44 = vshrl.u32 %v5081_v38, 16  ;;  %v4717_v46 = vld [vmem:[%s6165_s3 + $0x8] sm:$0xff]   ;;  %v1033_v52 = vshll.u32 %v5081_v38, 16  ;;  %v4719_v56 = vld [vmem:[%s6165_s3] sm:$0xff]  }
  0x6f   : > { %4392 = vmatprep.subr.bf16.mxu1 %v4709_v14  ;;  %vm5076_vm6 = vcmp.ne.s32.totalorder %v753_v22, 0  ;;  %v1144_v37 = vsel %vm1128_vm5, 65537, %v4854_v36  ;;  %v1023_v39 = vshrl.u32 %v5069_v32, 16  ;;  %4372 = vmatprep.mubr.bf16.mxu0 %v5069_v32  ;;  %v1026_v41 = vshll.u32 %v5069_v32, 16  ;;  %v5139_v62 = vld [vmem:[#allocation2 + $0x10] sm:$0xff]   ;;  %v5141_v63 = vld [vmem:[#allocation2 + $0x18] sm:$0xff]  }
  0x70   : > { %v979_v40 = vshrl.u32 %v3706_v33, 16  ;;  %vm1130_vm11 = vmpackc.low %vm5076_vm6, %vm5076_vm6  ;;  %vm5096_vm12 = vcmp.ne.s32.totalorder %v767_v28, 0  ;;  %v3715_v49 = vcombine.low %v1144_v37, %v5090_v43  ;;  %vm5117_vm14 = vcmp.ne.s32.totalorder %v781_v35, 0  ;;  %v4724_v5 = vld [vmem:[%s6165_s3 + $0xb8] sm:$0xff]   ;;  %v4726_v10 = vld [vmem:[%s6165_s3 + $0xb0] sm:$0xff]  }
  0x71   : > { %4361 = vmatpush3.bf16.msra.mxu0 %v4708_v12  ;;  %v1025_v48 = vrot.slane %v1023_v39, 7  ;;  %v1146_v53 = vsel %vm1130_vm11, 65537, %v4854_v36  ;;  %v727_v55 = vadd.s32 64, %v5033_v13  ;;  %v1032_v59 = vrot.slane %v1030_v44, 7  ;;  %vm1132_vm0 = vmpackc.low %vm5096_vm12, %vm5096_vm12  ;;  %v4725_v7 = vld [vmem:[%s6165_s3 + $0xf8] sm:$0xff]   ;;  %v4727_v16 = vld [vmem:[%s6165_s3 + $0xf0] sm:$0xff]  }
  0x72   : > { %4393 = vmatpush3.bf16.msra.mxu1 %v4709_v14  ;;  %4362 = vmatprep.subr.bf16.mxu0 %v4710_v15  ;;  %v981_v47 = vrot.slane %v979_v40, 3  ;;  %vm5127_vm15 = vcmp.ne.s16.totalorder %v3715_v49, 0  ;;  %v3716_v61 = vcombine.low %v1146_v53, %v5090_v43  ;;  %vm1134_vm1 = vmpackc.low %vm5117_vm14, %vm5117_vm14  ;;  %v1038_v11 = vshrl.u32 %v5139_v62, 16  ;;  %v5188_v20 = vld [vmem:[#allocation2 + $0x20] sm:$0xff]   ;;  %v5191_v22 = vld [vmem:[#allocation2 + $0x28] sm:$0xff]  }
  0x73   : > { %4394 = vmatprep.subr.bf16.mxu1 %v4711_v18  ;;  %v1028_v57 = vor.u32 %v1026_v41, %v1025_v48  ;;  %v795_v0 = vand.u32 15, %v727_v55  ;;  %v1041_v1 = vshll.u32 %v5139_v62, 16  ;;  %v1148_v2 = vsel %vm1132_vm0, 65537, %v4854_v36  ;;  %v4730_v30 = vld [vmem:[%s6165_s3 + $0xa8] sm:$0xff]   ;;  %v5245_v54 = vld [vmem:[#allocation2 + $0x30] sm:$0xff]   ;;  %v4792_v51 = vld [vmem:[%s6165_s3 + $0x238] sm:$0xff]  }
  0x74   : > { %v1046_v3 = vshrl.u32 %v5141_v63, 16  ;;  %v1035_v4 = vor.u32 %v1033_v52, %v1032_v59  ;;  %v729_v17 = vadd.s32 80, %v5033_v13  ;;  %vm5158_vm2 = vcmp.ne.s16.totalorder %v3716_v61, 0  ;;  %v4733_v61 = vld [vmem:[%s6165_s3 + $0xe0] sm:$0xff]   ;;  %v4793_v58 = vld [vmem:[%s6165_s3 + $0x230] sm:$0xff]  }
  0x75   : > { %4363 = vmatpush3.bf16.msra.mxu0 %v4710_v15  ;;  %v1095_v60 = vsel %vm5111_vm13, %v981_v47, %v1028_v57  ;;  %v6194_v6 = vsel %vm5158_vm2, 4294967295, %v6193_v6  ;;  %v1040_v8 = vrot.slane %v1038_v11, 7  ;;  %v1150_v9 = vsel %vm1134_vm1, 65537, %v4854_v36 }
  0x76   : > { %4395 = vmatpush3.bf16.msra.mxu1 %v4711_v18  ;;  %4364 = vmatprep.subr.bf16.mxu0 %v4712_v21  ;;  %v3717_v12 = vcombine.low %v1148_v2, %v5090_v43  ;;  %v1049_v14 = vshll.u32 %v5141_v63, 16  ;;  %v5180_v15 = vrot.slane %v1046_v3, 7  ;;  %v1036_v19 = vsel %vm6172_vm7, %v1025_v48, %v1035_v4  ;;  %v4732_v48 = vld [vmem:[%s6165_s3 + $0xa0] sm:$0xff]  }
  0x77   : > { %4396 = vmatprep.subr.bf16.mxu1 %v4713_v23  ;;  %4404 = vmatprep.mubr.msk.bf16.mxu1 %vm5127_vm15, %v1095_v60  ;;  %v1043_v18 = vor.u32 %v1041_v1, %v1040_v8  ;;  %vm935_vm3 = vcmp.ne.s32.totalorder %v795_v0, 0  ;;  %v731_v24 = vadd.s32 96, %v5033_v13  ;;  %v1054_v26 = vshrl.u32 %v5188_v20, 16  ;;  %v973_v60 = vld [vmem:[#allocation2 + $0x38] sm:$0xf] }
  0x78   : > { %vm1136_vm4 = vmpackc.low %vm935_vm3, %vm935_vm3  ;;  %vm5195_vm5 = vcmp.ne.s16.totalorder %v3717_v12, 0  ;;  %v1057_v33 = vshll.u32 %v5188_v20, 16  ;;  %v1062_v34 = vshrl.u32 %v5191_v22, 16  ;;  %v1051_v37 = vor.u32 %v1049_v14, %v5180_v15 }
  0x79   : > { %4365 = vmatpush3.bf16.msra.mxu0 %v4712_v21  ;;  %v3718_v21 = vcombine.low %v1150_v9, %v5090_v43  ;;  %v1044_v28 = vsel %vm6172_vm7, %v1032_v59, %v1043_v18  ;;  %v5218_v40 = vrot.slane %v1054_v26, 7  ;;  %v1065_v49 = vshll.u32 %v5191_v22, 16  ;;  %v4737_v18 = vld [vmem:[%s6165_s3 + $0xd8] sm:$0xff]  }
  0x7a   : > { %4397 = vmatpush3.bf16.msra.mxu1 %v4713_v23  ;;  %4366 = vmatprep.subr.bf16.mxu0 %v4714_v25  ;;  %v809_v23 = vand.u32 15, %v729_v17  ;;  %v733_v55 = vadd.s32 112, %v5033_v13  ;;  %v1064_v57 = vrot.slane %v1062_v34, 7  ;;  %v6203_v0 = vmov 0 }
  0x7b   : > { %4398 = vmatprep.subr.bf16.mxu1 %v4715_v27  ;;  %vm5221_vm8 = vcmp.ne.s16.totalorder %v3718_v21, 0  ;;  %v1059_v53 = vor.u32 %v1057_v33, %v5218_v40  ;;  %v1070_v2 = vshrl.u32 %v5245_v54, 16  ;;  %v720_v4 = vadd.s32 8, %v5033_v13  ;;  %v4738_v21 = vld [vmem:[%s6165_s3 + $0x90] sm:$0xff]  }
  0x7c   : > { %vm5209_vm6 = vcmp.ne.s32.totalorder %v809_v23, 0  ;;  %v6200_v45 = vsel %vm5221_vm8, 4294967295, %v6199_v45  ;;  %v5267_v17 = vcombine.low %v973_v60, %v5066_v31  ;;  %v1067_v12 = vor.u32 %v1065_v49, %v1064_v57 }
  0x7d   : > { %4367 = vmatpush3.bf16.msra.mxu0 %v4714_v25  ;;  %v6195_v25 = vmov 0  ;;  %vm1138_vm9 = vmpackc.low %vm5209_vm6, %vm5209_vm6 }
  0x7e   : > { %4399 = vmatpush3.bf16.msra.mxu1 %v4715_v27  ;;  %4368 = vmatprep.subr.bf16.mxu0 %v4716_v42  ;;  %v6196_v25 = vsel %vm5195_vm5, 4294967295, %v6195_v25  ;;  %v1152_v27 = vsel %vm1136_vm4, 65537, %v4854_v36  ;;  %v1154_v59 = vsel %vm1138_vm9, 65537, %v4854_v36 }
  0x7f   : > { %4400 = vmatprep.subr.bf16.mxu1 %v4717_v46  ;;  %v3719_v47 = vcombine.low %v1152_v27, %v5090_v43  ;;  %v3720_v9 = vcombine.low %v1154_v59, %v5090_v43  ;;  %v4739_v59 = vld [vmem:[%s6165_s3 + $0xd0] sm:$0xff]  }
  0x81   : > { %4369 = vmatpush3.bf16.msra.mxu0 %v4716_v42  ;;  %v823_v42 = vand.u32 15, %v731_v24  ;;  %vm5258_vm12 = vcmp.ne.s16.totalorder %v3719_v47, 0  ;;  %vm5307_vm1 = vcmp.ne.s16.totalorder %v3720_v9, 0  ;;  %v5316_v47 = vld [vmem:[#allocation2 + $0x10] sm:$0xff]  }
  0x82   : > { %4401 = vmatpush3.bf16.msra.mxu1 %v4717_v46  ;;  %4370 = vmatprep.subr.bf16.mxu0 %v4718_v50  ;;  %v4731_v46 = vld [vmem:[%s6165_s3 + $0xe8] sm:$0xff]   ;;  %v6204_v0 = vsel %vm5258_vm12, 4294967295, %v6203_v0 }
  0x83   : > { %4402 = vmatprep.subr.bf16.mxu1 %v4719_v56  ;;  %vm5238_vm10 = vcmp.ne.s32.totalorder %v823_v42, 0  ;;  %v4744_v42 = vld [vmem:[%s6165_s3 + $0x80] sm:$0xff]  }
  0x84   : > { %vm1140_vm11 = vmpackc.low %vm5238_vm10, %vm5238_vm10 }
  0x85   : > { %4371 = vmatpush3.bf16.msra.mxu0 %v4718_v50  ;;  %v1156_v31 = vsel %vm1140_vm11, 65537, %v4854_v36  ;;  %v1068_v50 = vsel %vm6172_vm7, %v5218_v40, %v1067_v12  ;;  %vm6175_vm11 = vsmask.f32 7424 }
  0x86   : > { %4403 = vmatpush3.bf16.msra.mxu1 %v4719_v56  ;;  %4420 = vmatprep.subr.bf16.mxu0 %v4724_v5  ;;  %v1052_v56 = vsel %vm6172_vm7, %v1040_v8, %v1051_v37  ;;  %v1060_v8 = vsel %vm6172_vm7, %v5180_v15, %v1059_v53  ;;  %v4736_v15 = vld [vmem:[%s6165_s3 + $0x98] sm:$0xff]   ;;  %v3721_v24 = vcombine.low %v1156_v31, %v5090_v43  ;;  %v1081_v37 = vshll.u32 %v5267_v17, 16  ;;  %v5325_v53 = vld [vmem:[#allocation2 + $0x44] sm:$0xf] }
  0x87   : > { %4452 = vmatprep.subr.bf16.mxu1 %v4725_v7  ;;  %v3804_v60 = vcombine.low %v5325_v53, %v5325_v53 }
  0x88   : > { %4373 = vmatmul.mubr.bf16.vlgmr.msra.gmra.mxu0 %v5081_v38  ;;  %vm5340_vm6 = vcmp.ne.s16.totalorder %v3721_v24, 0 }
  0x89   : > { %4405 = vmatmul.mubr.msk.bf16.vlgmr.msra.gmra.mxu1 %vm5158_vm2, %v1036_v19  ;;  %4421 = vmatpush3.bf16.msra.mxu0 %v4724_v5  ;;  %v1073_v5 = vshll.u32 %v5245_v54, 16  ;;  %v746_v19 = vand.u32 15, %v720_v4  ;;  %v1874_v9 = vshrl.u32 %v3804_v60, 16  ;;  %v5404_v60 = vld [vmem:[#allocation2 + $0x18] sm:$0xff]  }
  0x8a   : > { %4453 = vmatpush3.bf16.msra.mxu1 %v4725_v7  ;;  %4422 = vmatprep.subr.bf16.mxu0 %v4726_v10  ;;  %v837_v7 = vand.u32 15, %v733_v55 }
  0x8b   : > { %4454 = vmatprep.subr.bf16.mxu1 %v4727_v16  ;;  %4376 = vmatprep.mubr.bf16.mxu0 %v5139_v62  ;;  %vm5312_vm3 = vcmp.ne.s32.totalorder %v746_v19, 15  ;;  %v6171_v19 = vshrl.u32 %v5316_v47, 16 }
  0x8c   : > { %4408 = vmatprep.mubr.msk.bf16.mxu1 %vm5195_vm5, %v1044_v28  ;;  %vm941_vm14 = vcmp.ne.s32.totalorder %v837_v7, 0  ;;  %v5304_v28 = vld [vmem:[#allocation2 + $0x8] sm:$0xf]  ;;  %vm1605_vm4 = vmpackc.low %vm5312_vm3, %vm5312_vm3  ;;  %v4804_v7 = vld [vmem:[%s6165_s3 + $0x200] sm:$0xff]  }
  0x8d   : > { %4423 = vmatpush3.bf16.msra.mxu0 %v4726_v10  ;;  %v5276_v10 = vrot.slane %v1070_v2, 7  ;;  %vm1142_vm0 = vmpackc.low %vm941_vm14, %vm941_vm14 }
  0x8e   : > { %4455 = vmatpush3.bf16.msra.mxu1 %v4727_v16  ;;  %4424 = vmatprep.subr.bf16.mxu0 %v4730_v30  ;;  %v1078_v16 = vshrl.u32 %v5267_v17, 16  ;;  %v1158_v27 = vsel %vm1142_vm0, 65537, %v4854_v36 }
  0x8f   : > { %4456 = vmatprep.subr.bf16.mxu1 %v4731_v46  ;;  %v1075_v23 = vor.u32 %v1073_v5, %v5276_v10  ;;  %v3722_v40 = vcombine.low %v1158_v27, %v5090_v43  ;;  %v1534_v27 = vrot.slane %v1033_v52, 1  ;;  %v4745_v52 = vld [vmem:[%s6165_s3 + $0xc0] sm:$0xff]  }
  0x90   : > { %4377 = vmatmul.mubr.bf16.gmra.mxu0 %v5141_v63 }
  0x91   : > { %4409 = vmatmul.mubr.msk.bf16.gmra.mxu1 %vm5221_vm8, %v1052_v56  ;;  %4425 = vmatpush3.bf16.msra.mxu0 %v4730_v30  ;;  %v722_v30 = vadd.s32 24, %v5033_v13  ;;  %v1532_v56 = vrot.slane %v1026_v41, 1  ;;  %v1076_v4 = vsel %vm6172_vm7, %v1064_v57, %v1075_v23  ;;  %vm5363_vm14 = vcmp.ne.s16.totalorder %v3722_v40, 0 }
  0x92   : > { %4457 = vmatpush3.bf16.msra.mxu1 %v4731_v46  ;;  %4426 = vmatprep.subr.bf16.mxu0 %v4732_v48  ;;  %v1855_v46 = vld [vmem:[#allocation2 + $0xc] sm:$0xf]  ;;  %v5402_v40 = vrot.slane %v6171_v19, 7  ;;  %v1537_v41 = vrot.slane %v1041_v1, 1  ;;  %v6169_v1 = vshrl.u32 %v5404_v60, 16 }
  0x93   : > { %4458 = vmatprep.subr.bf16.mxu1 %v4733_v61  ;;  %4380 = vmatprep.mubr.bf16.mxu0 %v5188_v20  ;;  %v760_v55 = vand.u32 15, %v722_v30  ;;  %v1533_v24 = vor.u32 %v1532_v56, %v1023_v39  ;;  %v724_v39 = vadd.s32 40, %v5033_v13 }
  0x94   : > { %4412 = vmatprep.mubr.msk.bf16.mxu1 %vm5258_vm12, %v1060_v8  ;;  %v1621_v8 = vsel %vm1605_vm4, 65537, %v4854_v36 }
  0x95   : > { %4427 = vmatpush3.bf16.msra.mxu0 %v4732_v48  ;;  %v1080_v48 = vrot.slane %v1078_v16, 7  ;;  %vm5344_vm9 = vcmp.ne.s32.totalorder %v760_v55, 15  ;;  %v1927_v55 = vshll.u32 %v5316_v47, 16 }
  0x96   : > { %4459 = vmatpush3.bf16.msra.mxu1 %v4733_v61  ;;  %4428 = vmatprep.subr.bf16.mxu0 %v4736_v15  ;;  %v5336_v61 = vcombine.low %v5304_v28, %v1855_v46  ;;  %vm1607_vm10 = vmpackc.low %vm5344_vm9, %vm5344_vm9  ;;  %v3764_v46 = vcombine.low %v5090_v43, %v1621_v8  ;;  %v1535_v8 = vsel %vm6175_vm11, %v1533_v24, %v1534_v27  ;;  %v728_v24 = vadd.s32 72, %v5033_v13 }
  0x97   : > { %4460 = vmatprep.subr.bf16.mxu1 %v4737_v18  ;;  %v1083_v57 = vor.u32 %v1081_v37, %v1080_v48  ;;  %v1623_v32 = vsel %vm1607_vm10, 65537, %v4854_v36 }
  0x98   : > { %4381 = vmatmul.mubr.bf16.gmra.mxu0 %v5191_v22  ;;  %v1917_v31 = vshrl.u32 %v5336_v61, 16  ;;  %v1920_v12 = vshll.u32 %v5336_v61, 16  ;;  %vm5416_vm0 = vcmp.ne.s16.totalorder %v3764_v46, 0 }
  0x99   : > { %4413 = vmatmul.mubr.msk.bf16.gmra.mxu1 %vm5307_vm1, %v1068_v50  ;;  %4429 = vmatpush3.bf16.msra.mxu0 %v4736_v15  ;;  %v4742_v15 = vld [vmem:[%s6165_s3 + $0x88] sm:$0xff]   ;;  %v1876_v50 = vrot.slane %v1874_v9, 3  ;;  %v1084_v56 = vsel %vm6172_vm7, %v5276_v10, %v1083_v57  ;;  %v3765_v10 = vcombine.low %v5090_v43, %v1623_v32  ;;  %v5413_v9 = vld [vmem:[#allocation2 + $0x20] sm:$0xff]   ;;  %v1929_v32 = vor.u32 %v1927_v55, %v5402_v40 }
  0x9a   : > { %4461 = vmatpush3.bf16.msra.mxu1 %v4737_v18  ;;  %4430 = vmatprep.subr.bf16.mxu0 %v4738_v21  ;;  %v4743_v18 = vld [vmem:[%s6165_s3 + $0xc8] sm:$0xff]   ;;  %v5376_v30 = vrot.slane %v1917_v31, 7  ;;  %v6170_v46 = vshrl.u32 %v5413_v9, 16 }
  0x9b   : > { %4462 = vmatprep.subr.bf16.mxu1 %v4739_v59  ;;  %4384 = vmatprep.mubr.bf16.mxu0 %v5245_v54  ;;  %vm5451_vm9 = vcmp.ne.s16.totalorder %v3765_v10, 0 }
  0x9c   : > { %4416 = vmatprep.mubr.msk.bf16.mxu1 %vm5340_vm6, %v1076_v4  ;;  %v1922_v48 = vor.u32 %v1920_v12, %v5376_v30  ;;  %v726_v4 = vadd.s32 56, %v5033_v13 }
  0x9d   : > { %4431 = vmatpush3.bf16.msra.mxu0 %v4738_v21  ;;  %v774_v21 = vand.u32 15, %v724_v39  ;;  %v4752_v39 = vld [vmem:[%s6165_s3 + $0x130] sm:$0xff]  }
  0x9e   : > { %4463 = vmatpush3.bf16.msra.mxu1 %v4739_v59  ;;  %4432 = vmatprep.subr.bf16.mxu0 %v4742_v15  ;;  %v1536_v59 = vor.u32 %v1534_v27, %v1030_v44  ;;  %v1987_v38 = vsel %vm5111_vm13, %v1876_v50, %v1922_v48  ;;  %v1935_v44 = vshll.u32 %v5404_v60, 16  ;;  %v788_v27 = vand.u32 15, %v726_v4  ;;  %v4751_v50 = vld [vmem:[%s6165_s3 + $0x178] sm:$0xff]  }
  0x9f   : > { %4464 = vmatprep.subr.bf16.mxu1 %v4743_v18  ;;  %vm5420_vm3 = vcmp.ne.s32.totalorder %v774_v21, 15  ;;  %v1539_v21 = vor.u32 %v1537_v41, %v1038_v11 }
  0xa0   : > { %4385 = vmatmul.mubr.bf16.gmra.mxu0 %v5267_v17  ;;  %vm1609_vm4 = vmpackc.low %vm5420_vm3, %vm5420_vm3  ;;  %vm950_vm10 = vcmp.ne.s32.totalorder %v788_v27, 15  ;;  %v1538_v4 = vsel %vm6175_vm11, %v1536_v59, %v1537_v41  ;;  %v5472_v41 = vrot.slane %v6170_v46, 7  ;;  %v1943_v59 = vshll.u32 %v5413_v9, 16  ;;  %v4768_v17 = vld [vmem:[%s6165_s3 + $0x148] sm:$0xff]  }
  0xa1   : > { %4417 = vmatmul.mubr.msk.bf16.gmra.mxu1 %vm5363_vm14, %v1084_v56  ;;  %4433 = vmatpush3.bf16.msra.mxu0 %v4742_v15  ;;  %v4750_v15 = vld [vmem:[%s6165_s3 + $0x138] sm:$0xff]   ;;  %v1625_v48 = vsel %vm1609_vm4, 65537, %v4854_v36  ;;  %v5447_v56 = vrot.slane %v6169_v1, 7  ;;  %vm1611_vm3 = vmpackc.low %vm950_vm10, %vm950_vm10  ;;  %v802_v1 = vand.u32 15, %v728_v24  ;;  %v4753_v24 = vld [vmem:[%s6165_s3 + $0x170] sm:$0xff]   ;;  %v1543_v27 = vrot.slane %v1057_v33, 1 }
  0xa2   : > { %4465 = vmatpush3.bf16.msra.mxu1 %v4743_v18  ;;  %4434 = vmatprep.subr.bf16.mxu0 %v4744_v42  ;;  %v3766_v10 = vcombine.low %v5090_v43, %v1625_v48  ;;  %v1627_v11 = vsel %vm1611_vm3, 65537, %v4854_v36  ;;  %v730_v46 = vadd.s32 88, %v5033_v13 }
  0xa3   : > { %4466 = vmatprep.subr.bf16.mxu1 %v4745_v52  ;;  %4436 = vmatprep.mubr.msk.bf16.mxu0 %vm5416_vm0, %v1535_v8  ;;  %v1540_v8 = vrot.slane %v1049_v14, 1  ;;  %v1937_v62 = vor.u32 %v1935_v44, %v5447_v56  ;;  %v1930_v14 = vsel %vm6172_vm7, %v5376_v30, %v1929_v32  ;;  %vm952_vm4 = vcmp.ne.s32.totalorder %v802_v1, 15  ;;  %v1868_v30 = vld [vmem:[#allocation2 + $0x40] sm:$0xf] }
  0xa4   : > { %4468 = vmatprep.mubr.msk.bf16.mxu1 %vm5127_vm15, %v1987_v38  ;;  %v5475_v38 = vld [vmem:[#allocation2 + $0x28] sm:$0xff]   ;;  %v3767_v48 = vcombine.low %v5090_v43, %v1627_v11  ;;  %vm1613_vm10 = vmpackc.low %vm952_vm4, %vm952_vm4  ;;  %vm5492_vm3 = vcmp.ne.s16.totalorder %v3766_v10, 0 }
  0xa5   : > { %4435 = vmatpush3.bf16.msra.mxu0 %v4744_v42  ;;  %v5479_v42 = vld [vmem:[#allocation2 + $0x30] sm:$0xff]   ;;  %v1541_v1 = vsel %vm6175_vm11, %v1539_v21, %v1540_v8  ;;  %v1542_v33 = vor.u32 %v1540_v8, %v1046_v3  ;;  %v1629_v11 = vsel %vm1613_vm10, 65537, %v4854_v36  ;;  %v1938_v19 = vsel %vm6172_vm7, %v5402_v40, %v1937_v62  ;;  %v4756_v21 = vld [vmem:[%s6165_s3 + $0x128] sm:$0xff]  }
  0xa6   : > { %4467 = vmatpush3.bf16.msra.mxu1 %v4745_v52  ;;  %4484 = vmatprep.subr.bf16.mxu0 %v4750_v15  ;;  %v6174_v52 = vshrl.u32 %v5475_v38, 16  ;;  %v1951_v63 = vshll.u32 %v5475_v38, 16  ;;  %v816_v3 = vand.u32 15, %v730_v46  ;;  %v1545_v40 = vor.u32 %v1543_v27, %v1054_v26  ;;  %v5529_v26 = vld [vmem:[#allocation2 + $0x38] sm:$0xff]  }
  0xa7   : > { %4516 = vmatprep.subr.bf16.mxu1 %v4751_v50  ;;  %v1546_v8 = vrot.slane %v1065_v49, 1  ;;  %v1956_v10 = vshrl.u32 %v5479_v42, 16  ;;  %vm5521_vm4 = vcmp.ne.s16.totalorder %v3767_v48, 0  ;;  %v3768_v20 = vcombine.low %v5090_v43, %v1629_v11 }
  0xa8   : > { %4437 = vmatmul.mubr.msk.bf16.vlgmr.msra.gmra.mxu0 %vm5451_vm9, %v1538_v4  ;;  %v5508_v4 = vrot.slane %v6174_v52, 7  ;;  %vm954_vm10 = vcmp.ne.s32.totalorder %v816_v3, 15  ;;  %v3763_v49 = vcombine.low %v5064_v29, %v5064_v29  ;;  %v5534_v62 = vcombine.low %v1868_v30, %v5325_v53 }
  0xa9   : > { %4469 = vmatmul.mubr.msk.bf16.vlgmr.msra.gmra.mxu1 %vm5158_vm2, %v1930_v14  ;;  %4485 = vmatpush3.bf16.msra.mxu0 %v4750_v15  ;;  %v1945_v15 = vor.u32 %v1943_v59, %v5472_v41  ;;  %v4758_v14 = vld [vmem:[%s6165_s3 + $0x120] sm:$0xff]   ;;  %vm1615_vm7 = vmpackc.low %vm954_vm10, %vm954_vm10  ;;  %v1959_v48 = vshll.u32 %v5479_v42, 16  ;;  %v1544_v11 = vsel %vm6175_vm11, %v1542_v33, %v1543_v27  ;;  %v1547_v3 = vsel %vm6175_vm11, %v1545_v40, %v1546_v8 }
  0xaa   : > { %4517 = vmatpush3.bf16.msra.mxu1 %v4751_v50  ;;  %4486 = vmatprep.subr.bf16.mxu0 %v4752_v39  ;;  %v4757_v50 = vld [vmem:[%s6165_s3 + $0x168] sm:$0xff]   ;;  %v1953_v29 = vor.u32 %v1951_v63, %v5508_v4  ;;  %v1631_v53 = vsel %vm1615_vm7, 65537, %v4854_v36  ;;  %v4759_v27 = vld [vmem:[%s6165_s3 + $0x160] sm:$0xff]   ;;  %vm5557_vm10 = vcmp.ne.s16.totalorder %v3768_v20, 0 }
  0xab   : > { %4518 = vmatprep.subr.bf16.mxu1 %v4753_v24  ;;  %4440 = vmatprep.mubr.msk.bf16.mxu0 %vm5492_vm3, %v1541_v1  ;;  %v732_v1 = vadd.s32 104, %v5033_v13  ;;  %v3769_v40 = vcombine.low %v5090_v43, %v1631_v53 }
  0xac   : > { %4472 = vmatprep.mubr.msk.bf16.mxu1 %vm5195_vm5, %v1938_v19  ;;  %v1964_v19 = vshrl.u32 %v5529_v26, 16  ;;  %vm6225_vm5 = vsmask.f32 256 }
  0xad   : > { %4487 = vmatpush3.bf16.msra.mxu0 %v4752_v39  ;;  %v1946_v30 = vsel %vm6225_vm5, %v5447_v56, %v1945_v15  ;;  %v1958_v39 = vrot.slane %v1956_v10, 7  ;;  %v830_v52 = vand.u32 15, %v732_v1  ;;  %v1549_v56 = vrot.slane %v1073_v5, 1 }
  0xae   : > { %4519 = vmatpush3.bf16.msra.mxu1 %v4753_v24  ;;  %4488 = vmatprep.subr.bf16.mxu0 %v4756_v21  ;;  %v1548_v24 = vor.u32 %v1546_v8, %v1062_v34  ;;  %v734_v15 = vadd.s32 120, %v5033_v13  ;;  %v5571_v20 = vrot.slane %v1964_v19, 7  ;;  %v1967_v1 = vshll.u32 %v5529_v26, 16  ;;  %v4762_v8 = vld [vmem:[%s6165_s3 + $0x118] sm:$0xff]  }
  0xaf   : > { %4520 = vmatprep.subr.bf16.mxu1 %v4757_v50  ;;  %vm956_vm7 = vcmp.ne.s32.totalorder %v830_v52, 15  ;;  %v1954_v22 = vsel %vm6225_vm5, %v5472_v41, %v1953_v29  ;;  %v1972_v34 = vshrl.u32 %v5534_v62, 16  ;;  %v1565_v5 = vshll.u32 %v3763_v49, 16 }
  0xb0   : > { %4441 = vmatmul.mubr.msk.bf16.gmra.mxu0 %vm5521_vm4, %v1544_v11  ;;  %vm1617_vm11 = vmpackc.low %vm956_vm7, %vm956_vm7  ;;  %v844_v13 = vand.u32 15, %v734_v15  ;;  %v1961_v52 = vor.u32 %v1959_v48, %v1958_v39  ;;  %vm6228_vm7 = vsmask.f32 7424  ;;  %v1551_v49 = vor.u32 %v1549_v56, %v1070_v2 }
  0xb1   : > { %4473 = vmatmul.mubr.msk.bf16.gmra.mxu1 %vm5221_vm8, %v1946_v30  ;;  %4489 = vmatpush3.bf16.msra.mxu0 %v4756_v21  ;;  %v1633_v11 = vsel %vm1617_vm11, 65537, %v4854_v36  ;;  %v1550_v41 = vsel %vm6228_vm7, %v1548_v24, %v1549_v56  ;;  %v4763_v21 = vld [vmem:[%s6165_s3 + $0x158] sm:$0xff]   ;;  %vm5593_vm8 = vcmp.ne.s16.totalorder %v3769_v40, 0  ;;  %v1552_v29 = vrot.slane %v1081_v37, 1  ;;  %v4764_v30 = vld [vmem:[%s6165_s3 + $0x110] sm:$0xff]   ;;  %v4767_v40 = vld [vmem:[%s6165_s3 + $0x108] sm:$0xff]  }
  0xb2   : > { %4521 = vmatpush3.bf16.msra.mxu1 %v4757_v50  ;;  %4490 = vmatprep.subr.bf16.mxu0 %v4758_v14  ;;  %vm958_vm5 = vcmp.ne.s32.totalorder %v844_v13, 15  ;;  %v3770_v53 = vcombine.low %v5090_v43, %v1633_v11  ;;  %v1974_v54 = vrot.slane %v1972_v34, 7  ;;  %v1975_v2 = vshll.u32 %v5534_v62, 16  ;;  %v4765_v56 = vld [vmem:[%s6165_s3 + $0x150] sm:$0xff]   ;;  %v4769_v11 = vld [vmem:[%s6165_s3 + $0x100] sm:$0xff]  }
  0xb3   : > { %4522 = vmatprep.subr.bf16.mxu1 %v4759_v27  ;;  %4444 = vmatprep.mubr.msk.bf16.mxu0 %vm5557_vm10, %v1547_v3  ;;  %vm1619_vm11 = vmpackc.low %vm958_vm5, %vm958_vm5  ;;  %v1969_v3 = vor.u32 %v1967_v1, %v5571_v20  ;;  %vm6231_vm7 = vsmask.f32 256  ;;  %vm1569_vm5 = vcmask 1047552   ;;  %v1567_v15 = vrot.slane %v1565_v5, 1 }
  0xb4   : > { %4476 = vmatprep.mubr.msk.bf16.mxu1 %vm5258_vm12, %v1954_v22  ;;  %v1635_v24 = vsel %vm1619_vm11, 65537, %v4854_v36  ;;  %v1962_v37 = vsel %vm6231_vm7, %v5508_v4, %v1961_v52  ;;  %vm6232_vm11 = vsmask.f32 7424  ;;  %vm5621_vm12 = vcmp.ne.s16.totalorder %v3770_v53, 0 }
  0xb5   : > { %4491 = vmatpush3.bf16.msra.mxu0 %v4758_v14  ;;  %v3771_v14 = vcombine.low %v5090_v43, %v1635_v24  ;;  %v1553_v36 = vsel %vm6232_vm11, %v1551_v49, %v1552_v29  ;;  %v1970_v43 = vsel %vm6231_vm7, %v1958_v39, %v1969_v3  ;;  %v1554_v4 = vor.u32 %v1552_v29, %v1078_v16  ;;  %vm5636_vm2 = vmand %vm1569_vm5, %vm6232_vm11  ;;  %v4771_v49 = vld [vmem:[%s6165_s3 + $0x1b8] sm:$0xff]   ;;  %v4774_v24 = vld [vmem:[%s6165_s3 + $0x1f0] sm:$0xff]  }
  0xb6   : > { %4523 = vmatpush3.bf16.msra.mxu1 %v4759_v27  ;;  %4492 = vmatprep.subr.bf16.mxu0 %v4762_v8  ;;  %v2360_v22 = vrot.slane %v1920_v12, 1  ;;  %v1977_v39 = vor.u32 %v1975_v2, %v1974_v54  ;;  %v2362_v52 = vrot.slane %v1927_v55, 1  ;;  %v2365_v55 = vrot.slane %v1935_v44, 1  ;;  %v4772_v29 = vld [vmem:[%s6165_s3 + $0x1f8] sm:$0xff]  }
  0xb7   : > { %4524 = vmatprep.subr.bf16.mxu1 %v4763_v21  ;;  %v1571_v16 = vsel %vm5636_vm2, %v1554_v4, %v1567_v15  ;;  %vm5651_vm5 = vcmp.ne.s16.totalorder %v3771_v14, 0  ;;  %v6240_v44 = vshrl.u32 %v5404_v60, 16  ;;  %v6243_v54 = vshrl.u32 %v5413_v9, 16  ;;  %v2585_v4 = vld [vmem:[#allocation2 + $0x14] sm:$0xf] }
  0xb8   : > { %4445 = vmatmul.mubr.msk.bf16.gmra.mxu0 %vm5593_vm8, %v1550_v41  ;;  %v2361_v5 = vor.u32 %v2360_v22, %v1917_v31  ;;  %v4770_v41 = vld [vmem:[%s6165_s3 + $0x140] sm:$0xff]   ;;  %v2371_v14 = vrot.slane %v1951_v63, 1  ;;  %v2374_v15 = vrot.slane %v1959_v48, 1  ;;  %v6244_v63 = vshrl.u32 %v5475_v38, 16 }
  0xb9   : > { %4477 = vmatmul.mubr.msk.bf16.gmra.mxu1 %vm5307_vm1, %v1962_v37  ;;  %4493 = vmatpush3.bf16.msra.mxu0 %v4762_v8  ;;  %v1978_v8 = vsel %vm6231_vm7, %v5571_v20, %v1977_v39  ;;  %v6239_v20 = vshrl.u32 %v5316_v47, 16  ;;  %v2367_v53 = vor.u32 %v2365_v55, %v6240_v44  ;;  %vm6241_vm7 = vmmov %vm6232_vm11  ;;  %v4778_v48 = vld [vmem:[%s6165_s3 + $0x1e0] sm:$0xff]  }
  0xba   : > { %4525 = vmatpush3.bf16.msra.mxu1 %v4763_v21  ;;  %4494 = vmatprep.subr.bf16.mxu0 %v4764_v30  ;;  %v2363_v31 = vsel %vm6232_vm11, %v2361_v5, %v2362_v52  ;;  %vm6242_vm11 = vmmov %vm6241_vm7  ;;  %v2377_v5 = vrot.slane %v1967_v1, 1 }
  0xbb   : > { %4526 = vmatprep.subr.bf16.mxu1 %v4765_v56  ;;  %4448 = vmatprep.mubr.msk.bf16.mxu0 %vm5621_vm12, %v1553_v36  ;;  %v2364_v21 = vor.u32 %v2362_v52, %v6239_v20  ;;  %v5715_v36 = vld [vmem:[#allocation2 + $0x10] sm:$0xf]  ;;  %v3869_v52 = vcombine.low %v5304_v28, %v5304_v28  ;;  %v2380_v28 = vrot.slane %v1975_v2, 1 }
  0xbc   : > { %4480 = vmatprep.mubr.msk.bf16.mxu1 %vm5340_vm6, %v1970_v43  ;;  %v2373_v43 = vor.u32 %v2371_v14, %v6244_v63  ;;  %v5728_v22 = vcombine.low %v5715_v36, %v2585_v4  ;;  %v4782_v20 = vld [vmem:[%s6165_s3 + $0x1d0] sm:$0xff]  }
  0xbd   : > { %4495 = vmatpush3.bf16.msra.mxu0 %v4764_v30  ;;  %v2368_v30 = vrot.slane %v1943_v59, 1  ;;  %v2366_v3 = vsel %vm6241_vm7, %v2364_v21, %v2365_v55  ;;  %v2393_v55 = vshll.u32 %v3869_v52, 16 }
  0xbe   : > { %4527 = vmatpush3.bf16.msra.mxu1 %v4765_v56  ;;  %4496 = vmatprep.subr.bf16.mxu0 %v4767_v40  ;;  %v4775_v56 = vld [vmem:[%s6165_s3 + $0x1a8] sm:$0xff]   ;;  %v2647_v1 = vshrl.u32 %v5728_v22, 16  ;;  %v2650_v21 = vshll.u32 %v5728_v22, 16 }
  0xbf   : > { %4528 = vmatprep.subr.bf16.mxu1 %v4768_v17  ;;  %v2369_v59 = vsel %vm6242_vm11, %v2367_v53, %v2368_v30  ;;  %v2370_v37 = vor.u32 %v2368_v30, %v6243_v54  ;;  %vm6245_vm11 = vmmov %vm6241_vm7  ;;  %v2395_v53 = vrot.slane %v2393_v55, 1  ;;  %v4784_v30 = vld [vmem:[%s6165_s3 + $0x188] sm:$0xff]  }
  0xc0   : > { %4449 = vmatmul.mubr.msk.bf16.gmra.mxu0 %vm5651_vm5, %v1571_v16  ;;  %v2375_v39 = vsel %vm6245_vm11, %v2373_v43, %v2374_v15  ;;  %v2376_v16 = vor.u32 %v2374_v15, %v1956_v10  ;;  %v2649_v2 = vrot.slane %v2647_v1, 7  ;;  %vm6246_vm11 = vmmov %vm6241_vm7  ;;  %v5809_v43 = vld [vmem:[#allocation2 + $0x30] sm:$0xff]  }
  0xc1   : > { %4481 = vmatmul.mubr.msk.bf16.gmra.mxu1 %vm5363_vm14, %v1978_v8  ;;  %4497 = vmatpush3.bf16.msra.mxu0 %v4767_v40  ;;  %v4777_v40 = vld [vmem:[%s6165_s3 + $0x1a0] sm:$0xff]   ;;  %v4780_v8 = vld [vmem:[%s6165_s3 + $0x1d8] sm:$0xff]  }
  0xc2   : > { %4529 = vmatpush3.bf16.msra.mxu1 %v4768_v17  ;;  %4498 = vmatprep.subr.bf16.mxu0 %v4769_v11  ;;  %v5733_v17 = vld [vmem:[#allocation2 + $0x4c] sm:$0xf] }
  0xc3   : > { %4530 = vmatprep.subr.bf16.mxu1 %v4770_v41  ;;  %4500 = vmatprep.mubr.bf16.mxu0 %v5336_v61  ;;  %v4773_v61 = vld [vmem:[%s6165_s3 + $0x1b0] sm:$0xff]   ;;  %v3902_v10 = vcombine.low %v5733_v17, %v5733_v17 }
  0xc4   : > { %4532 = vmatprep.mubr.msk.bf16.mxu1 %vm5416_vm0, %v2363_v31  ;;  %v4781_v31 = vld [vmem:[%s6165_s3 + $0x190] sm:$0xff]  }
  0xc5   : > { %4499 = vmatpush3.bf16.msra.mxu0 %v4769_v11  ;;  %v2379_v11 = vor.u32 %v2377_v5, %v1964_v19  ;;  %v2604_v19 = vshrl.u32 %v3902_v10, 16  ;;  %v5840_v10 = vld [vmem:[#allocation2 + $0x40] sm:$0xff]  }
  0xc6   : > { %4531 = vmatpush3.bf16.msra.mxu1 %v4770_v41  ;;  %4548 = vmatprep.subr.bf16.mxu0 %v4771_v49  ;;  %v2378_v41 = vsel %vm6241_vm7, %v2376_v16, %v2377_v5  ;;  %v5829_v5 = vld [vmem:[#allocation2 + $0x38] sm:$0xff]   ;;  %v2694_v55 = vshrl.u32 %v5840_v10, 16 }
  0xc7   : > { %4580 = vmatprep.subr.bf16.mxu1 %v4772_v29 }
  0xc8   : > { %4501 = vmatmul.mubr.bf16.vlgmr.msra.gmra.mxu0 %v5316_v47  ;;  %v4776_v47 = vld [vmem:[%s6165_s3 + $0x1e8] sm:$0xff]  }
  0xc9   : > { %4533 = vmatmul.mubr.msk.bf16.vlgmr.msra.gmra.mxu1 %vm5451_vm9, %v2366_v3  ;;  %4549 = vmatpush3.bf16.msra.mxu0 %v4771_v49  ;;  %v5770_v49 = vld [vmem:[#allocation2 + $0x20] sm:$0xff]   ;;  %v4785_v3 = vld [vmem:[%s6165_s3 + $0x1c8] sm:$0xff]  }
  0xca   : > { %4581 = vmatpush3.bf16.msra.mxu1 %v4772_v29  ;;  %4550 = vmatprep.subr.bf16.mxu0 %v4773_v61  ;;  %v2381_v29 = vsel %vm6246_vm11, %v2379_v11, %v2380_v28  ;;  %v2665_v63 = vshll.u32 %v5770_v49, 16  ;;  %vm6250_vm11 = vnez %v6196_v25  ;;  %v4797_v25 = vld [vmem:[%s6165_s3 + $0x220] sm:$0xff]  }
  0xcb   : > { %4582 = vmatprep.subr.bf16.mxu1 %v4774_v24  ;;  %4504 = vmatprep.mubr.bf16.mxu0 %v5404_v60  ;;  %v2372_v60 = vsel %vm6241_vm7, %v2370_v37, %v2371_v14  ;;  %v4786_v14 = vld [vmem:[%s6165_s3 + $0x180] sm:$0xff]  }
  0xcc   : > { %4536 = vmatprep.mubr.msk.bf16.mxu1 %vm5492_vm3, %v2369_v59 }
  0xcd   : > { %4551 = vmatpush3.bf16.msra.mxu0 %v4773_v61  ;;  %v2606_v61 = vrot.slane %v2604_v19, 3 }
  0xce   : > { %4583 = vmatpush3.bf16.msra.mxu1 %v4774_v24  ;;  %4552 = vmatprep.subr.bf16.mxu0 %v4775_v56  ;;  %v2652_v24 = vor.u32 %v2650_v21, %v2649_v2 }
  0xcf   : > { %4584 = vmatprep.subr.bf16.mxu1 %v4776_v47 }
  0xd0   : > { %4505 = vmatmul.mubr.bf16.gmra.mxu0 %v5413_v9  ;;  %v4779_v9 = vld [vmem:[%s6165_s3 + $0x198] sm:$0xff]  }
  0xd1   : > { %4537 = vmatmul.mubr.msk.bf16.gmra.mxu1 %vm5521_vm4, %v2372_v60  ;;  %4553 = vmatpush3.bf16.msra.mxu0 %v4775_v56  ;;  %v4787_v56 = vld [vmem:[%s6165_s3 + $0x1c0] sm:$0xff]  }
  0xd2   : > { %4585 = vmatpush3.bf16.msra.mxu1 %v4776_v47  ;;  %4554 = vmatprep.subr.bf16.mxu0 %v4777_v40  ;;  %v2717_v47 = vsel %vm5111_vm13, %v2606_v61, %v2652_v24  ;;  %vm6247_vm13 = vsmask.f32 256 }
  0xd3   : > { %4586 = vmatprep.subr.bf16.mxu1 %v4778_v48  ;;  %4508 = vmatprep.mubr.bf16.mxu0 %v5475_v38  ;;  %v5757_v38 = vld [vmem:[#allocation2 + $0x18] sm:$0xff]   ;;  %vm6249_vm7 = vmmov %vm6247_vm13 }
  0xd4   : > { %4540 = vmatprep.mubr.msk.bf16.mxu1 %vm5557_vm10, %v2375_v39  ;;  %v2654_v44 = vshrl.u32 %v5757_v38, 16  ;;  %v2657_v54 = vshll.u32 %v5757_v38, 16 }
  0xd5   : > { %4555 = vmatpush3.bf16.msra.mxu0 %v4777_v40  ;;  %v2678_v40 = vshrl.u32 %v5809_v43, 16 }
  0xd6   : > { %4587 = vmatpush3.bf16.msra.mxu1 %v4778_v48  ;;  %4556 = vmatprep.subr.bf16.mxu0 %v4779_v9  ;;  %v2656_v59 = vrot.slane %v2654_v44, 7 }
  0xd7   : > { %4588 = vmatprep.subr.bf16.mxu1 %v4780_v8  ;;  %v2680_v52 = vrot.slane %v2678_v40, 7 }
  0xd8   : > { %4509 = vmatmul.mubr.bf16.gmra.mxu0 %v5479_v42  ;;  %v2382_v42 = vor.u32 %v2380_v28, %v1972_v34  ;;  %v2662_v34 = vshrl.u32 %v5770_v49, 16  ;;  %v2659_v4 = vor.u32 %v2657_v54, %v2656_v59  ;;  %v2686_v28 = vshrl.u32 %v5829_v5, 16 }
  0xd9   : > { %4541 = vmatmul.mubr.msk.bf16.gmra.mxu1 %vm5593_vm8, %v2378_v41  ;;  %4557 = vmatpush3.bf16.msra.mxu0 %v4779_v9  ;;  %v2598_v41 = vld [vmem:[#allocation2 + $0x48] sm:$0xf] }
  0xda   : > { %4589 = vmatpush3.bf16.msra.mxu1 %v4780_v8  ;;  %4558 = vmatprep.subr.bf16.mxu0 %v4781_v31  ;;  %v2397_v37 = vsel %vm5636_vm2, %v2382_v42, %v2395_v53  ;;  %v2664_v15 = vrot.slane %v2662_v34, 7  ;;  %v2660_v48 = vsel %vm6247_vm13, %v2649_v2, %v2659_v4  ;;  %v2681_v8 = vshll.u32 %v5809_v43, 16  ;;  %vm6251_vm13 = vmmov %vm6249_vm7  ;;  %v4803_v4 = vld [vmem:[%s6165_s3 + $0x208] sm:$0xff]  }
  0xdb   : > { %4590 = vmatprep.subr.bf16.mxu1 %v4782_v20  ;;  %4512 = vmatprep.mubr.bf16.mxu0 %v5529_v26  ;;  %v5793_v26 = vld [vmem:[#allocation2 + $0x28] sm:$0xff]   ;;  %v2688_v2 = vrot.slane %v2686_v28, 7  ;;  %v2696_v42 = vrot.slane %v2694_v55, 7  ;;  %v2697_v53 = vshll.u32 %v5840_v10, 16 }
  0xdc   : > { %4544 = vmatprep.mubr.msk.bf16.mxu1 %vm5621_vm12, %v2381_v29  ;;  %v2670_v60 = vshrl.u32 %v5793_v26, 16  ;;  %v2673_v16 = vshll.u32 %v5793_v26, 16  ;;  %v2689_v29 = vshll.u32 %v5829_v5, 16 }
  0xdd   : > { %4559 = vmatpush3.bf16.msra.mxu0 %v4781_v31  ;;  %v2683_v31 = vor.u32 %v2681_v8, %v2680_v52  ;;  %v2699_v61 = vor.u32 %v2697_v53, %v2696_v42 }
  0xde   : > { %4591 = vmatpush3.bf16.msra.mxu1 %v4782_v20  ;;  %4560 = vmatprep.subr.bf16.mxu0 %v4784_v30  ;;  %v2672_v39 = vrot.slane %v2670_v60, 7  ;;  %v5854_v20 = vcombine.low %v2598_v41, %v5733_v17 }
  0xdf   : > { %4592 = vmatprep.subr.bf16.mxu1 %v4785_v3 }
  0xe0   : > { %4513 = vmatmul.mubr.bf16.gmra.mxu0 %v5534_v62  ;;  %v2667_v62 = vor.u32 %v2665_v63, %v2664_v15  ;;  %v2675_v11 = vor.u32 %v2673_v16, %v2672_v39  ;;  %v2684_v17 = vsel %vm6249_vm7, %v2672_v39, %v2683_v31 }
  0xe1   : > { %4545 = vmatmul.mubr.msk.bf16.gmra.mxu1 %vm5651_vm5, %v2397_v37  ;;  %4561 = vmatpush3.bf16.msra.mxu0 %v4784_v30  ;;  %v2691_v30 = vor.u32 %v2689_v29, %v2688_v2  ;;  %v2705_v37 = vshll.u32 %v5854_v20, 16 }
  0xe2   : > { %4593 = vmatpush3.bf16.msra.mxu1 %v4785_v3  ;;  %4562 = vmatprep.subr.bf16.mxu0 %v4786_v14  ;;  %v2668_v9 = vsel %vm6249_vm7, %v2656_v59, %v2667_v62  ;;  %v2676_v19 = vsel %vm6251_vm13, %v2664_v15, %v2675_v11  ;;  %v2702_v3 = vshrl.u32 %v5854_v20, 16  ;;  %vm6254_vm13 = vmmov %vm6249_vm7  ;;  %v3101_v15 = vrot.slane %v2681_v8, 1 }
  0xe3   : > { %4594 = vmatprep.subr.bf16.mxu1 %v4787_v56  ;;  %4564 = vmatprep.mubr.msk.bf16.mxu0 %vm5127_vm15, %v2717_v47  ;;  %vm6248_vm15 = vnez %v6194_v6  ;;  %v4796_v6 = vld [vmem:[%s6165_s3 + $0x228] sm:$0xff]   ;;  %v2692_v24 = vsel %vm6254_vm13, %v2680_v52, %v2691_v30 }
  0xe4   : > { %4596 = vmatprep.mubr.bf16.mxu1 %v5728_v22  ;;  %v2704_v59 = vrot.slane %v2702_v3, 7  ;;  %v3103_v62 = vor.u32 %v3101_v15, %v2678_v40  ;;  %v3095_v22 = vrot.slane %v2665_v63, 1  ;;  %v3098_v63 = vrot.slane %v2673_v16, 1 }
  0xe5   : > { %4563 = vmatpush3.bf16.msra.mxu0 %v4786_v14  ;;  %v4801_v14 = vld [vmem:[%s6165_s3 + $0x210] sm:$0xff]  }
  0xe6   : > { %4595 = vmatpush3.bf16.msra.mxu1 %v4787_v56  ;;  %4612 = vmatprep.subr.bf16.mxu0 %v4792_v51  ;;  %v3090_v56 = vrot.slane %v2650_v21, 1  ;;  %v2707_v47 = vor.u32 %v2705_v37, %v2704_v59  ;;  %v3092_v21 = vrot.slane %v2657_v54, 1  ;;  %v3107_v54 = vrot.slane %v2697_v53, 1 }
  0xe7   : > { %4644 = vmatprep.subr.bf16.mxu1 %v4792_v51  ;;  %v3097_v23 = vor.u32 %v3095_v22, %v2662_v34  ;;  %v3100_v57 = vor.u32 %v3098_v63, %v2670_v60 }
  0xe8   : > { %4565 = vmatmul.mubr.msk.bf16.vlgmr.msra.gmra.mxu0 %vm6248_vm15, %v2660_v48  ;;  %vm6252_vm15 = vnez %v6200_v45  ;;  %v4800_v45 = vld [vmem:[%s6165_s3 + $0x218] sm:$0xff]   ;;  %v3091_v35 = vor.u32 %v3090_v56, %v2647_v1  ;;  %v3104_v48 = vrot.slane %v2689_v29, 1 }
  0xe9   : > { %4597 = vmatmul.mubr.bf16.vlgmr.msra.gmra.mxu1 %v5757_v38  ;;  %4613 = vmatpush3.bf16.msra.mxu0 %v4792_v51  ;;  %v3109_v38 = vor.u32 %v3107_v54, %v2694_v55 }
  0xea   : > { %4652 = vmatpush3.bf16.msra.mxu1 %v4792_v51  ;;  %4614 = vmatprep.subr.bf16.mxu0 %v4793_v58  ;;  %v3106_v39 = vor.u32 %v3104_v48, %v2686_v28 }
  0xeb   : > { %4645 = vmatprep.subr.bf16.mxu1 %v4793_v58  ;;  %4568 = vmatprep.mubr.msk.bf16.mxu0 %vm6250_vm11, %v2668_v9  ;;  %vm6253_vm11 = vnez %v6204_v0 }
  0xec   : > { %4600 = vmatprep.mubr.bf16.mxu1 %v5770_v49 }
  0xed   : > { %4615 = vmatpush3.bf16.msra.mxu0 %v4793_v58 }
  0xee   : > { %4653 = vmatpush3.bf16.msra.mxu1 %v4793_v58  ;;  %4616 = vmatprep.subr.bf16.mxu0 %v4796_v6  ;;  %v3967_v58 = vcombine.low %v5715_v36, %v5715_v36 }
  0xef   : > { %4646 = vmatprep.subr.bf16.mxu1 %v4796_v6 }
  0xf0   : > { %4569 = vmatmul.mubr.msk.bf16.gmra.mxu0 %vm6252_vm15, %v2676_v19  ;;  %vm6255_vm15 = vmmov %vm6249_vm7  ;;  %v3123_v36 = vshll.u32 %v3967_v58, 16 }
  0xf1   : > { %4601 = vmatmul.mubr.bf16.gmra.mxu1 %v5793_v26  ;;  %4617 = vmatpush3.bf16.msra.mxu0 %v4796_v6  ;;  %v2700_v0 = vsel %vm6255_vm15, %v2688_v2, %v2699_v61 }
  0xf2   : > { %4654 = vmatpush3.bf16.msra.mxu1 %v4796_v6  ;;  %4618 = vmatprep.subr.bf16.mxu0 %v4797_v25  ;;  %v3125_v9 = vrot.slane %v3123_v36, 1 }
  0xf3   : > { %4647 = vmatprep.subr.bf16.mxu1 %v4797_v25  ;;  %4572 = vmatprep.mubr.msk.bf16.mxu0 %vm6253_vm11, %v2684_v17 }
  0xf4   : > { %4604 = vmatprep.mubr.bf16.mxu1 %v5809_v43  ;;  %v3094_v43 = vor.u32 %v3092_v21, %v2654_v44  ;;  %v3110_v44 = vrot.slane %v2705_v37, 1 }
  0xf5   : > { %4619 = vmatpush3.bf16.msra.mxu0 %v4797_v25 }
  0xf6   : > { %4655 = vmatpush3.bf16.msra.mxu1 %v4797_v25  ;;  %4620 = vmatprep.subr.bf16.mxu0 %v4800_v45  ;;  %v3112_v33 = vor.u32 %v3110_v44, %v2702_v3 }
  0xf7   : > { %4648 = vmatprep.subr.bf16.mxu1 %v4800_v45 }
  0xf8   : > { %4573 = vmatmul.mubr.msk.bf16.gmra.mxu0 %vm5307_vm1, %v2692_v24  ;;  %vm6256_vm1 = vmmov %vm6249_vm7  ;;  %v3127_v18 = vsel %vm5636_vm2, %v3112_v33, %v3125_v9 }
  0xf9   : > { %4605 = vmatmul.mubr.bf16.gmra.mxu1 %v5829_v5  ;;  %4621 = vmatpush3.bf16.msra.mxu0 %v4800_v45  ;;  %v2708_v51 = vsel %vm6256_vm1, %v2696_v42, %v2707_v47 }
  0xfa   : > { %4656 = vmatpush3.bf16.msra.mxu1 %v4800_v45  ;;  %4622 = vmatprep.subr.bf16.mxu0 %v4801_v14 }
  0xfb   : > { %4649 = vmatprep.subr.bf16.mxu1 %v4801_v14  ;;  %4576 = vmatprep.mubr.msk.bf16.mxu0 %vm5340_vm6, %v2700_v0  ;;  %vm6257_vm6 = vsmask.f32 7424 }
  0xfc   : > { %4608 = vmatprep.mubr.bf16.mxu1 %v5840_v10  ;;  %v3093_v1 = vsel %vm6257_vm6, %v3091_v35, %v3092_v21  ;;  %vm6258_vm7 = vmmov %vm6257_vm6 }
  0xfd   : > { %4623 = vmatpush3.bf16.msra.mxu0 %v4801_v14  ;;  %v3105_v40 = vsel %vm6258_vm7, %v3103_v62, %v3104_v48  ;;  %vm6260_vm11 = vmmov %vm6257_vm6 }
  0xfe   : > { %4657 = vmatpush3.bf16.msra.mxu1 %v4801_v14  ;;  %4624 = vmatprep.subr.bf16.mxu0 %v4803_v4  ;;  %v3108_v34 = vsel %vm6260_vm11, %v3106_v39, %v3107_v54  ;;  %vm6261_vm13 = vmmov %vm6257_vm6 }
  0xff   : > { %4650 = vmatprep.subr.bf16.mxu1 %v4803_v4  ;;  %v3099_v16 = vsel %vm6261_vm13, %v3097_v23, %v3098_v63  ;;  %vm6262_vm15 = vmmov %vm6257_vm6 }
 0x100   : > { %4577 = vmatmul.mubr.msk.bf16.gmra.mxu0 %vm5363_vm14, %v2708_v51  ;;  %vm6259_vm14 = vmmov %vm6257_vm6  ;;  %v3111_v5 = vsel %vm6262_vm15, %v3109_v38, %v3110_v44 }
 0x101   : > { %4609 = vmatmul.mubr.bf16.gmra.mxu1 %v5854_v20  ;;  %4625 = vmatpush3.bf16.msra.mxu0 %v4803_v4  ;;  %v3096_v49 = vsel %vm6259_vm14, %v3094_v43, %v3095_v22 }
 0x102   : > { %4658 = vmatpush3.bf16.msra.mxu1 %v4803_v4  ;;  %4626 = vmatprep.subr.bf16.mxu0 %v4804_v7 }
 0x103   : > { %4651 = vmatprep.subr.bf16.mxu1 %v4804_v7  ;;  %4628 = vmatprep.mubr.msk.bf16.mxu0 %vm5416_vm0, %v3093_v1  ;;  %vm6263_vm0 = vmmov %vm6257_vm6 }
 0x104   : > { %4636 = vmatprep.mubr.msk.bf16.mxu1 %vm5557_vm10, %v3105_v40  ;;  %v3102_v52 = vsel %vm6263_vm0, %v3100_v57, %v3101_v15 }
 0x105   : > { %4627 = vmatpush3.bf16.msra.mxu0 %v4804_v7 }
 0x106   : > { %4659 = vmatpush3.bf16.msra.mxu1 %v4804_v7 }
 0x108   : > { %4629 = vmatmul.mubr.msk.bf16.vlgmr.msra.gmra.mxu0 %vm5451_vm9, %v3096_v49 }
 0x109   : > { %4637 = vmatmul.mubr.msk.bf16.vlgmr.msra.gmra.mxu1 %vm5593_vm8, %v3108_v34  ;;  %4632 = vmatprep.mubr.msk.bf16.mxu0 %vm5492_vm3, %v3099_v16 }
 0x10a   : > { %4640 = vmatprep.mubr.msk.bf16.mxu1 %vm5621_vm12, %v3111_v5 }
 0x110   : > { %4633 = vmatmul.mubr.msk.bf16.gmra.mxu0 %vm5521_vm4, %v3102_v52 }
 0x111   : > { %4641 = vmatmul.mubr.msk.bf16.gmra.mxu1 %vm5651_vm5, %v3127_v18 }
 0x148   : > { %v4374_v32 = vpop.f32.mrf.mxu0 }
 0x149   : > { %v4406_v50 = vpop.f32.mrf.mxu1 }
 0x14a   : > { %v1477_v26 = vadd.f32 %v4406_v50, %v4374_v32  ;;  %v1323_v27 = vpop.f32.mrf.mxu0 }
 0x14b   : > { %v1468_v60 = vpop.f32.mrf.mxu1 }
 0x14c   : > { %v1469_v8 = vadd.f32 %v1468_v60, %v1323_v27  ;;  %v4375_v10 = vpop.f32.mrf.mxu0 }
 0x14d   : > { %v4407_v11 = vpop.f32.mrf.mxu1 }
 0x14e   : > { %v1480_v28 = vadd.f32 %v4407_v11, %v4375_v10  ;;  %v1326_v41 = vpop.f32.mrf.mxu0 }
 0x14f   : > { %v1471_v6 = vpop.f32.mrf.mxu1 }
 0x150   : > { %v1472_v31 = vadd.f32 %v1471_v6, %v1326_v41  ;;  %v4378_v13 = vpop.f32.mrf.mxu0 }
 0x151   : > { %v4410_v55 = vpop.f32.mrf.mxu1 }
 0x152   : > { %v1493_v20 = vadd.f32 %v4410_v55, %v4378_v13  ;;  %v1339_v46 = vpop.f32.mrf.mxu0 }
 0x153   : > { %v1484_v19 = vpop.f32.mrf.mxu1 }
 0x154   : > { %v1485_v2 = vadd.f32 %v1484_v19, %v1339_v46  ;;  %v4379_v12 = vpop.f32.mrf.mxu0 }
 0x155   : > { %v4411_v29 = vpop.f32.mrf.mxu1 }
 0x156   : > { %v1496_v25 = vadd.f32 %v4411_v29, %v4379_v12  ;;  %v1342_v17 = vpop.f32.mrf.mxu0 }
 0x157   : > { %v1487_v42 = vpop.f32.mrf.mxu1 }
 0x158   : > { %v1488_v53 = vadd.f32 %v1487_v42, %v1342_v17  ;;  %v4382_v30 = vpop.f32.mrf.mxu0 }
 0x159   : > { %v4414_v3 = vpop.f32.mrf.mxu1 }
 0x15a   : > { %v1509_v45 = vadd.f32 %v4414_v3, %v4382_v30  ;;  %v1355_v61 = vpop.f32.mrf.mxu0 }
 0x15b   : > { %v1500_v24 = vpop.f32.mrf.mxu1 }
 0x15c   : > { %v1501_v59 = vadd.f32 %v1500_v24, %v1355_v61  ;;  %v4383_v37 = vpop.f32.mrf.mxu0 }
 0x15d   : > { %v4415_v14 = vpop.f32.mrf.mxu1 }
 0x15e   : > { %v1512_v0 = vadd.f32 %v4415_v14, %v4383_v37  ;;  %v1358_v56 = vpop.f32.mrf.mxu0 }
 0x15f   : > { %v1503_v47 = vpop.f32.mrf.mxu1 }
 0x160   : > { %v1504_v15 = vadd.f32 %v1503_v47, %v1358_v56  ;;  %v4386_v4 = vpop.f32.mrf.mxu0 }
 0x161   : > { %v4418_v35 = vpop.f32.mrf.mxu1 }
 0x162   : > { %v1525_v21 = vadd.f32 %v4418_v35, %v4386_v4  ;;  %v1371_v51 = vpop.f32.mrf.mxu0 }
 0x163   : > { %v1516_v62 = vpop.f32.mrf.mxu1 }
 0x164   : > { %v1517_v48 = vadd.f32 %v1516_v62, %v1371_v51  ;;  %v4387_v7 = vpop.f32.mrf.mxu0 }
 0x165   : > { %v4419_v22 = vpop.f32.mrf.mxu1 }
 0x166   : > { %v1528_v1 = vadd.f32 %v4419_v22, %v4387_v7  ;;  %v1374_v54 = vpop.f32.mrf.mxu0 }
 0x167   : > { %v1519_v43 = vpop.f32.mrf.mxu1 }
 0x168   : > { %v1520_v40 = vadd.f32 %v1519_v43, %v1374_v54  ;;  %v4438_v39 = vpop.f32.mrf.mxu0 }
 0x169   : > { %v1840_v23 = vadd.f32 %v4438_v39, %v1477_v26  ;;  %v4470_v63 = vpop.f32.mrf.mxu1 }
 0x16a   : > { %v1775_v58 = vpop.f32.mrf.mxu0 }
 0x16b   : > { %v5952_v38 = vadd.f32 %v4470_v63, %v1840_v23  ;;  %v1838_v44 = vadd.f32 %v1775_v58, %v1469_v8  ;;  %v2095_v49 = vpop.f32.mrf.mxu1 }
 0x16c   : > { %v4439_v34 = vpop.f32.mrf.mxu0 }
 0x16d   : > { %v5954_v16 = vadd.f32 %v2095_v49, %v1838_v44  ;;  %v1841_v36 = vadd.f32 %v4439_v34, %v1480_v28  ;;  %v4471_v5 = vpop.f32.mrf.mxu1 }
 0x16e   : > { %v1778_v57 = vpop.f32.mrf.mxu0 }
 0x16f   : > { %v5956_v33 = vadd.f32 %v4471_v5, %v1841_v36  ;;  %v1839_v9 = vadd.f32 %v1778_v57, %v1472_v31  ;;  %v2098_v52 = vpop.f32.mrf.mxu1 }
 0x170   : > { %v4442_v18 = vpop.f32.mrf.mxu0 }
 0x171   : > { %v5958_v32 = vadd.f32 %v2098_v52, %v1839_v9  ;;  %v1844_v50 = vadd.f32 %v4442_v18, %v1493_v20  ;;  %v4474_v26 = vpop.f32.mrf.mxu1 }
 0x172   : > { %v1791_v27 = vpop.f32.mrf.mxu0 }
 0x173   : > { %v5960_v60 = vadd.f32 %v4474_v26, %v1844_v50  ;;  %v1842_v8 = vadd.f32 %v1791_v27, %v1485_v2  ;;  %v2111_v10 = vpop.f32.mrf.mxu1 }
 0x174   : > { %v4443_v11 = vpop.f32.mrf.mxu0 }
 0x175   : > { %v5962_v41 = vadd.f32 %v2111_v10, %v1842_v8  ;;  %v1845_v28 = vadd.f32 %v4443_v11, %v1496_v25  ;;  %v4475_v6 = vpop.f32.mrf.mxu1 }
 0x176   : > { %v1794_v13 = vpop.f32.mrf.mxu0 }
 0x177   : > { %v5964_v55 = vadd.f32 %v4475_v6, %v1845_v28  ;;  %v1843_v31 = vadd.f32 %v1794_v13, %v1488_v53  ;;  %v2114_v46 = vpop.f32.mrf.mxu1 }
 0x178   : > { %v4446_v19 = vpop.f32.mrf.mxu0 }
 0x179   : > { %v5966_v12 = vadd.f32 %v2114_v46, %v1843_v31  ;;  %v1848_v20 = vadd.f32 %v4446_v19, %v1509_v45  ;;  %v4478_v29 = vpop.f32.mrf.mxu1 }
 0x17a   : > { %v1807_v17 = vpop.f32.mrf.mxu0 }
 0x17b   : > { %v5968_v42 = vadd.f32 %v4478_v29, %v1848_v20  ;;  %v1846_v2 = vadd.f32 %v1807_v17, %v1501_v59  ;;  %v2127_v30 = vpop.f32.mrf.mxu1 }
 0x17c   : > { %v4447_v3 = vpop.f32.mrf.mxu0 }
 0x17d   : > { %v5970_v61 = vadd.f32 %v2127_v30, %v1846_v2  ;;  %v1849_v25 = vadd.f32 %v4447_v3, %v1512_v0  ;;  %v4479_v24 = vpop.f32.mrf.mxu1 }
 0x17e   : > { %v1810_v37 = vpop.f32.mrf.mxu0 }
 0x17f   : > { %v5972_v14 = vadd.f32 %v4479_v24, %v1849_v25  ;;  %v1847_v53 = vadd.f32 %v1810_v37, %v1504_v15  ;;  %v2130_v56 = vpop.f32.mrf.mxu1 }
 0x180   : > { %v4450_v47 = vpop.f32.mrf.mxu0 }
 0x181   : > { %v5974_v4 = vadd.f32 %v2130_v56, %v1847_v53  ;;  %v1852_v45 = vadd.f32 %v4450_v47, %v1525_v21  ;;  %v4482_v35 = vpop.f32.mrf.mxu1 }
 0x182   : > { %v1823_v51 = vpop.f32.mrf.mxu0 }
 0x183   : > { %v5976_v62 = vadd.f32 %v4482_v35, %v1852_v45  ;;  %v1850_v59 = vadd.f32 %v1823_v51, %v1517_v48  ;;  %v2143_v7 = vpop.f32.mrf.mxu1 }
 0x184   : > { %v4451_v22 = vpop.f32.mrf.mxu0 }
 0x185   : > { %v5978_v54 = vadd.f32 %v2143_v7, %v1850_v59  ;;  %v1853_v0 = vadd.f32 %v4451_v22, %v1528_v1  ;;  %v4483_v43 = vpop.f32.mrf.mxu1 }
 0x186   : > { %v1826_v39 = vpop.f32.mrf.mxu0 }
 0x187   : > { %v5980_v23 = vadd.f32 %v4483_v43, %v1853_v0  ;;  %v1851_v15 = vadd.f32 %v1826_v39, %v1520_v40  ;;  %v2146_v63 = vpop.f32.mrf.mxu1 }
 0x188   : > { %v4502_v58 = vpop.f32.mrf.mxu0 }
 0x189   : > { %v5982_v44 = vadd.f32 %v2146_v63, %v1851_v15  ;;  %v5984_v21 = vpop.f32.mrf.mxu1 }
 0x18a   : > { %v2281_v49 = vpop.f32.mrf.mxu0 }
 0x18b   : > { %v5986_v34 = vpop.f32.mrf.mxu1 }
 0x18c   : > { %v4503_v48 = vpop.f32.mrf.mxu0 }
 0x18d   : > { %v5988_v36 = vpop.f32.mrf.mxu1 }
 0x18e   : > { %v2284_v5 = vpop.f32.mrf.mxu0 }
 0x18f   : > { %v5990_v57 = vpop.f32.mrf.mxu1 }
 0x190   : > { %v4506_v1 = vpop.f32.mrf.mxu0 }
 0x191   : > { %v5992_v9 = vpop.f32.mrf.mxu1 }
 0x192   : > { %v2297_v52 = vpop.f32.mrf.mxu0 }
 0x193   : > { %v5994_v40 = vpop.f32.mrf.mxu1 }
 0x194   : > { %v5996_v18 = vpop.f32.mrf.mxu0 }
 0x195   : > { %v5998_v50 = vpop.f32.mrf.mxu1 }
 0x196   : > { %v6000_v26 = vpop.f32.mrf.mxu0 }
 0x197   : > { %v6002_v27 = vpop.f32.mrf.mxu1 }
 0x198   : > { %6264 = vst [vmem:[#allocation10_spill] sm:$0xff] %v6002_v27  ;;  %v4510_v8 = vpop.f32.mrf.mxu0 }
 0x199   : > { %v4542_v10 = vpop.f32.mrf.mxu1 }
 0x19a   : > { %v2313_v11 = vpop.f32.mrf.mxu0 }
 0x19b   : > { %v2537_v28 = vpop.f32.mrf.mxu1 }
 0x19c   : > { %v4511_v6 = vpop.f32.mrf.mxu0 }
 0x19d   : > { %v6004_v13 = vpop.f32.mrf.mxu1 }
 0x19e   : > { %v2316_v31 = vpop.f32.mrf.mxu0 }
 0x19f   : > { %v2540_v46 = vpop.f32.mrf.mxu1 }
 0x1a0   : > { %v4514_v19 = vpop.f32.mrf.mxu0 }
 0x1a1   : > { %v6006_v20 = vpop.f32.mrf.mxu1 }
 0x1a2   : > { %6265 = vst [vmem:[#allocation11_spill] sm:$0xff] %v6006_v20  ;;  %v2329_v29 = vpop.f32.mrf.mxu0 }
 0x1a3   : > { %v6008_v17 = vpop.f32.mrf.mxu1 }
 0x1a4   : > { %6266 = vst [vmem:[#allocation12_spill] sm:$0xff] %v6008_v17  ;;  %v4515_v2 = vpop.f32.mrf.mxu0 }
 0x1a5   : > { %v6010_v30 = vpop.f32.mrf.mxu1 }
 0x1a6   : > { %6267 = vst [vmem:[#allocation13_spill] sm:$0xff] %v6010_v30  ;;  %v2332_v3 = vpop.f32.mrf.mxu0 }
 0x1a7   : > { %v6012_v25 = vpop.f32.mrf.mxu1 }
 0x1a8   : > { %6268 = vst [vmem:[#allocation14_spill] sm:$0xff] %v6012_v25  ;;  %v4566_v24 = vpop.f32.mrf.mxu0 }
 0x1a9   : > { %v6014_v37 = vpop.f32.mrf.mxu1 }
 0x1aa   : > { %6269 = vst [vmem:[#allocation15_spill] sm:$0xff] %v6014_v37  ;;  %v2825_v53 = vpop.f32.mrf.mxu0 }
 0x1ab   : > { %v6016_v56 = vpop.f32.mrf.mxu1 }
 0x1ac   : > { %6270 = vst [vmem:[#allocation16_spill] sm:$0xff] %v6016_v56  ;;  %v4567_v47 = vpop.f32.mrf.mxu0 }
 0x1ad   : > { %v6018_v45 = vpop.f32.mrf.mxu1 }
 0x1ae   : > { %6271 = vst [vmem:[#allocation17_spill] sm:$0xff] %v6018_v45  ;;  %v2828_v35 = vpop.f32.mrf.mxu0 }
 0x1af   : > { %v6020_v51 = vpop.f32.mrf.mxu1 }
 0x1b0   : > { %6272 = vst [vmem:[#allocation18_spill] sm:$0xff] %v6020_v51  ;;  %v4570_v59 = vpop.f32.mrf.mxu0 }
 0x1b1   : > { %v6022_v7 = vpop.f32.mrf.mxu1 }
 0x1b2   : > { %6273 = vst [vmem:[#allocation19_spill] sm:$0xff] %v6022_v7  ;;  %v2841_v22 = vpop.f32.mrf.mxu0 }
 0x1b3   : > { %v6024_v0 = vpop.f32.mrf.mxu1 }
 0x1b4   : > { %6274 = vst [vmem:[#allocation20_spill] sm:$0xff] %v6024_v0  ;;  %v6026_v43 = vpop.f32.mrf.mxu0  ;;  %v2346_v0 = vadd.f32 %v4502_v58, %v5952_v38  ;;  %v2355_v38 = vadd.f32 %v4511_v6, %v5972_v14  ;;  %v2351_v14 = vadd.f32 %v5996_v18, %v5964_v55 }
 0x1b5   : > { %6275 = vst [vmem:[#allocation21_spill] sm:$0xff] %v6026_v43  ;;  %v6028_v39 = vpop.f32.mrf.mxu1  ;;  %v2344_v43 = vadd.f32 %v2281_v49, %v5954_v16  ;;  %v2353_v16 = vadd.f32 %v2316_v31, %v5974_v4  ;;  %v2349_v4 = vadd.f32 %v6000_v26, %v5966_v12 }
 0x1b6   : > { %6276 = vst [vmem:[#allocation22_spill] sm:$0xff] %v6028_v39  ;;  %v6030_v15 = vpop.f32.mrf.mxu0  ;;  %v2347_v39 = vadd.f32 %v4503_v48, %v5956_v33  ;;  %v2575_v31 = vadd.f32 %v5998_v50, %v2351_v14 }
 0x1b7   : > { %6277 = vst [vmem:[#allocation23_spill] sm:$0xff] %v6030_v15  ;;  %v6032_v63 = vpop.f32.mrf.mxu1  ;;  %v2345_v15 = vadd.f32 %v2284_v5, %v5958_v32  ;;  %v2570_v32 = vadd.f32 %v5984_v21, %v2346_v0  ;;  %v6290_v0 = vld [vmem:[#allocation18_spill] sm:$0xff] }
 0x1b8   : > { %6278 = vst [vmem:[#allocation24_spill] sm:$0xff] %v6032_v63  ;;  %v4574_v56 = vpop.f32.mrf.mxu0  ;;  %v2350_v63 = vadd.f32 %v4506_v1, %v5960_v60  ;;  %v2568_v60 = vadd.f32 %v5986_v34, %v2344_v43  ;;  %v2358_v34 = vadd.f32 %v4514_v19, %v5976_v62  ;;  %v2579_v1 = vadd.f32 %v6004_v13, %v2355_v38  ;;  %v6282_v13 = vld [vmem:[#allocation10_spill] sm:$0xff]  ;;  %v6283_v19 = vld [vmem:[#allocation11_spill] sm:$0xff] }
 0x1b9   : > { %v6034_v37 = vpop.f32.mrf.mxu1  ;;  %v2569_v58 = vadd.f32 %v5990_v57, %v2345_v15  ;;  %v2890_v18 = vadd.f32 %v4566_v24, %v2570_v32  ;;  %v6291_v15 = vld [vmem:[#allocation19_spill] sm:$0xff] }
 0x1ba   : > { %6279 = vst [vmem:[#allocation25_spill] sm:$0xff] %v6034_v37  ;;  %v2857_v45 = vpop.f32.mrf.mxu0  ;;  %v2348_v37 = vadd.f32 %v2297_v52, %v5962_v41  ;;  %v2571_v41 = vadd.f32 %v5988_v36, %v2347_v39  ;;  %v2356_v36 = vadd.f32 %v2329_v29, %v5978_v54  ;;  %v2359_v52 = vadd.f32 %v4515_v2, %v5980_v23  ;;  %v6284_v29 = vld [vmem:[#allocation12_spill] sm:$0xff] }
 0x1bb   : > { %v6036_v25 = vpop.f32.mrf.mxu1  ;;  %v2889_v26 = vadd.f32 %v2828_v35, %v2569_v58  ;;  %v2582_v23 = vadd.f32 %v6283_v19, %v2358_v34  ;;  %v6287_v35 = vld [vmem:[#allocation15_spill] sm:$0xff]  ;;  %v6292_v38 = vld [vmem:[#allocation20_spill] sm:$0xff] }
 0x1bc   : > { %6280 = vst [vmem:[#allocation26_spill] sm:$0xff] %v6036_v25  ;;  %v4575_v51 = vpop.f32.mrf.mxu0  ;;  %v2354_v25 = vadd.f32 %v4510_v8, %v5968_v42  ;;  %v2574_v42 = vadd.f32 %v5992_v9, %v2350_v63  ;;  %v2577_v9 = vadd.f32 %v2540_v46, %v2353_v16  ;;  %v2888_v8 = vadd.f32 %v2825_v53, %v2568_v60 }
 0x1bd   : > { %v6038_v30 = vpop.f32.mrf.mxu1  ;;  %v2891_v12 = vadd.f32 %v4567_v47, %v2571_v41  ;;  %v2899_v54 = vadd.f32 %v4575_v51, %v2579_v1  ;;  %v2573_v46 = vadd.f32 %v6282_v13, %v2349_v4  ;;  %v6288_v51 = vld [vmem:[#allocation16_spill] sm:$0xff]  ;;  %v3075_v43 = vadd.f32 %v6290_v0, %v2889_v26 }
 0x1be   : > { %6281 = vst [vmem:[#allocation27_spill] sm:$0xff] %v6038_v30  ;;  %v2860_v7 = vpop.f32.mrf.mxu0  ;;  %v2352_v30 = vadd.f32 %v2313_v11, %v5970_v61  ;;  %v2572_v61 = vadd.f32 %v5994_v40, %v2348_v37  ;;  %v2578_v21 = vadd.f32 %v4542_v10, %v2354_v25  ;;  %v2357_v40 = vadd.f32 %v2332_v3, %v5982_v44  ;;  %v6286_v25 = vld [vmem:[#allocation14_spill] sm:$0xff] }
 0x1bf   : > { %v6044_v17 = vpop.f32.mrf.mxu1  ;;  %v2894_v11 = vadd.f32 %v4570_v59, %v2574_v42  ;;  %v2580_v44 = vadd.f32 %v6284_v29, %v2356_v36  ;;  %v2897_v53 = vadd.f32 %v2860_v7, %v2577_v9  ;;  %v3074_v59 = vadd.f32 %v6288_v51, %v2888_v8  ;;  %v6295_v7 = vld [vmem:[#allocation21_spill] sm:$0xff] }
 0x1c0   : > { %v6048_v20 = vpop.f32.mrf.mxu0  ;;  %v2576_v5 = vadd.f32 %v2537_v28, %v2352_v30  ;;  %v2892_v62 = vadd.f32 %v2841_v22, %v2572_v61  ;;  %v2898_v28 = vadd.f32 %v4574_v56, %v2578_v21  ;;  %v6285_v30 = vld [vmem:[#allocation13_spill] sm:$0xff]  ;;  %v2581_v24 = vadd.f32 %v6286_v25, %v2357_v40  ;;  %v6297_v40 = vld [vmem:[#allocation23_spill] sm:$0xff] }
 0x1c1   : > { %v6052_v27 = vpop.f32.mrf.mxu1  ;;  %v2583_v3 = vadd.f32 %v6285_v30, %v2359_v52  ;;  %v3076_v56 = vadd.f32 %v6287_v35, %v2890_v18  ;;  %v6289_v22 = vld [vmem:[#allocation17_spill] sm:$0xff]  ;;  %v3080_v63 = vadd.f32 %v6291_v15, %v2894_v11  ;;  %v2895_v42 = vadd.f32 %v6295_v7, %v2575_v31 }
 0x1c2   : > { %v6056_v33 = vpop.f32.mrf.mxu0  ;;  %v2896_v37 = vadd.f32 %v2857_v45, %v2576_v5  ;;  %v3077_v50 = vadd.f32 %v6289_v22, %v2891_v12  ;;  %v3078_v16 = vadd.f32 %v6292_v38, %v2892_v62  ;;  %v6293_v32 = vld [vmem:[#allocation25_spill] sm:$0xff]  ;;  %v3083_v36 = vadd.f32 %v6044_v17, %v2897_v53 }
 0x1c3   : > { %v6062_v49 = vpop.f32.mrf.mxu1  ;;  %v3084_v60 = vadd.f32 %v6293_v32, %v2898_v28  ;;  %v6296_v5 = vld [vmem:[#allocation26_spill] sm:$0xff]  ;;  %v2893_v18 = vadd.f32 %v6297_v40, %v2573_v46  ;;  %v2902_v8 = vadd.f32 %v6048_v20, %v2582_v23 }
 0x1c4   : > { %v4579_v48 = vpop.f32.mrf.mxu0  ;;  %v3082_v34 = vadd.f32 %v6296_v5, %v2896_v37  ;;  %v6298_v23 = vld [vmem:[#allocation22_spill] sm:$0xff] }
 0x1c5   : > { %v6072_v57 = vpop.f32.mrf.mxu1  ;;  %v6294_v41 = vld [vmem:[#allocation27_spill] sm:$0xff]  ;;  %v2903_v62 = vadd.f32 %v4579_v48, %v2583_v3  ;;  %v3081_v29 = vadd.f32 %v6298_v23, %v2895_v42  ;;  %v2900_v48 = vadd.f32 %v6056_v33, %v2580_v44 }
 0x1c6   : > { %v2876_v55 = vpop.f32.mrf.mxu0  ;;  %v3085_v58 = vadd.f32 %v6294_v41, %v2899_v54 }
 0x1c7   : > { %v6077_v10 = vpop.f32.mrf.mxu1  ;;  %v3089_v22 = vadd.f32 %v6072_v57, %v2903_v62 }
 0x1c8   : > { %v4630_v6 = vpop.f32.mrf.mxu0 }
 0x1c9   : > { %v4638_v2 = vpop.f32.mrf.mxu1  ;;  %v3300_v61 = vadd.f32 %v4630_v6, %v3076_v56  ;;  %v6299_v56 = vld [vmem:[#allocation24_spill] sm:$0xff] }
 0x1ca   : > { %v3235_v47 = vpop.f32.mrf.mxu0  ;;  %v6096_v1 = vadd.f32 %v4638_v2, %v3084_v60  ;;  %v2901_v2 = vadd.f32 %v2876_v55, %v2581_v24  ;;  %v3079_v51 = vadd.f32 %v6299_v56, %v2893_v18 }
 0x1cb   : > { %v3267_v39 = vpop.f32.mrf.mxu1  ;;  %v3298_v14 = vadd.f32 %v3235_v47, %v3074_v59  ;;  %v3338_v25 = vmul.f32 %v3300_v61, %v3300_v61  ;;  %v3088_v59 = vadd.f32 %v6052_v27, %v2902_v8 }
 0x1cc   : > { %v4631_v45 = vpop.f32.mrf.mxu0  ;;  %v6102_v28 = vadd.f32 %v3267_v39, %v3082_v34  ;;  %v3086_v39 = vadd.f32 %v6062_v49, %v2900_v48  ;;  %v3087_v15 = vadd.f32 %v6077_v10, %v2901_v2 }
 0x1cd   : > { %v3301_v4 = vadd.f32 %v4631_v45, %v3077_v50  ;;  %v4639_v21 = vpop.f32.mrf.mxu1  ;;  %v3336_v31 = vmul.f32 %v3298_v14, %v3298_v14 }
 0x1ce   : > { %v6098_v9 = vadd.f32 %v4639_v21, %v3085_v58  ;;  %v3238_v52 = vpop.f32.mrf.mxu0  ;;  %v3344_v18 = vmul.f32 %v6102_v28, %v6102_v28 }
 0x1cf   : > { %v4155_v12 = vpack.c.bf16 %v3301_v4, %v3300_v61  ;;  %v3299_v26 = vadd.f32 %v3238_v52, %v3075_v43  ;;  %v3270_v11 = vpop.f32.mrf.mxu1  ;;  %v3339_v50 = vmul.f32 %v3301_v4, %v3301_v4 }
 0x1d0   : > { %v4175_v54 = vpack.c.bf16 %v6098_v9, %v6096_v1  ;;  %v6106_v17 = vadd.f32 %v3270_v11, %v3083_v36  ;;  %v4634_v6 = vpop.f32.mrf.mxu0 }
 0x1d1   : > { %4205 = vst [vmem:[%s4933_s14 + $0x8] sm:$0xff] %v4155_v12   ;;  %v3314_v13 = vadd.f32 %v3299_v26, %v3298_v14  ;;  %v3337_v46 = vmul.f32 %v3299_v26, %v3299_v26  ;;  %v4150_v19 = vpack.c.bf16 %v3299_v26, %v3298_v14  ;;  %v4642_v20 = vpop.f32.mrf.mxu1  ;;  %v3304_v44 = vadd.f32 %v4634_v6, %v3080_v63 }
 0x1d2   : > { %4209 = vst [vmem:[%s4933_s14 + $0x28] sm:$0xff] %v4175_v54   ;;  %v4170_v30 = vpack.c.bf16 %v6106_v17, %v6102_v28  ;;  %v3251_v3 = vpop.f32.mrf.mxu0  ;;  %v3312_v38 = vadd.f32 %v4642_v20, %v3088_v59  ;;  %v3345_v26 = vmul.f32 %v6106_v17, %v6106_v17  ;;  %v3346_v54 = vmul.f32 %v6096_v1, %v6096_v1 }
 0x1d3   : > { %v3315_v37 = vadd.f32 %v3314_v13, %v3300_v61  ;;  %v3352_v53 = vadd.f32 %v3337_v46, %v3336_v31  ;;  %4151 = vst [vmem:[%s4933_s14] sm:$0xff] %v4150_v19   ;;  %v3302_v47 = vadd.f32 %v3251_v3, %v3078_v16  ;;  %v3283_v35 = vpop.f32.mrf.mxu1  ;;  %v3342_v21 = vmul.f32 %v3304_v44, %v3304_v44 }
 0x1d4   : > { %4208 = vst [vmem:[%s4933_s14 + $0x20] sm:$0xff] %v4170_v30   ;;  %v4635_v33 = vpop.f32.mrf.mxu0  ;;  %v3310_v61 = vadd.f32 %v3283_v35, %v3086_v39  ;;  %v3347_v13 = vmul.f32 %v6098_v9, %v6098_v9  ;;  %v3350_v30 = vmul.f32 %v3312_v38, %v3312_v38 }
 0x1d5   : > { %v3353_v55 = vadd.f32 %v3352_v53, %v3338_v25  ;;  %v3316_v24 = vadd.f32 %v3315_v37, %v3301_v4  ;;  %v3305_v0 = vadd.f32 %v4635_v33, %v3081_v29  ;;  %v4643_v43 = vpop.f32.mrf.mxu1  ;;  %v3340_v60 = vmul.f32 %v3302_v47, %v3302_v47 }
 0x1d6   : > { %v3313_v16 = vadd.f32 %v4643_v43, %v3089_v22  ;;  %v3254_v32 = vpop.f32.mrf.mxu0 }
 0x1d7   : > { %v3317_v27 = vadd.f32 %v3316_v24, %v3302_v47  ;;  %v3354_v57 = vadd.f32 %v3353_v55, %v3339_v50  ;;  %v4165_v41 = vpack.c.bf16 %v3305_v0, %v3304_v44  ;;  %v3286_v58 = vpop.f32.mrf.mxu1  ;;  %v3303_v45 = vadd.f32 %v3254_v32, %v3079_v51 }
 0x1d8   : > { %v4185_v63 = vpack.c.bf16 %v3313_v16, %v3312_v38  ;;  %v3311_v7 = vadd.f32 %v3286_v58, %v3087_v15  ;;  %v3343_v36 = vmul.f32 %v3305_v0, %v3305_v0  ;;  %v3351_v25 = vmul.f32 %v3313_v16, %v3313_v16 }
 0x1d9   : > { %v3355_v42 = vadd.f32 %v3354_v57, %v3340_v60  ;;  %4207 = vst [vmem:[%s4933_s14 + $0x18] sm:$0xff] %v4165_v41   ;;  %v3318_v49 = vadd.f32 %v3317_v27, %v3303_v45  ;;  %v3341_v14 = vmul.f32 %v3303_v45, %v3303_v45  ;;  %v4160_v10 = vpack.c.bf16 %v3303_v45, %v3302_v47 }
 0x1da   : > { %4211 = vst [vmem:[%s4933_s14 + $0x38] sm:$0xff] %v4185_v63   ;;  %v4180_v4 = vpack.c.bf16 %v3311_v7, %v3310_v61  ;;  %v3349_v48 = vmul.f32 %v3311_v7, %v3311_v7 }
 0x1db   : > { %v3319_v5 = vadd.f32 %v3318_v49, %v3304_v44  ;;  %v3356_v34 = vadd.f32 %v3355_v42, %v3341_v14  ;;  %4206 = vst [vmem:[%s4933_s14 + $0x10] sm:$0xff] %v4160_v10  }
 0x1dc   : > { %4210 = vst [vmem:[%s4933_s14 + $0x30] sm:$0xff] %v4180_v4  }
 0x1dd   : > { %v3320_v52 = vadd.f32 %v3319_v5, %v3305_v0  ;;  %v3357_v40 = vadd.f32 %v3356_v34, %v3342_v21 }
 0x1df   : > { %v3321_v8 = vadd.f32 %v3320_v52, %v6102_v28  ;;  %v3358_v12 = vadd.f32 %v3357_v40, %v3343_v36  ;;  %v3348_v28 = vmul.f32 %v3310_v61, %v3310_v61 }
 0x1e1   : > { %v3359_v11 = vadd.f32 %v3358_v12, %v3344_v18  ;;  %v3322_v62 = vadd.f32 %v3321_v8, %v6106_v17 }
 0x1e3   : > { %v3323_v6 = vadd.f32 %v3322_v62, %v6096_v1  ;;  %v3360_v31 = vadd.f32 %v3359_v11, %v3345_v26 }
 0x1e5   : > { %v3324_v46 = vadd.f32 %v3323_v6, %v6098_v9  ;;  %v3361_v19 = vadd.f32 %v3360_v31, %v3346_v54 }
 0x1e7   : > { %v3325_v20 = vadd.f32 %v3324_v46, %v3310_v61  ;;  %v3362_v23 = vadd.f32 %v3361_v19, %v3347_v13 }
 0x1e9   : > { %v3326_v29 = vadd.f32 %v3325_v20, %v3311_v7  ;;  %v3363_v2 = vadd.f32 %v3362_v23, %v3348_v28 }
 0x1eb   : > { %v3327_v17 = vadd.f32 %v3326_v29, %v3312_v38  ;;  %v3364_v3 = vadd.f32 %v3363_v2, %v3349_v48 }
 0x1ed   : > { %v3328_v37 = vadd.f32 %v3327_v17, %v3313_v16  ;;  %v3365_v1 = vadd.f32 %v3364_v3, %v3350_v30 }
 0x1ef   : > { %v3329_v53 = vrot.slane %v3328_v37, 4  ;;  %v3366_v47 = vadd.f32 %v3365_v1, %v3351_v25 }
 0x1f1   : > { %v3330_v35 = vadd.f32 %v3329_v53, %v3328_v37  ;;  %v3367_v56 = vrot.slane %v3366_v47, 4 }
 0x1f3   : > { %v3331_v9 = vrot.slane %v3330_v35, 2  ;;  %v3368_v51 = vadd.f32 %v3367_v56, %v3366_v47 }
 0x1f5   : > { %v3332_v59 = vadd.f32 %v3331_v9, %v3330_v35  ;;  %v3369_v22 = vrot.slane %v3368_v51, 2 }
 0x1f7   : > { %v3333_v50 = vrot.slane %v3332_v59, 1  ;;  %v3370_v33 = vadd.f32 %v3369_v22, %v3368_v51 }
 0x1f9   : > { %v3334_v55 = vadd.f32 %v3333_v50, %v3332_v59  ;;  %v3371_v44 = vrot.slane %v3370_v33, 1 }
 0x1fb   : > { %3335 = vst [vmem:[%s258_s20] sm:$0x1] %v3334_v55  ;;  %v3372_v24 = vadd.f32 %v3371_v44, %v3370_v33 }
 0x1fd   : > { %3373 = vst [vmem:[%s6300_s12] sm:$0x1] %v3372_v24 }
 0x1fe PF: > { %s17_s25 = sadd.s32 1, %s4850_s25   ;;  %s6301_s21 = smov %s4842_s23 }
 0x1ff   : > { %p14_p12 = scmp.ge.s32.totalorder %s17_s25, 6   ;;  %s6302_s22 = smov %s4846_s24 }
 0x200   : > { %s6303_s23 = smov %s6306_s26  ;;  %s6304_s24 = smov %s6310_s27 }
 0x201   :  { %16 = sbr.rel (!%p14_p12) target bundleno = 3 (0x3), region = 234 }
 0x206   :  { %3524 = vsyncmov [#allocation3] }
 0x209   :  { %s3525_s16 = vpop.sfrf %3524 }
 0x20a   :  { %p4018_p13 = scmp.ne.s32.totalorder %s3525_s16, 0 }
 0x20c   :  { %3529 = shalt.err (%p4018_p13)  }
 0x20d   :  { %3531 = vsyncmov [#allocation3 + $0x1] }
 0x210   :  { %s3532_s20 = vpop.sfrf %3531 }
 0x211   :  { %p4019_p0 = scmp.ne.s32.totalorder %s3532_s20, 0 }
 0x213   :  { %3536 = shalt.err (%p4019_p0)  }
 0x214   :  { %3538 = vsyncmov [#allocation3 + $0x2] }
 0x217   :  { %s3539_s9 = vpop.sfrf %3538 }
 0x218   :  { %p4020_p1 = scmp.ne.s32.totalorder %s3539_s9, 0 }
 0x21a   :  { %3543 = shalt.err (%p4020_p1)  }

</bundles_post_ra>
